<compile_context>
chip_gen: v7x
topology: tpu7x:2x2x1
jax: 0.10.0
libtpu: 0.0.40
codegen_flags: <defaults>
</compile_context>

<pallas_src>
import functools

import jax
import jax.numpy as jnp
from jax.experimental import pallas as pl
from jax.experimental.pallas import tpu as pltpu

# Safe on every generation (<= default scoped VMEM on v6e/v7x, raises v5e's
# 16 MiB default); far above what these tiles need, set explicitly per review.
_VMEM_LIMIT = 32 * 1024 * 1024


def _pick_tile(n):
    """Largest tile in {512, 256, 128} dividing n while leaving >= 2 blocks."""
    for t in (512, 256, 128):
        if t < n and n % t == 0:
            return t
    return n


# --------------------------------------------------------------------------
# Kernel A: fused layer-1 (both branches sharing one adjacency)
#   acc  = adj @ x                      (accumulated over contraction tiles)
#   z1   = relu(acc @ [W1_a | W1_b] + [b1_a | b1_b])
#   out  = z1 @ blockdiag(W2_a, W2_b)   ("support" consumed by layer 2)
# --------------------------------------------------------------------------
def _gcn_l1_kernel(adj_ref, x_ref, w1_ref, b1_ref, w2_ref, sup_ref, acc_ref):
    k = pl.program_id(1)

    @pl.when(k == 0)
    def _():
        acc_ref[...] = jnp.zeros_like(acc_ref)

    acc_ref[...] += jnp.dot(adj_ref[...], x_ref[...],
                            preferred_element_type=jnp.float32)

    @pl.when(k == pl.num_programs(1) - 1)
    def _():
        z1 = jnp.maximum(
            jnp.dot(acc_ref[...], w1_ref[...],
                    preferred_element_type=jnp.float32) + b1_ref[...],
            0.0)
        sup_ref[...] = jnp.dot(z1, w2_ref[...],
                               preferred_element_type=jnp.float32)


def gcn_layer1_support(adj, x, w1cat, b1cat, w2cat):
    n, nfeat = x.shape
    two_nhid1 = w1cat.shape[1]
    two_nhid2 = w2cat.shape[1]
    tm = _pick_tile(n)
    tk = _pick_tile(n)
    grid = (n // tm, n // tk)
    return pl.pallas_call(
        _gcn_l1_kernel,
        out_shape=jax.ShapeDtypeStruct((n, two_nhid2), jnp.float32),
        grid_spec=pltpu.PrefetchScalarGridSpec(
            num_scalar_prefetch=0,
            grid=grid,
            in_specs=[
                pl.BlockSpec((tm, tk), lambda i, k: (i, k)),            # adj
                pl.BlockSpec((tk, nfeat), lambda i, k: (k, 0)),         # x
                pl.BlockSpec((nfeat, two_nhid1), lambda i, k: (0, 0)),  # W1 cat
                pl.BlockSpec((1, two_nhid1), lambda i, k: (0, 0)),      # b1 cat
                pl.BlockSpec((two_nhid1, two_nhid2), lambda i, k: (0, 0)),  # W2 bd
            ],
            out_specs=pl.BlockSpec((tm, two_nhid2), lambda i, k: (i, 0)),
            scratch_shapes=[pltpu.VMEM((tm, nfeat), jnp.float32)],
        ),
        compiler_params=pltpu.CompilerParams(
            dimension_semantics=("parallel", "arbitrary"),
            vmem_limit_bytes=_VMEM_LIMIT),
    )(adj, x, w1cat, b1cat, w2cat)


# --------------------------------------------------------------------------
# Kernel B: fused layer-2 aggregation (both branches sharing one adjacency)
#   out = relu(adj @ support + [b2_a | b2_b])
# --------------------------------------------------------------------------
def _gcn_l2_kernel(adj_ref, sup_ref, b2_ref, out_ref, acc_ref):
    k = pl.program_id(1)

    @pl.when(k == 0)
    def _():
        acc_ref[...] = jnp.zeros_like(acc_ref)

    acc_ref[...] += jnp.dot(adj_ref[...], sup_ref[...],
                            preferred_element_type=jnp.float32)

    @pl.when(k == pl.num_programs(1) - 1)
    def _():
        out_ref[...] = jnp.maximum(acc_ref[...] + b2_ref[...], 0.0)


def gcn_layer2(adj, sup, b2cat):
    n, width = sup.shape
    tm = _pick_tile(n)
    tk = _pick_tile(n)
    grid = (n // tm, n // tk)
    return pl.pallas_call(
        _gcn_l2_kernel,
        out_shape=jax.ShapeDtypeStruct((n, width), jnp.float32),
        grid_spec=pltpu.PrefetchScalarGridSpec(
            num_scalar_prefetch=0,
            grid=grid,
            in_specs=[
                pl.BlockSpec((tm, tk), lambda i, k: (i, k)),      # adj
                pl.BlockSpec((tk, width), lambda i, k: (k, 0)),   # support
                pl.BlockSpec((1, width), lambda i, k: (0, 0)),    # b2 cat
            ],
            out_specs=pl.BlockSpec((tm, width), lambda i, k: (i, 0)),
            scratch_shapes=[pltpu.VMEM((tm, width), jnp.float32)],
        ),
        compiler_params=pltpu.CompilerParams(
            dimension_semantics=("parallel", "arbitrary"),
            vmem_limit_bytes=_VMEM_LIMIT),
    )(adj, sup, b2cat)


# --------------------------------------------------------------------------
# Kernel C: fused epilogue  (z_c average + attention + classifier)
# --------------------------------------------------------------------------
def _attn_clf_kernel(topo_ref, feat_ref,
                     wt_ref, wf_ref, wc_ref,
                     bt_ref, bf_ref, bc_ref,
                     q_ref, wclf_ref, bclf_ref,
                     y_ref, z_ref, at_ref, af_ref, ac_ref,
                     *, nhid2):
    topo = topo_ref[...]                      # [z_t | z_ct]
    feat = feat_ref[...]                      # [z_f | z_cf]
    z_t = topo[:, :nhid2]
    z_ct = topo[:, nhid2:]
    z_f = feat[:, :nhid2]
    z_cf = feat[:, nhid2:]
    z_c = (z_ct + z_cf) * 0.5

    q = q_ref[...]                            # (1, 16) row

    def score(z, w_ref, b_ref):
        h = jnp.tanh(jnp.dot(z, w_ref[...],
                             preferred_element_type=jnp.float32) + b_ref[...])
        # VPU multiply + lane reduction instead of a (N,16)@(16,1) MXU matmul.
        return jnp.sum(h * q, axis=-1, keepdims=True)

    e_t = score(z_t, wt_ref, bt_ref)
    e_f = score(z_f, wf_ref, bf_ref)
    e_c = score(z_c, wc_ref, bc_ref)

    m = jnp.maximum(jnp.maximum(e_t, e_f), e_c)
    ex_t = jnp.exp(e_t - m)
    ex_f = jnp.exp(e_f - m)
    ex_c = jnp.exp(e_c - m)
    inv = 1.0 / (ex_t + ex_f + ex_c)
    a_t = ex_t * inv
    a_f = ex_f * inv
    a_c = ex_c * inv

    z = a_t * z_t + a_f * z_f + a_c * z_c
    z_ref[...] = z
    at_ref[...] = a_t
    af_ref[...] = a_f
    ac_ref[...] = a_c

    logits = jnp.dot(z, wclf_ref[...],
                     preferred_element_type=jnp.float32) + bclf_ref[...]
    mm = jnp.max(logits, axis=-1, keepdims=True)
    sh = logits - mm
    lse = jnp.log(jnp.sum(jnp.exp(sh), axis=-1, keepdims=True))
    y_ref[...] = sh - lse


def attention_classifier(z2_topo, z2_feat, wt, wf, wc, bt, bf, bc, q_row,
                         wclf, bclf):
    n, width = z2_topo.shape
    nhid2 = width // 2
    nclass = wclf.shape[1]
    tm = _pick_tile(n)
    grid = (n // tm,)
    kernel = functools.partial(_attn_clf_kernel, nhid2=nhid2)
    return pl.pallas_call(
        kernel,
        out_shape=(
            jax.ShapeDtypeStruct((n, nclass), jnp.float32),   # y
            jax.ShapeDtypeStruct((n, nhid2), jnp.float32),    # z
            jax.ShapeDtypeStruct((n, 1), jnp.float32),        # a_t
            jax.ShapeDtypeStruct((n, 1), jnp.float32),        # a_f
            jax.ShapeDtypeStruct((n, 1), jnp.float32),        # a_c
        ),
        grid_spec=pltpu.PrefetchScalarGridSpec(
            num_scalar_prefetch=0,
            grid=grid,
            in_specs=[
                pl.BlockSpec((tm, width), lambda i: (i, 0)),
                pl.BlockSpec((tm, width), lambda i: (i, 0)),
                pl.BlockSpec(wt.shape, lambda i: (0, 0)),
                pl.BlockSpec(wf.shape, lambda i: (0, 0)),
                pl.BlockSpec(wc.shape, lambda i: (0, 0)),
                pl.BlockSpec(bt.shape, lambda i: (0, 0)),
                pl.BlockSpec(bf.shape, lambda i: (0, 0)),
                pl.BlockSpec(bc.shape, lambda i: (0, 0)),
                pl.BlockSpec(q_row.shape, lambda i: (0, 0)),
                pl.BlockSpec(wclf.shape, lambda i: (0, 0)),
                pl.BlockSpec(bclf.shape, lambda i: (0, 0)),
            ],
            out_specs=[
                pl.BlockSpec((tm, nclass), lambda i: (i, 0)),
                pl.BlockSpec((tm, nhid2), lambda i: (i, 0)),
                pl.BlockSpec((tm, 1), lambda i: (i, 0)),
                pl.BlockSpec((tm, 1), lambda i: (i, 0)),
                pl.BlockSpec((tm, 1), lambda i: (i, 0)),
            ],
        ),
        compiler_params=pltpu.CompilerParams(
            dimension_semantics=("parallel",),
            vmem_limit_bytes=_VMEM_LIMIT),
    )(z2_topo, z2_feat, wt, wf, wc, bt, bf, bc, q_row, wclf, bclf)


# --------------------------------------------------------------------------
# AM_GCN forward
# --------------------------------------------------------------------------
def _merged_branch_params(pa, pb):
    """Weight concat (layer 1) and block-diagonal W2 for two merged branches."""
    w1 = jnp.concatenate([pa["w1"], pb["w1"]], axis=1)     # (nfeat, 2*nhid1)
    b1 = jnp.concatenate([pa["b1"], pb["b1"]], axis=1)     # (1, 2*nhid1)
    nh1, nh2 = pa["w2"].shape
    zero = jnp.zeros((nh1, nh2), jnp.float32)
    w2 = jnp.block([[pa["w2"], zero], [zero, pb["w2"]]])   # (2*nhid1, 2*nhid2)
    b2 = jnp.concatenate([pa["b2"], pb["b2"]], axis=1)     # (1, 2*nhid2)
    return w1, b1, w2, b2


@jax.jit
def am_gcn_forward(params, x, adj_topo, adj_feat):
    pt, pf, pc = params["gcn_t"], params["gcn_f"], params["gcn_c"]

    # Branch pairs sharing an adjacency are merged into lane-dense matmuls.
    w1T, b1T, w2T, b2T = _merged_branch_params(pt, pc)   # topo: [t | c]
    w1F, b1F, w2F, b2F = _merged_branch_params(pf, pc)   # feat: [f | c]

    sup_topo = gcn_layer1_support(adj_topo, x, w1T, b1T, w2T)
    sup_feat = gcn_layer1_support(adj_feat, x, w1F, b1F, w2F)
    z2_topo = gcn_layer2(adj_topo, sup_topo, b2T)         # [z_t  | z_ct]
    z2_feat = gcn_layer2(adj_feat, sup_feat, b2F)         # [z_f  | z_cf]

    ap, cp = params["attention"], params["classifier"]
    y, z, a_t, a_f, a_c = attention_classifier(
        z2_topo, z2_feat,
        ap["w_t"], ap["w_f"], ap["w_c"],
        ap["b_t"], ap["b_f"], ap["b_c"],
        ap["q"].T, cp["w"], cp["b"])

    nhid2 = cp["w"].shape[0]
    z_t = z2_topo[:, :nhid2]
    z_ct = z2_topo[:, nhid2:]
    z_f = z2_feat[:, :nhid2]
    z_cf = z2_feat[:, nhid2:]
    attn = jnp.concatenate([a_t, a_f, a_c], axis=1)
    return y, attn, z_t, z_f, z_ct, z_cf, z


# --------------------------------------------------------------------------
# Deterministic parameter init (synthetic, not a checkpoint load)
# --------------------------------------------------------------------------
def init_params(key, nfeat, nhid1, nhid2, nclass):
    keys = jax.random.split(key, 16)

    def gcn_params(k0, k1):
        return {
            "w1": jax.random.normal(k0, (nfeat, nhid1), jnp.float32) * 0.1,
            "b1": jnp.zeros((1, nhid1), jnp.float32),
            "w2": jax.random.normal(k1, (nhid1, nhid2), jnp.float32) * 0.1,
            "b2": jnp.zeros((1, nhid2), jnp.float32),
        }

    return {
        "gcn_t": gcn_params(keys[0], keys[1]),
        "gcn_f": gcn_params(keys[2], keys[3]),
        "gcn_c": gcn_params(keys[4], keys[5]),
        "attention": {
            "w_t": jax.random.normal(keys[6], (nhid2, 16), jnp.float32) * 0.1,
            "w_f": jax.random.normal(keys[7], (nhid2, 16), jnp.float32) * 0.1,
            "w_c": jax.random.normal(keys[8], (nhid2, 16), jnp.float32) * 0.1,
            "b_t": jnp.zeros((1, 16), jnp.float32),
            "b_f": jnp.zeros((1, 16), jnp.float32),
            "b_c": jnp.zeros((1, 16), jnp.float32),
            "q": jax.random.normal(keys[9], (16, 1), jnp.float32) * 0.1,
        },
        "classifier": {
            "w": jax.random.normal(keys[10], (nhid2, nclass), jnp.float32) * 0.1,
            "b": jnp.zeros((1, nclass), jnp.float32),
        },
    }


# --------------------------------------------------------------------------
# Pure-JAX reference (mirrors the PyTorch semantics) for a sanity check
# --------------------------------------------------------------------------
def _ref_forward(params, x, adj_topo, adj_feat):
    def gcn_ref(x, adj, p):
        z = jax.nn.relu(adj @ (x @ p["w1"]) + p["b1"])
        z = jax.nn.relu(adj @ (z @ p["w2"]) + p["b2"])
        return z

    z_t = gcn_ref(x, adj_topo, params["gcn_t"])
    z_f = gcn_ref(x, adj_feat, params["gcn_f"])
    z_ct = gcn_ref(x, adj_topo, params["gcn_c"])
    z_cf = gcn_ref(x, adj_feat, params["gcn_c"])
    z_c = (z_cf + z_ct) * 0.5

    ap = params["attention"]
    e_t = jnp.tanh(z_t @ ap["w_t"] + ap["b_t"]) @ ap["q"]
    e_f = jnp.tanh(z_f @ ap["w_f"] + ap["b_f"]) @ ap["q"]
    e_c = jnp.tanh(z_c @ ap["w_c"] + ap["b_c"]) @ ap["q"]
    e = jnp.concatenate([e_t, e_f, e_c], axis=1)
    a = jax.nn.softmax(e, axis=1)
    z = a[:, 0:1] * z_t + a[:, 1:2] * z_f + a[:, 2:3] * z_c

    cp = params["classifier"]
    y = jax.nn.log_softmax(z @ cp["w"] + cp["b"], axis=1)
    return y, a, z_t, z_f, z_ct, z_cf, z


if __name__ == "__main__":
    key = jax.random.PRNGKey(0)
    k_param, k_x, k_at, k_af = jax.random.split(key, 4)

    # N=256 exercises the (rows, contraction) grid with 128-wide tiles.
    N, NFEAT, NHID1, NHID2, NCLASS = 256, 32, 64, 32, 8

    x = jax.random.normal(k_x, (N, NFEAT), jnp.float32)

    def make_adj(k):
        a = jax.random.uniform(k, (N, N), jnp.float32)
        a = (a + a.T) * 0.5 + jnp.eye(N, dtype=jnp.float32)
        return a / jnp.sum(a, axis=1, keepdims=True)   # row-normalized

    adj_topo = make_adj(k_at)
    adj_feat = make_adj(k_af)

    params = init_params(k_param, NFEAT, NHID1, NHID2, NCLASS)

    outs = am_gcn_forward(params, x, adj_topo, adj_feat)
    outs = jax.block_until_ready(outs)

    refs = _ref_forward(params, x, adj_topo, adj_feat)
    for o, r in zip(outs, refs):
        assert o.shape == r.shape, (o.shape, r.shape)
        assert jnp.allclose(o, r, atol=1e-4, rtol=1e-4), float(jnp.max(jnp.abs(o - r)))

    print("KERNEL_OK")
</pallas_src>

<mosaic_0001>
module attributes {stable_mosaic.version = 11 : i64} {
  func.func @_gcn_l1_kernel(%arg0: i32, %arg1: i32, %arg2: memref<128x128xf32, #tpu.memory_space<vmem>>, %arg3: memref<128x32xf32, #tpu.memory_space<vmem>>, %arg4: memref<32x128xf32, #tpu.memory_space<vmem>>, %arg5: memref<1x128xf32, #tpu.memory_space<vmem>>, %arg6: memref<128x64xf32, #tpu.memory_space<vmem>>, %arg7: memref<128x64xf32, #tpu.memory_space<vmem>>, %arg8: memref<128x32xf32, #tpu.memory_space<vmem>>) attributes {dimension_semantics = [#tpu.dimension_semantics<parallel>, #tpu.dimension_semantics<arbitrary>], iteration_bounds = array<i64: 2, 2>, scalar_prefetch = 0 : i64, scratch_operands = 1 : i64, tpu.core_type = #tpu.core_type<tc>, window_params = [{transform_indices = @transform_0, window_bounds = array<i64: 128, 128>}, {transform_indices = @transform_1, window_bounds = array<i64: 128, 32>}, {pipeline_mode = #tpu.pipeline_mode<synchronous>, transform_indices = @transform_2, window_bounds = array<i64: 32, 128>}, {pipeline_mode = #tpu.pipeline_mode<synchronous>, transform_indices = @transform_3, window_bounds = array<i64: 1, 128>}, {pipeline_mode = #tpu.pipeline_mode<synchronous>, transform_indices = @transform_4, window_bounds = array<i64: 128, 64>}, {transform_indices = @transform_5, window_bounds = array<i64: 128, 64>}]} {
    %c0_i32 = arith.constant 0 : i32
    %0 = arith.cmpi eq, %arg1, %c0_i32 : i32
    %1 = arith.extui %0 : i1 to i32
    %c0_i32_0 = arith.constant 0 : i32
    %2 = arith.cmpi ne, %1, %c0_i32_0 : i32
    scf.if %2 {
      %cst_9 = arith.constant 0.000000e+00 : f32
      %12 = vector.broadcast %cst_9 : f32 to vector<128x32xf32>
      %c0_10 = arith.constant 0 : index
      %c0_11 = arith.constant 0 : index
      %13 = vector.load %arg8[%c0_10, %c0_11] : memref<128x32xf32, #tpu.memory_space<vmem>>, vector<128x32xf32>
      tpu.vector_store %arg8[%c0_10, %c0_11], %12 {strides = array<i32>} : memref<128x32xf32, #tpu.memory_space<vmem>>, vector<128x32xf32>,
    } else {
    }
    %c0 = arith.constant 0 : index
    %c0_1 = arith.constant 0 : index
    %3 = vector.load %arg8[%c0, %c0_1] : memref<128x32xf32, #tpu.memory_space<vmem>>, vector<128x32xf32>
    %c0_2 = arith.constant 0 : index
    %c0_3 = arith.constant 0 : index
    %4 = vector.load %arg2[%c0_2, %c0_3] : memref<128x128xf32, #tpu.memory_space<vmem>>, vector<128x128xf32>
    %c0_4 = arith.constant 0 : index
    %c0_5 = arith.constant 0 : index
    %5 = vector.load %arg3[%c0_4, %c0_5] : memref<128x32xf32, #tpu.memory_space<vmem>>, vector<128x32xf32>
    %cst = arith.constant dense<0.000000e+00> : vector<128x32xf32>
    %6 = tpu.matmul %4, %5, %cst {dimension_numbers = #tpu.dot_dimension_numbers<[1], [0], [0], [1], [0, 0, 1, 1], [], []>} : vector<128x128xf32>, vector<128x32xf32>, vector<128x32xf32> -> vector<128x32xf32>
    %7 = arith.addf %3, %6 : vector<128x32xf32>
    %c0_6 = arith.constant 0 : index
    %c0_7 = arith.constant 0 : index
    %8 = vector.load %arg8[%c0_6, %c0_7] : memref<128x32xf32, #tpu.memory_space<vmem>>, vector<128x32xf32>
    tpu.vector_store %arg8[%c0_6, %c0_7], %7 {strides = array<i32>} : memref<128x32xf32, #tpu.memory_space<vmem>>, vector<128x32xf32>,
    %c1_i32 = arith.constant 1 : i32
    %9 = arith.cmpi eq, %arg1, %c1_i32 : i32
    %10 = arith.extui %9 : i1 to i32
    %c0_i32_8 = arith.constant 0 : i32
    %11 = arith.cmpi ne, %10, %c0_i32_8 : i32
    scf.if %11 {
      %c0_9 = arith.constant 0 : index
      %c0_10 = arith.constant 0 : index
      %12 = vector.load %arg8[%c0_9, %c0_10] : memref<128x32xf32, #tpu.memory_space<vmem>>, vector<128x32xf32>
      %c0_11 = arith.constant 0 : index
      %c0_12 = arith.constant 0 : index
      %13 = vector.load %arg4[%c0_11, %c0_12] : memref<32x128xf32, #tpu.memory_space<vmem>>, vector<32x128xf32>
      %cst_13 = arith.constant dense<0.000000e+00> : vector<128x128xf32>
      %14 = tpu.matmul %12, %13, %cst_13 {dimension_numbers = #tpu.dot_dimension_numbers<[1], [0], [0], [1], [0, 0, 1, 1], [], []>} : vector<128x32xf32>, vector<32x128xf32>, vector<128x128xf32> -> vector<128x128xf32>
      %c0_14 = arith.constant 0 : index
      %c0_15 = arith.constant 0 : index
      %15 = vector.load %arg5[%c0_14, %c0_15] : memref<1x128xf32, #tpu.memory_space<vmem>>, vector<1x128xf32>
      %16 = vector.broadcast %15 : vector<1x128xf32> to vector<128x128xf32>
      %17 = arith.addf %14, %16 : vector<128x128xf32>
      %cst_16 = arith.constant 0.000000e+00 : f32
      %18 = vector.broadcast %cst_16 : f32 to vector<128x128xf32>
      %19 = arith.maximumf %17, %18 : vector<128x128xf32>
      %c0_17 = arith.constant 0 : index
      %c0_18 = arith.constant 0 : index
      %20 = vector.load %arg6[%c0_17, %c0_18] : memref<128x64xf32, #tpu.memory_space<vmem>>, vector<128x64xf32>
      %cst_19 = arith.constant dense<0.000000e+00> : vector<128x64xf32>
      %21 = tpu.matmul %19, %20, %cst_19 {dimension_numbers = #tpu.dot_dimension_numbers<[1], [0], [0], [1], [0, 0, 1, 1], [], []>} : vector<128x128xf32>, vector<128x64xf32>, vector<128x64xf32> -> vector<128x64xf32>
      %c0_20 = arith.constant 0 : index
      %c0_21 = arith.constant 0 : index
      %22 = vector.load %arg7[%c0_20, %c0_21] : memref<128x64xf32, #tpu.memory_space<vmem>>, vector<128x64xf32>
      tpu.vector_store %arg7[%c0_20, %c0_21], %21 {strides = array<i32>} : memref<128x64xf32, #tpu.memory_space<vmem>>, vector<128x64xf32>,
    } else {
    }
    return
  }
  func.func @transform_0(%arg0: i32, %arg1: i32) -> (i32, i32) {
    %c0_i32 = arith.constant 0 : i32
    return %arg0, %arg1 : i32, i32
  }
  func.func @transform_1(%arg0: i32, %arg1: i32) -> (i32, i32) {
    %c0_i32 = arith.constant 0 : i32
    %c0_i32_0 = arith.constant 0 : i32
    return %arg1, %c0_i32 : i32, i32
  }
  func.func @transform_2(%arg0: i32, %arg1: i32) -> (i32, i32) {
    %c0_i32 = arith.constant 0 : i32
    %c0_i32_0 = arith.constant 0 : i32
    %c0_i32_1 = arith.constant 0 : i32
    return %c0_i32, %c0_i32_0 : i32, i32
  }
  func.func @transform_3(%arg0: i32, %arg1: i32) -> (i32, i32) {
    %c0_i32 = arith.constant 0 : i32
    %c0_i32_0 = arith.constant 0 : i32
    %c0_i32_1 = arith.constant 0 : i32
    return %c0_i32, %c0_i32_0 : i32, i32
  }
  func.func @transform_4(%arg0: i32, %arg1: i32) -> (i32, i32) {
    %c0_i32 = arith.constant 0 : i32
    %c0_i32_0 = arith.constant 0 : i32
    %c0_i32_1 = arith.constant 0 : i32
    return %c0_i32, %c0_i32_0 : i32, i32
  }
  func.func @transform_5(%arg0: i32, %arg1: i32) -> (i32, i32) {
    %c0_i32 = arith.constant 0 : i32
    %c0_i32_0 = arith.constant 0 : i32
    return %arg0, %c0_i32 : i32, i32
  }
}

module attributes {stable_mosaic.version = 11 : i64} {
  func.func @_gcn_l2_kernel(%arg0: i32, %arg1: i32, %arg2: memref<128x128xf32, #tpu.memory_space<vmem>>, %arg3: memref<128x64xf32, #tpu.memory_space<vmem>>, %arg4: memref<1x64xf32, #tpu.memory_space<vmem>>, %arg5: memref<128x64xf32, #tpu.memory_space<vmem>>, %arg6: memref<128x64xf32, #tpu.memory_space<vmem>>) attributes {dimension_semantics = [#tpu.dimension_semantics<parallel>, #tpu.dimension_semantics<arbitrary>], iteration_bounds = array<i64: 2, 2>, scalar_prefetch = 0 : i64, scratch_operands = 1 : i64, tpu.core_type = #tpu.core_type<tc>, window_params = [{transform_indices = @transform_0, window_bounds = array<i64: 128, 128>}, {transform_indices = @transform_1, window_bounds = array<i64: 128, 64>}, {pipeline_mode = #tpu.pipeline_mode<synchronous>, transform_indices = @transform_2, window_bounds = array<i64: 1, 64>}, {transform_indices = @transform_3, window_bounds = array<i64: 128, 64>}]} {
    %c0_i32 = arith.constant 0 : i32
    %0 = arith.cmpi eq, %arg1, %c0_i32 : i32
    %1 = arith.extui %0 : i1 to i32
    %c0_i32_0 = arith.constant 0 : i32
    %2 = arith.cmpi ne, %1, %c0_i32_0 : i32
    scf.if %2 {
      %cst_9 = arith.constant 0.000000e+00 : f32
      %12 = vector.broadcast %cst_9 : f32 to vector<128x64xf32>
      %c0_10 = arith.constant 0 : index
      %c0_11 = arith.constant 0 : index
      %13 = vector.load %arg6[%c0_10, %c0_11] : memref<128x64xf32, #tpu.memory_space<vmem>>, vector<128x64xf32>
      tpu.vector_store %arg6[%c0_10, %c0_11], %12 {strides = array<i32>} : memref<128x64xf32, #tpu.memory_space<vmem>>, vector<128x64xf32>,
    } else {
    }
    %c0 = arith.constant 0 : index
    %c0_1 = arith.constant 0 : index
    %3 = vector.load %arg6[%c0, %c0_1] : memref<128x64xf32, #tpu.memory_space<vmem>>, vector<128x64xf32>
    %c0_2 = arith.constant 0 : index
    %c0_3 = arith.constant 0 : index
    %4 = vector.load %arg2[%c0_2, %c0_3] : memref<128x128xf32, #tpu.memory_space<vmem>>, vector<128x128xf32>
    %c0_4 = arith.constant 0 : index
    %c0_5 = arith.constant 0 : index
    %5 = vector.load %arg3[%c0_4, %c0_5] : memref<128x64xf32, #tpu.memory_space<vmem>>, vector<128x64xf32>
    %cst = arith.constant dense<0.000000e+00> : vector<128x64xf32>
    %6 = tpu.matmul %4, %5, %cst {dimension_numbers = #tpu.dot_dimension_numbers<[1], [0], [0], [1], [0, 0, 1, 1], [], []>} : vector<128x128xf32>, vector<128x64xf32>, vector<128x64xf32> -> vector<128x64xf32>
    %7 = arith.addf %3, %6 : vector<128x64xf32>
    %c0_6 = arith.constant 0 : index
    %c0_7 = arith.constant 0 : index
    %8 = vector.load %arg6[%c0_6, %c0_7] : memref<128x64xf32, #tpu.memory_space<vmem>>, vector<128x64xf32>
    tpu.vector_store %arg6[%c0_6, %c0_7], %7 {strides = array<i32>} : memref<128x64xf32, #tpu.memory_space<vmem>>, vector<128x64xf32>,
    %c1_i32 = arith.constant 1 : i32
    %9 = arith.cmpi eq, %arg1, %c1_i32 : i32
    %10 = arith.extui %9 : i1 to i32
    %c0_i32_8 = arith.constant 0 : i32
    %11 = arith.cmpi ne, %10, %c0_i32_8 : i32
    scf.if %11 {
      %c0_9 = arith.constant 0 : index
      %c0_10 = arith.constant 0 : index
      %12 = vector.load %arg6[%c0_9, %c0_10] : memref<128x64xf32, #tpu.memory_space<vmem>>, vector<128x64xf32>
      %c0_11 = arith.constant 0 : index
      %c0_12 = arith.constant 0 : index
      %13 = vector.load %arg4[%c0_11, %c0_12] : memref<1x64xf32, #tpu.memory_space<vmem>>, vector<1x64xf32>
      %14 = vector.broadcast %13 : vector<1x64xf32> to vector<128x64xf32>
      %15 = arith.addf %12, %14 : vector<128x64xf32>
      %cst_13 = arith.constant 0.000000e+00 : f32
      %16 = vector.broadcast %cst_13 : f32 to vector<128x64xf32>
      %17 = arith.maximumf %15, %16 : vector<128x64xf32>
      %c0_14 = arith.constant 0 : index
      %c0_15 = arith.constant 0 : index
      %18 = vector.load %arg5[%c0_14, %c0_15] : memref<128x64xf32, #tpu.memory_space<vmem>>, vector<128x64xf32>
      tpu.vector_store %arg5[%c0_14, %c0_15], %17 {strides = array<i32>} : memref<128x64xf32, #tpu.memory_space<vmem>>, vector<128x64xf32>,
    } else {
    }
    return
  }
  func.func @transform_0(%arg0: i32, %arg1: i32) -> (i32, i32) {
    %c0_i32 = arith.constant 0 : i32
    return %arg0, %arg1 : i32, i32
  }
  func.func @transform_1(%arg0: i32, %arg1: i32) -> (i32, i32) {
    %c0_i32 = arith.constant 0 : i32
    %c0_i32_0 = arith.constant 0 : i32
    return %arg1, %c0_i32 : i32, i32
  }
  func.func @transform_2(%arg0: i32, %arg1: i32) -> (i32, i32) {
    %c0_i32 = arith.constant 0 : i32
    %c0_i32_0 = arith.constant 0 : i32
    %c0_i32_1 = arith.constant 0 : i32
    return %c0_i32, %c0_i32_0 : i32, i32
  }
  func.func @transform_3(%arg0: i32, %arg1: i32) -> (i32, i32) {
    %c0_i32 = arith.constant 0 : i32
    %c0_i32_0 = arith.constant 0 : i32
    return %arg0, %c0_i32 : i32, i32
  }
}

module attributes {stable_mosaic.version = 11 : i64} {
  func.func @_attn_clf_kernel(%arg0: i32, %arg1: memref<128x64xf32, #tpu.memory_space<vmem>>, %arg2: memref<128x64xf32, #tpu.memory_space<vmem>>, %arg3: memref<32x16xf32, #tpu.memory_space<vmem>>, %arg4: memref<32x16xf32, #tpu.memory_space<vmem>>, %arg5: memref<32x16xf32, #tpu.memory_space<vmem>>, %arg6: memref<1x16xf32, #tpu.memory_space<vmem>>, %arg7: memref<1x16xf32, #tpu.memory_space<vmem>>, %arg8: memref<1x16xf32, #tpu.memory_space<vmem>>, %arg9: memref<1x16xf32, #tpu.memory_space<vmem>>, %arg10: memref<32x8xf32, #tpu.memory_space<vmem>>, %arg11: memref<1x8xf32, #tpu.memory_space<vmem>>, %arg12: memref<128x8xf32, #tpu.memory_space<vmem>>, %arg13: memref<128x32xf32, #tpu.memory_space<vmem>>, %arg14: memref<128x1xf32, #tpu.memory_space<vmem>>, %arg15: memref<128x1xf32, #tpu.memory_space<vmem>>, %arg16: memref<128x1xf32, #tpu.memory_space<vmem>>) attributes {dimension_semantics = [#tpu.dimension_semantics<parallel>], iteration_bounds = array<i64: 2>, scalar_prefetch = 0 : i64, scratch_operands = 0 : i64, tpu.core_type = #tpu.core_type<tc>, window_params = [{transform_indices = @transform_0, window_bounds = array<i64: 128, 64>}, {transform_indices = @transform_1, window_bounds = array<i64: 128, 64>}, {pipeline_mode = #tpu.pipeline_mode<synchronous>, transform_indices = @transform_2, window_bounds = array<i64: 32, 16>}, {pipeline_mode = #tpu.pipeline_mode<synchronous>, transform_indices = @transform_3, window_bounds = array<i64: 32, 16>}, {pipeline_mode = #tpu.pipeline_mode<synchronous>, transform_indices = @transform_4, window_bounds = array<i64: 32, 16>}, {pipeline_mode = #tpu.pipeline_mode<synchronous>, transform_indices = @transform_5, window_bounds = array<i64: 1, 16>}, {pipeline_mode = #tpu.pipeline_mode<synchronous>, transform_indices = @transform_6, window_bounds = array<i64: 1, 16>}, {pipeline_mode = #tpu.pipeline_mode<synchronous>, transform_indices = @transform_7, window_bounds = array<i64: 1, 16>}, {pipeline_mode = #tpu.pipeline_mode<synchronous>, transform_indices = @transform_8, window_bounds = array<i64: 1, 16>}, {pipeline_mode = #tpu.pipeline_mode<synchronous>, transform_indices = @transform_9, window_bounds = array<i64: 32, 8>}, {pipeline_mode = #tpu.pipeline_mode<synchronous>, transform_indices = @transform_10, window_bounds = array<i64: 1, 8>}, {transform_indices = @transform_11, window_bounds = array<i64: 128, 8>}, {transform_indices = @transform_12, window_bounds = array<i64: 128, 32>}, {transform_indices = @transform_13, window_bounds = array<i64: 128, 1>}, {transform_indices = @transform_14, window_bounds = array<i64: 128, 1>}, {transform_indices = @transform_15, window_bounds = array<i64: 128, 1>}]} {
    %c0 = arith.constant 0 : index
    %c0_0 = arith.constant 0 : index
    %0 = vector.load %arg1[%c0, %c0_0] : memref<128x64xf32, #tpu.memory_space<vmem>>, vector<128x64xf32>
    %c0_1 = arith.constant 0 : index
    %c0_2 = arith.constant 0 : index
    %1 = vector.load %arg2[%c0_1, %c0_2] : memref<128x64xf32, #tpu.memory_space<vmem>>, vector<128x64xf32>
    %2 = vector.extract_strided_slice %0 {offsets = [0, 0], sizes = [128, 32], strides = [1, 1]} : vector<128x64xf32> to vector<128x32xf32>
    %3 = vector.extract_strided_slice %0 {offsets = [0, 32], sizes = [128, 32], strides = [1, 1]} : vector<128x64xf32> to vector<128x32xf32>
    %4 = vector.extract_strided_slice %1 {offsets = [0, 0], sizes = [128, 32], strides = [1, 1]} : vector<128x64xf32> to vector<128x32xf32>
    %5 = vector.extract_strided_slice %1 {offsets = [0, 32], sizes = [128, 32], strides = [1, 1]} : vector<128x64xf32> to vector<128x32xf32>
    %6 = arith.addf %3, %5 : vector<128x32xf32>
    %cst = arith.constant 5.000000e-01 : f32
    %7 = vector.broadcast %cst : f32 to vector<128x32xf32>
    %8 = arith.mulf %6, %7 : vector<128x32xf32>
    %c0_3 = arith.constant 0 : index
    %c0_4 = arith.constant 0 : index
    %9 = vector.load %arg9[%c0_3, %c0_4] : memref<1x16xf32, #tpu.memory_space<vmem>>, vector<1x16xf32>
    %c0_5 = arith.constant 0 : index
    %c0_6 = arith.constant 0 : index
    %10 = vector.load %arg3[%c0_5, %c0_6] : memref<32x16xf32, #tpu.memory_space<vmem>>, vector<32x16xf32>
    %cst_7 = arith.constant dense<0.000000e+00> : vector<128x16xf32>
    %11 = tpu.matmul %2, %10, %cst_7 {dimension_numbers = #tpu.dot_dimension_numbers<[1], [0], [0], [1], [0, 0, 1, 1], [], []>} : vector<128x32xf32>, vector<32x16xf32>, vector<128x16xf32> -> vector<128x16xf32>
    %c0_8 = arith.constant 0 : index
    %c0_9 = arith.constant 0 : index
    %12 = vector.load %arg6[%c0_8, %c0_9] : memref<1x16xf32, #tpu.memory_space<vmem>>, vector<1x16xf32>
    %13 = vector.broadcast %12 : vector<1x16xf32> to vector<128x16xf32>
    %14 = arith.addf %11, %13 : vector<128x16xf32>
    %15 = math.tanh %14 : vector<128x16xf32>
    %16 = vector.broadcast %9 : vector<1x16xf32> to vector<128x16xf32>
    %17 = arith.mulf %15, %16 : vector<128x16xf32>
    %cst_10 = arith.constant dense<0.000000e+00> : vector<128xf32>
    %18 = vector.multi_reduction <add>, %17, %cst_10 [1] : vector<128x16xf32> to vector<128xf32>
    %19 = vector.shape_cast %18 : vector<128xf32> to vector<128x1xf32>
    %c0_11 = arith.constant 0 : index
    %c0_12 = arith.constant 0 : index
    %20 = vector.load %arg4[%c0_11, %c0_12] : memref<32x16xf32, #tpu.memory_space<vmem>>, vector<32x16xf32>
    %cst_13 = arith.constant dense<0.000000e+00> : vector<128x16xf32>
    %21 = tpu.matmul %4, %20, %cst_13 {dimension_numbers = #tpu.dot_dimension_numbers<[1], [0], [0], [1], [0, 0, 1, 1], [], []>} : vector<128x32xf32>, vector<32x16xf32>, vector<128x16xf32> -> vector<128x16xf32>
    %c0_14 = arith.constant 0 : index
    %c0_15 = arith.constant 0 : index
    %22 = vector.load %arg7[%c0_14, %c0_15] : memref<1x16xf32, #tpu.memory_space<vmem>>, vector<1x16xf32>
    %23 = vector.broadcast %22 : vector<1x16xf32> to vector<128x16xf32>
    %24 = arith.addf %21, %23 : vector<128x16xf32>
    %25 = math.tanh %24 : vector<128x16xf32>
    %26 = vector.broadcast %9 : vector<1x16xf32> to vector<128x16xf32>
    %27 = arith.mulf %25, %26 : vector<128x16xf32>
    %cst_16 = arith.constant dense<0.000000e+00> : vector<128xf32>
    %28 = vector.multi_reduction <add>, %27, %cst_16 [1] : vector<128x16xf32> to vector<128xf32>
    %29 = vector.shape_cast %28 : vector<128xf32> to vector<128x1xf32>
    %c0_17 = arith.constant 0 : index
    %c0_18 = arith.constant 0 : index
    %30 = vector.load %arg5[%c0_17, %c0_18] : memref<32x16xf32, #tpu.memory_space<vmem>>, vector<32x16xf32>
    %cst_19 = arith.constant dense<0.000000e+00> : vector<128x16xf32>
    %31 = tpu.matmul %8, %30, %cst_19 {dimension_numbers = #tpu.dot_dimension_numbers<[1], [0], [0], [1], [0, 0, 1, 1], [], []>} : vector<128x32xf32>, vector<32x16xf32>, vector<128x16xf32> -> vector<128x16xf32>
    %c0_20 = arith.constant 0 : index
    %c0_21 = arith.constant 0 : index
    %32 = vector.load %arg8[%c0_20, %c0_21] : memref<1x16xf32, #tpu.memory_space<vmem>>, vector<1x16xf32>
    %33 = vector.broadcast %32 : vector<1x16xf32> to vector<128x16xf32>
    %34 = arith.addf %31, %33 : vector<128x16xf32>
    %35 = math.tanh %34 : vector<128x16xf32>
    %36 = vector.broadcast %9 : vector<1x16xf32> to vector<128x16xf32>
    %37 = arith.mulf %35, %36 : vector<128x16xf32>
    %cst_22 = arith.constant dense<0.000000e+00> : vector<128xf32>
    %38 = vector.multi_reduction <add>, %37, %cst_22 [1] : vector<128x16xf32> to vector<128xf32>
    %39 = vector.shape_cast %38 : vector<128xf32> to vector<128x1xf32>
    %40 = arith.maximumf %19, %29 : vector<128x1xf32>
    %41 = arith.maximumf %40, %39 : vector<128x1xf32>
    %42 = arith.subf %19, %41 : vector<128x1xf32>
    %43 = math.exp %42 : vector<128x1xf32>
    %44 = arith.subf %29, %41 : vector<128x1xf32>
    %45 = math.exp %44 : vector<128x1xf32>
    %46 = arith.subf %39, %41 : vector<128x1xf32>
    %47 = math.exp %46 : vector<128x1xf32>
    %48 = arith.addf %43, %45 : vector<128x1xf32>
    %49 = arith.addf %48, %47 : vector<128x1xf32>
    %cst_23 = arith.constant 1.000000e+00 : f32
    %50 = vector.broadcast %cst_23 : f32 to vector<128x1xf32>
    %51 = arith.divf %50, %49 : vector<128x1xf32>
    %52 = arith.mulf %43, %51 : vector<128x1xf32>
    %53 = arith.mulf %45, %51 : vector<128x1xf32>
    %54 = arith.mulf %47, %51 : vector<128x1xf32>
    %55 = vector.broadcast %52 : vector<128x1xf32> to vector<128x32xf32>
    %56 = arith.mulf %55, %2 : vector<128x32xf32>
    %57 = vector.broadcast %53 : vector<128x1xf32> to vector<128x32xf32>
    %58 = arith.mulf %57, %4 : vector<128x32xf32>
    %59 = arith.addf %56, %58 : vector<128x32xf32>
    %60 = vector.broadcast %54 : vector<128x1xf32> to vector<128x32xf32>
    %61 = arith.mulf %60, %8 : vector<128x32xf32>
    %62 = arith.addf %59, %61 : vector<128x32xf32>
    %c0_24 = arith.constant 0 : index
    %c0_25 = arith.constant 0 : index
    %63 = vector.load %arg13[%c0_24, %c0_25] : memref<128x32xf32, #tpu.memory_space<vmem>>, vector<128x32xf32>
    tpu.vector_store %arg13[%c0_24, %c0_25], %62 {strides = array<i32>} : memref<128x32xf32, #tpu.memory_space<vmem>>, vector<128x32xf32>,
    %c0_26 = arith.constant 0 : index
    %c0_27 = arith.constant 0 : index
    %64 = vector.load %arg14[%c0_26, %c0_27] : memref<128x1xf32, #tpu.memory_space<vmem>>, vector<128x1xf32>
    tpu.vector_store %arg14[%c0_26, %c0_27], %52 {strides = array<i32>} : memref<128x1xf32, #tpu.memory_space<vmem>>, vector<128x1xf32>,
    %c0_28 = arith.constant 0 : index
    %c0_29 = arith.constant 0 : index
    %65 = vector.load %arg15[%c0_28, %c0_29] : memref<128x1xf32, #tpu.memory_space<vmem>>, vector<128x1xf32>
    tpu.vector_store %arg15[%c0_28, %c0_29], %53 {strides = array<i32>} : memref<128x1xf32, #tpu.memory_space<vmem>>, vector<128x1xf32>,
    %c0_30 = arith.constant 0 : index
    %c0_31 = arith.constant 0 : index
    %66 = vector.load %arg16[%c0_30, %c0_31] : memref<128x1xf32, #tpu.memory_space<vmem>>, vector<128x1xf32>
    tpu.vector_store %arg16[%c0_30, %c0_31], %54 {strides = array<i32>} : memref<128x1xf32, #tpu.memory_space<vmem>>, vector<128x1xf32>,
    %c0_32 = arith.constant 0 : index
    %c0_33 = arith.constant 0 : index
    %67 = vector.load %arg10[%c0_32, %c0_33] : memref<32x8xf32, #tpu.memory_space<vmem>>, vector<32x8xf32>
    %cst_34 = arith.constant dense<0.000000e+00> : vector<128x8xf32>
    %68 = tpu.matmul %62, %67, %cst_34 {dimension_numbers = #tpu.dot_dimension_numbers<[1], [0], [0], [1], [0, 0, 1, 1], [], []>} : vector<128x32xf32>, vector<32x8xf32>, vector<128x8xf32> -> vector<128x8xf32>
    %c0_35 = arith.constant 0 : index
    %c0_36 = arith.constant 0 : index
    %69 = vector.load %arg11[%c0_35, %c0_36] : memref<1x8xf32, #tpu.memory_space<vmem>>, vector<1x8xf32>
    %70 = vector.broadcast %69 : vector<1x8xf32> to vector<128x8xf32>
    %71 = arith.addf %68, %70 : vector<128x8xf32>
    %cst_37 = arith.constant dense<0xFF800000> : vector<128xf32>
    %72 = vector.multi_reduction <maximumf>, %71, %cst_37 [1] : vector<128x8xf32> to vector<128xf32>
    %73 = vector.shape_cast %72 : vector<128xf32> to vector<128x1xf32>
    %74 = vector.broadcast %73 : vector<128x1xf32> to vector<128x8xf32>
    %75 = arith.subf %71, %74 : vector<128x8xf32>
    %76 = math.exp %75 : vector<128x8xf32>
    %cst_38 = arith.constant dense<0.000000e+00> : vector<128xf32>
    %77 = vector.multi_reduction <add>, %76, %cst_38 [1] : vector<128x8xf32> to vector<128xf32>
    %78 = vector.shape_cast %77 : vector<128xf32> to vector<128x1xf32>
    %79 = math.log %78 : vector<128x1xf32>
    %80 = vector.broadcast %79 : vector<128x1xf32> to vector<128x8xf32>
    %81 = arith.subf %75, %80 : vector<128x8xf32>
    %c0_39 = arith.constant 0 : index
    %c0_40 = arith.constant 0 : index
    %82 = vector.load %arg12[%c0_39, %c0_40] : memref<128x8xf32, #tpu.memory_space<vmem>>, vector<128x8xf32>
    tpu.vector_store %arg12[%c0_39, %c0_40], %81 {strides = array<i32>} : memref<128x8xf32, #tpu.memory_space<vmem>>, vector<128x8xf32>,
    return
  }
  func.func @transform_0(%arg0: i32) -> (i32, i32) {
    %c0_i32 = arith.constant 0 : i32
    %c0_i32_0 = arith.constant 0 : i32
    return %arg0, %c0_i32 : i32, i32
  }
  func.func @transform_1(%arg0: i32) -> (i32, i32) {
    %c0_i32 = arith.constant 0 : i32
    %c0_i32_0 = arith.constant 0 : i32
    return %arg0, %c0_i32 : i32, i32
  }
  func.func @transform_2(%arg0: i32) -> (i32, i32) {
    %c0_i32 = arith.constant 0 : i32
    %c0_i32_0 = arith.constant 0 : i32
    %c0_i32_1 = arith.constant 0 : i32
    return %c0_i32, %c0_i32_0 : i32, i32
  }
  func.func @transform_3(%arg0: i32) -> (i32, i32) {
    %c0_i32 = arith.constant 0 : i32
    %c0_i32_0 = arith.constant 0 : i32
    %c0_i32_1 = arith.constant 0 : i32
    return %c0_i32, %c0_i32_0 : i32, i32
  }
  func.func @transform_4(%arg0: i32) -> (i32, i32) {
    %c0_i32 = arith.constant 0 : i32
    %c0_i32_0 = arith.constant 0 : i32
    %c0_i32_1 = arith.constant 0 : i32
    return %c0_i32, %c0_i32_0 : i32, i32
  }
  func.func @transform_5(%arg0: i32) -> (i32, i32) {
    %c0_i32 = arith.constant 0 : i32
    %c0_i32_0 = arith.constant 0 : i32
    %c0_i32_1 = arith.constant 0 : i32
    return %c0_i32, %c0_i32_0 : i32, i32
  }
  func.func @transform_6(%arg0: i32) -> (i32, i32) {
    %c0_i32 = arith.constant 0 : i32
    %c0_i32_0 = arith.constant 0 : i32
    %c0_i32_1 = arith.constant 0 : i32
    return %c0_i32, %c0_i32_0 : i32, i32
  }
  func.func @transform_7(%arg0: i32) -> (i32, i32) {
    %c0_i32 = arith.constant 0 : i32
    %c0_i32_0 = arith.constant 0 : i32
    %c0_i32_1 = arith.constant 0 : i32
    return %c0_i32, %c0_i32_0 : i32, i32
  }
  func.func @transform_8(%arg0: i32) -> (i32, i32) {
    %c0_i32 = arith.constant 0 : i32
    %c0_i32_0 = arith.constant 0 : i32
    %c0_i32_1 = arith.constant 0 : i32
    return %c0_i32, %c0_i32_0 : i32, i32
  }
  func.func @transform_9(%arg0: i32) -> (i32, i32) {
    %c0_i32 = arith.constant 0 : i32
    %c0_i32_0 = arith.constant 0 : i32
    %c0_i32_1 = arith.constant 0 : i32
    return %c0_i32, %c0_i32_0 : i32, i32
  }
  func.func @transform_10(%arg0: i32) -> (i32, i32) {
    %c0_i32 = arith.constant 0 : i32
    %c0_i32_0 = arith.constant 0 : i32
    %c0_i32_1 = arith.constant 0 : i32
    return %c0_i32, %c0_i32_0 : i32, i32
  }
  func.func @transform_11(%arg0: i32) -> (i32, i32) {
    %c0_i32 = arith.constant 0 : i32
    %c0_i32_0 = arith.constant 0 : i32
    return %arg0, %c0_i32 : i32, i32
  }
  func.func @transform_12(%arg0: i32) -> (i32, i32) {
    %c0_i32 = arith.constant 0 : i32
    %c0_i32_0 = arith.constant 0 : i32
    return %arg0, %c0_i32 : i32, i32
  }
  func.func @transform_13(%arg0: i32) -> (i32, i32) {
    %c0_i32 = arith.constant 0 : i32
    %c0_i32_0 = arith.constant 0 : i32
    return %arg0, %c0_i32 : i32, i32
  }
  func.func @transform_14(%arg0: i32) -> (i32, i32) {
    %c0_i32 = arith.constant 0 : i32
    %c0_i32_0 = arith.constant 0 : i32
    return %arg0, %c0_i32 : i32, i32
  }
  func.func @transform_15(%arg0: i32) -> (i32, i32) {
    %c0_i32 = arith.constant 0 : i32
    %c0_i32_0 = arith.constant 0 : i32
    return %arg0, %c0_i32 : i32, i32
  }
}

</mosaic_0001>

<bundles_post_ra>
// kernel: am_gcn_forward.7
= control target key start
LH: loop header
LB: loop body
LE: loop exit
PB: predicated region body
PF: predicated region fallthrough
CT: control target
= control target key end

     0   :  { %s1006_s12 = smov 0   ;;  %s1008_s13 = smov 0   ;;  %s1223_s0 = inlined_call_operand.vmem [shape: f32[256,256], index: 0, kind: input, shape index: {}]   ;;  %s1224_s1 = inlined_call_operand.vmem [shape: f32[256,64], index: 1, kind: input, shape index: {}]   ;;  %s1225_s2 = inlined_call_operand.vmem [shape: f32[1,64], index: 2, kind: input, shape index: {}]   ;;  %s1226_s3 = inlined_call_operand.vmem [shape: f32[256,64], index: 3, kind: output, shape index: {}]  }
   0x1   :  { %s1010_s14 = smov 0   ;;  %s1012_s15 = smov 0  }
   0x2   :  { %s1014_s16 = smov 0   ;;  %s1016_s17 = smov 0  }
   0x3   :  { %s1018_s18 = smov 0  }
   0x4 LB: > { %s22_s19 = sadd.s32 1, %s975_s16  ;;  %s25_s20 = sadd.s32 1, %s979_s17  ;;  %s983_s18 = sphi %s1018_s18, %s13_s18   ;;  %s979_s17 = sphi %s1016_s17, %s1232_s17   ;;  %s975_s16 = sphi %s1014_s16, %s1231_s16   ;;  %s971_s15 = sphi %s1012_s15, %s1230_s15   ;;  %s967_s14 = sphi %s1010_s14, %s1229_s14   ;;  %s963_s13 = sphi %s1008_s13, %s1228_s13   ;;  %s959_s12 = sphi %s1006_s12, %s1227_s12  }
   0x5   : > { %p23_p0 = scmp.ge.s32.totalorder %s22_s19, 2  ;;  %p41_p1 = scmp.ne.s32.totalorder %s963_s13, %s959_s12 }
   0x6   : > { %p42_p2 = scmp.eq.s32.totalorder %s983_s18, 0  ;;  %s34_s24 = sadd.s32 1, %s963_s13 }
   0x7   : > { %s1234_s19 = smov (%p23_p0, %s22_s19), 0  ;;  %s1236_s20 = smov (!%p23_p0, %s25_s20), %s979_s17 }
   0x8   : > { %p43_p3 = por %p42_p2, %p41_p1  ;;  %p27_p4 = scmp.ge.s32.totalorder %s1236_s20, 2 }
   0x9   : > { %s30_s21 = ssub.s32 %s975_s16, %s1234_s19  ;;  %p719_p6 = scmp.ge.s32.totalorder %s983_s18, 4 }
   0xa   : > { %s1238_s20 = smov (%p27_p4, %s1236_s20), 0 }
   0xb   : > { %s29_s22 = ssub.s32 %s979_s17, %s1238_s20  ;;  %143 = sbr.rel (%p719_p6) target bundleno = 32 (0x20), region = 20 }
   0xc   : > { %s31_s23 = sor.u32 %s30_s21, %s29_s22 }
   0xd   : > { %p32_p5 = scmp.eq.s32.totalorder %s31_s23, 0 }
   0xf   : > { %s1057_s25 = scalar_select %p32_p5, %s963_s13, %s34_s24  }
  0x12   : > { %146 = sbr.rel (!%p43_p3) target bundleno = 32 (0x20), region = 24  ;;  %s148_s26 = sand.u32 (%p43_p3), 1, %s963_s13  }
  0x13   : > { %s735_s27 = sshll.u32 (%p43_p3), %s979_s17, 5  ;;  %s720_s28 = sshll.u32 (%p43_p3), %s148_s26, 7 }
  0x14   : > { %s153_s29 = sadd.s32 (%p43_p3), %s975_s16, %s735_s27  ;;  %s150_s7 = scalar_lea.vmem (%p43_p3), [#allocation3], %s720_s28 }
  0x15   : > { %s723_s30 = sshll.u32 (%p43_p3), %s153_s29, 3 }
  0x16   : > { %s1066_s6 = scalar_lea.vmem (%p43_p3), %s1223_s0, %s723_s30 }
  0x17   : > { %v213_v0 = vld [vmem:[%s1066_s6] sm:$0xff] (%p43_p3)  ;;  %v215_v1 = vld [vmem:[%s1066_s6 + $0x10] sm:$0xff] (%p43_p3) }
  0x18   : > { %v217_v2 = vld [vmem:[%s1066_s6 + $0x20] sm:$0xff] (%p43_p3)  ;;  %214 = vst [vmem:[%s150_s7] sm:$0xff] (%p43_p3), %v213_v0  ;;  %216 = vst [vmem:[%s150_s7 + $0x8] sm:$0xff] (%p43_p3), %v215_v1  ;;  %v219_v3 = vld [vmem:[%s1066_s6 + $0x30] sm:$0xff] (%p43_p3) }
  0x19   : > { %218 = vst [vmem:[%s150_s7 + $0x10] sm:$0xff] %v217_v2  ;;  %v221_v4 = vld [vmem:[%s1066_s6 + $0x40] sm:$0xff]  ;;  %v223_v5 = vld [vmem:[%s1066_s6 + $0x50] sm:$0xff]  ;;  %220 = vst [vmem:[%s150_s7 + $0x18] sm:$0xff] %v219_v3 }
  0x1a   : > { %222 = vst [vmem:[%s150_s7 + $0x20] sm:$0xff] %v221_v4  ;;  %224 = vst [vmem:[%s150_s7 + $0x28] sm:$0xff] %v223_v5  ;;  %v225_v6 = vld [vmem:[%s1066_s6 + $0x60] sm:$0xff]  ;;  %v227_v7 = vld [vmem:[%s1066_s6 + $0x70] sm:$0xff] }
  0x1b   : > { %v229_v8 = vld [vmem:[%s1066_s6 + $0x80] sm:$0xff]  ;;  %226 = vst [vmem:[%s150_s7 + $0x30] sm:$0xff] %v225_v6  ;;  %228 = vst [vmem:[%s150_s7 + $0x38] sm:$0xff] %v227_v7  ;;  %v231_v9 = vld [vmem:[%s1066_s6 + $0x90] sm:$0xff] }
  0x1c   : > { %230 = vst [vmem:[%s150_s7 + $0x40] sm:$0xff] %v229_v8  ;;  %v233_v10 = vld [vmem:[%s1066_s6 + $0xa0] sm:$0xff]  ;;  %v235_v11 = vld [vmem:[%s1066_s6 + $0xb0] sm:$0xff]  ;;  %232 = vst [vmem:[%s150_s7 + $0x48] sm:$0xff] %v231_v9 }
  0x1d   : > { %234 = vst [vmem:[%s150_s7 + $0x50] sm:$0xff] %v233_v10  ;;  %236 = vst [vmem:[%s150_s7 + $0x58] sm:$0xff] %v235_v11  ;;  %v237_v12 = vld [vmem:[%s1066_s6 + $0xc0] sm:$0xff]  ;;  %v239_v13 = vld [vmem:[%s1066_s6 + $0xd0] sm:$0xff] }
  0x1e   : > { %v241_v14 = vld [vmem:[%s1066_s6 + $0xe0] sm:$0xff]  ;;  %238 = vst [vmem:[%s150_s7 + $0x60] sm:$0xff] %v237_v12  ;;  %240 = vst [vmem:[%s150_s7 + $0x68] sm:$0xff] %v239_v13  ;;  %v243_v15 = vld [vmem:[%s1066_s6 + $0xf0] sm:$0xff] }
  0x1f   : > { %242 = vst [vmem:[%s150_s7 + $0x70] sm:$0xff] %v241_v14  ;;  %244 = vst [vmem:[%s150_s7 + $0x78] sm:$0xff] %v243_v15 }
  0x20 PF: > { %p724_p7 = scmp.ge.s32.totalorder %s983_s18, 1  ;;  %p258_p8 = scmp.lt.s32.totalorder %s983_s18, 5 }
  0x22   : > { %p259_p9 = pnand %p724_p7, %p258_p8 }
  0x23   : > { %s265_s8 = sand.u32 (!%p259_p9), 1, %s959_s12   ;;  %s726_s9 = sshll.u32 (!%p259_p9), %s967_s14, 4 }
  0x24   : > { %262 = sbr.rel (%p259_p9) target bundleno = 329 (0x149), region = 66  ;;  %s725_s10 = sshll.u32 (!%p259_p9), %s265_s8, 7 }
  0x25   : > { %p295_p10 = scmp.lt.s32.totalorder (!%p259_p9), %s726_s9, 31  ;;  %s728_s11 = sshll.u32 (!%p259_p9), %s971_s15, 4 }
  0x26   : > { %p301_p11 = scmp.lt.s32.totalorder (!%p259_p9), %s728_s11, 31  ;;  %s1099_s12 = scalar_lea.vmem (!%p259_p9), [#allocation3], %s725_s10 }
  0x27   : > { %p730_p12 = scmp.ne.s32.totalorder (!%p259_p9), %s967_s14, 0 }
  0x2b   : > { %s1240_s9 = smov (!%p295_p10, %s726_s9), 31  ;;  %s1242_s11 = smov (!%p301_p11, %s728_s11), 31 }
  0x2c   : > { %s727_s21 = sshll.u32 %s1240_s9, 3  ;;  %s729_s26 = sshll.u32 %s1242_s11, 3  ;;  %vm310_vm0 = vcmask (!%p730_p12), 523264   ;;  %v985_v16 = vmov (!%p730_p12), 0.0  }
  0x2d   : > { %s1092_s24 = scalar_lea.vmem %s1224_s1, %s727_s21  ;;  %s1097_s29 = scalar_lea.vmem %s1226_s3, %s729_s26  ;;  %311 = vst.msk [vmem:[#allocation2] sm:$0xff] (!%p730_p12), %vm310_vm0, %v985_v16  ;;  %312 = vst.msk [vmem:[#allocation2 + $0x8] sm:$0xff] (!%p730_p12), %vm310_vm0, %v985_v16 }
  0x2e   : > { %309 = sbr.rel (%p730_p12) target bundleno = 53 (0x35), region = 74  ;;  %313 = vst.msk [vmem:[#allocation2 + $0x10] sm:$0xff] (!%p730_p12), %vm310_vm0, %v985_v16  ;;  %314 = vst.msk [vmem:[#allocation2 + $0x18] sm:$0xff] (!%p730_p12), %vm310_vm0, %v985_v16 }
  0x2f   : > { %315 = vst.msk [vmem:[#allocation2 + $0x20] sm:$0xff] (!%p730_p12), %vm310_vm0, %v985_v16  ;;  %316 = vst.msk [vmem:[#allocation2 + $0x28] sm:$0xff] (!%p730_p12), %vm310_vm0, %v985_v16 }
  0x30   : > { %317 = vst.msk [vmem:[#allocation2 + $0x30] sm:$0xff] (!%p730_p12), %vm310_vm0, %v985_v16  ;;  %318 = vst.msk [vmem:[#allocation2 + $0x38] sm:$0xff] (!%p730_p12), %vm310_vm0, %v985_v16 }
  0x31   : > { %319 = vst.msk [vmem:[#allocation2 + $0x40] sm:$0xff] (!%p730_p12), %vm310_vm0, %v985_v16  ;;  %320 = vst.msk [vmem:[#allocation2 + $0x48] sm:$0xff] (!%p730_p12), %vm310_vm0, %v985_v16 }
  0x32   : > { %321 = vst.msk [vmem:[#allocation2 + $0x50] sm:$0xff] (!%p730_p12), %vm310_vm0, %v985_v16  ;;  %322 = vst.msk [vmem:[#allocation2 + $0x58] sm:$0xff] (!%p730_p12), %vm310_vm0, %v985_v16 }
  0x33   : > { %323 = vst.msk [vmem:[#allocation2 + $0x60] sm:$0xff] (!%p730_p12), %vm310_vm0, %v985_v16  ;;  %324 = vst.msk [vmem:[#allocation2 + $0x68] sm:$0xff] (!%p730_p12), %vm310_vm0, %v985_v16 }
  0x34   : > { %325 = vst.msk [vmem:[#allocation2 + $0x70] sm:$0xff] (!%p730_p12), %vm310_vm0, %v985_v16  ;;  %326 = vst.msk [vmem:[#allocation2 + $0x78] sm:$0xff] (!%p730_p12), %vm310_vm0, %v985_v16 }
  0x35 PF: > { %v359_v17 = vld [vmem:[%s1092_s24] sm:$0xff]  ;;  %v360_v18 = vld [vmem:[%s1092_s24 + $0x8] sm:$0xff]  ;;  %v361_v19 = vld [vmem:[%s1092_s24 + $0x10] sm:$0xff]  ;;  %vm536_vm1 = vcmask 523264   ;;  %p731_p13 = scmp.ne.s32.totalorder %s967_s14, 1 }
  0x36   : > { %v824_v20 = vpack.c.bf16 %v360_v18, %v359_v17  ;;  %v362_v21 = vld [vmem:[%s1092_s24 + $0x18] sm:$0xff]  ;;  %v363_v23 = vld [vmem:[%s1092_s24 + $0x20] sm:$0xff]  ;;  %v364_v24 = vld [vmem:[%s1092_s24 + $0x28] sm:$0xff] }
  0x37   : > { %v828_v22 = vpack.c.bf16 %v362_v21, %v361_v19  ;;  %v832_v25 = vpack.c.bf16 %v364_v24, %v363_v23  ;;  %v343_v26 = vld [vmem:[%s1099_s12] sm:$0xff]  ;;  %v365_v28 = vld [vmem:[%s1092_s24 + $0x30] sm:$0xff]  ;;  %v366_v29 = vld [vmem:[%s1092_s24 + $0x38] sm:$0xff] }
  0x38   : > { %825 = vmatprep.subr.bf16.mxu0 %v824_v20  ;;  %856 = vmatprep.subr.bf16.mxu1 %v824_v20  ;;  %v351_v27 = vld [vmem:[%s1099_s12 + $0x40] sm:$0xff]  ;;  %v836_v30 = vpack.c.bf16 %v366_v29, %v365_v28  ;;  %v368_v32 = vld [vmem:[%s1092_s24 + $0x48] sm:$0xff]  ;;  %v369_v34 = vld [vmem:[%s1092_s24 + $0x50] sm:$0xff] }
  0x39   : > { %827 = vmatpush3.bf16.msra.mxu0 %v824_v20  ;;  %864 = vmatpush3.bf16.msra.mxu1 %v824_v20  ;;  %v367_v31 = vld [vmem:[%s1092_s24 + $0x40] sm:$0xff]  ;;  %v370_v35 = vld [vmem:[%s1092_s24 + $0x58] sm:$0xff]  ;;  %v372_v38 = vld [vmem:[%s1092_s24 + $0x68] sm:$0xff] }
  0x3a   : > { %829 = vmatprep.subr.bf16.mxu0 %v828_v22  ;;  %857 = vmatprep.subr.bf16.mxu1 %v828_v22  ;;  %v840_v33 = vpack.c.bf16 %v368_v32, %v367_v31  ;;  %v844_v36 = vpack.c.bf16 %v370_v35, %v369_v34  ;;  %v371_v37 = vld [vmem:[%s1092_s24 + $0x60] sm:$0xff]  ;;  %v373_v40 = vld [vmem:[%s1092_s24 + $0x70] sm:$0xff]  ;;  %v374_v41 = vld [vmem:[%s1092_s24 + $0x78] sm:$0xff] }
  0x3b   : > { %800 = vmatprep.mubr.f32.mxu0 %v343_v26  ;;  %812 = vmatprep.mubr.f32.mxu1 %v351_v27  ;;  %v848_v39 = vpack.c.bf16 %v372_v38, %v371_v37  ;;  %v852_v42 = vpack.c.bf16 %v374_v41, %v373_v40  ;;  %v344_v43 = vld [vmem:[%s1099_s12 + $0x8] sm:$0xff]  ;;  %v345_v45 = vld [vmem:[%s1099_s12 + $0x10] sm:$0xff]  ;;  %v346_v47 = vld [vmem:[%s1099_s12 + $0x18] sm:$0xff] }
  0x3c   : > { %v352_v44 = vld [vmem:[%s1099_s12 + $0x48] sm:$0xff]  ;;  %v353_v46 = vld [vmem:[%s1099_s12 + $0x50] sm:$0xff]  ;;  %v354_v48 = vld [vmem:[%s1099_s12 + $0x58] sm:$0xff] }
  0x3d   : > { %831 = vmatpush3.bf16.msra.mxu0 %v828_v22  ;;  %865 = vmatpush3.bf16.msra.mxu1 %v828_v22  ;;  %v347_v49 = vld [vmem:[%s1099_s12 + $0x20] sm:$0xff]  ;;  %v348_v51 = vld [vmem:[%s1099_s12 + $0x28] sm:$0xff]  ;;  %v349_v53 = vld [vmem:[%s1099_s12 + $0x30] sm:$0xff] }
  0x3e   : > { %833 = vmatprep.subr.bf16.mxu0 %v832_v25  ;;  %858 = vmatprep.subr.bf16.mxu1 %v832_v25  ;;  %v355_v50 = vld [vmem:[%s1099_s12 + $0x60] sm:$0xff]  ;;  %v356_v52 = vld [vmem:[%s1099_s12 + $0x68] sm:$0xff]  ;;  %v357_v54 = vld [vmem:[%s1099_s12 + $0x70] sm:$0xff] }
  0x3f   : > { %v350_v55 = vld [vmem:[%s1099_s12 + $0x38] sm:$0xff]  ;;  %v328_v57 = vld [vmem:[#allocation2 + $0x8] sm:$0xff]  ;;  %v327_v59 = vld [vmem:[#allocation2] sm:$0xff] }
  0x40   : > { %v358_v56 = vld [vmem:[%s1099_s12 + $0x78] sm:$0xff]  ;;  %v336_v58 = vld [vmem:[#allocation2 + $0x48] sm:$0xff]  ;;  %v335_v60 = vld [vmem:[#allocation2 + $0x40] sm:$0xff] }
  0x41   : > { %835 = vmatpush3.bf16.msra.mxu0 %v832_v25  ;;  %866 = vmatpush3.bf16.msra.mxu1 %v832_v25  ;;  %v330_v5 = vld [vmem:[#allocation2 + $0x18] sm:$0xff]  ;;  %v329_v7 = vld [vmem:[#allocation2 + $0x10] sm:$0xff]  ;;  %v332_v17 = vld [vmem:[#allocation2 + $0x28] sm:$0xff] }
  0x42   : > { %837 = vmatprep.subr.bf16.mxu0 %v836_v30  ;;  %859 = vmatprep.subr.bf16.mxu1 %v836_v30  ;;  %v338_v6 = vld [vmem:[#allocation2 + $0x58] sm:$0xff]  ;;  %v337_v8 = vld [vmem:[#allocation2 + $0x50] sm:$0xff]  ;;  %v340_v18 = vld [vmem:[#allocation2 + $0x68] sm:$0xff] }
  0x43   : > { %v331_v19 = vld [vmem:[#allocation2 + $0x20] sm:$0xff]  ;;  %v334_v29 = vld [vmem:[#allocation2 + $0x38] sm:$0xff]  ;;  %v333_v31 = vld [vmem:[#allocation2 + $0x30] sm:$0xff] }
  0x44   : > { %v339_v20 = vld [vmem:[#allocation2 + $0x60] sm:$0xff]  ;;  %v341_v32 = vld [vmem:[#allocation2 + $0x70] sm:$0xff] }
  0x45   : > { %839 = vmatpush3.bf16.msra.mxu0 %v836_v30  ;;  %867 = vmatpush3.bf16.msra.mxu1 %v836_v30  ;;  %v342_v30 = vld [vmem:[#allocation2 + $0x78] sm:$0xff] }
  0x46   : > { %841 = vmatprep.subr.bf16.mxu0 %v840_v33  ;;  %860 = vmatprep.subr.bf16.mxu1 %v840_v33 }
  0x49   : > { %843 = vmatpush3.bf16.msra.mxu0 %v840_v33  ;;  %868 = vmatpush3.bf16.msra.mxu1 %v840_v33 }
  0x4a   : > { %845 = vmatprep.subr.bf16.mxu0 %v844_v36  ;;  %861 = vmatprep.subr.bf16.mxu1 %v844_v36 }
  0x4d   : > { %847 = vmatpush3.bf16.msra.mxu0 %v844_v36  ;;  %869 = vmatpush3.bf16.msra.mxu1 %v844_v36 }
  0x4e   : > { %849 = vmatprep.subr.bf16.mxu0 %v848_v39  ;;  %862 = vmatprep.subr.bf16.mxu1 %v848_v39 }
  0x51   : > { %851 = vmatpush3.bf16.msra.mxu0 %v848_v39  ;;  %870 = vmatpush3.bf16.msra.mxu1 %v848_v39 }
  0x52   : > { %853 = vmatprep.subr.bf16.mxu0 %v852_v42  ;;  %863 = vmatprep.subr.bf16.mxu1 %v852_v42 }
  0x55   : > { %855 = vmatpush3.bf16.msra.mxu0 %v852_v42  ;;  %871 = vmatpush3.bf16.msra.mxu1 %v852_v42  ;;  %v732_v42 = vld [vmem:[%s1225_s2] ss:$0 sm:$0xff] (!%p731_p13) }
  0x58   : > { %801 = vmatmul.mubr.f32.vlgmr.msra.gmra.mrb[0].mxu0 %v344_v43  ;;  %813 = vmatmul.mubr.f32.vlgmr.msra.gmra.mrb[0].mxu1 %v352_v44 }
  0x59   : > { %803 = vmatprep.mubr.f32.mxu0 %v345_v45  ;;  %815 = vmatprep.mubr.f32.mxu1 %v353_v46 }
  0x5c   : > { %804 = vmatmul.mubr.f32.gmra.mrb[2].mxu0 %v346_v47  ;;  %816 = vmatmul.mubr.f32.gmra.mrb[2].mxu1 %v354_v48 }
  0x5d   : > { %806 = vmatprep.mubr.f32.mxu0 %v347_v49  ;;  %818 = vmatprep.mubr.f32.mxu1 %v355_v50 }
  0x60   : > { %807 = vmatmul.mubr.f32.gmra.mrb[4].mxu0 %v348_v51  ;;  %819 = vmatmul.mubr.f32.gmra.mrb[4].mxu1 %v356_v52 }
  0x61   : > { %809 = vmatprep.mubr.f32.mxu0 %v349_v53  ;;  %821 = vmatprep.mubr.f32.mxu1 %v357_v54 }
  0x64   : > { %810 = vmatmul.mubr.f32.gmra.mrb[6].mxu0 %v350_v55  ;;  %822 = vmatmul.mubr.f32.gmra.mrb[6].mxu1 %v358_v56 }
 0x12b   : > { %v802_v61 = vpop.f32.mrb[0].mxu0  ;;  %v814_v62 = vpop.f32.mrb[0].mxu1 }
 0x12c   : > { %v521_v63 = vadd.f32 %v802_v61, %v328_v57  ;;  %v529_v0 = vadd.f32 %v814_v62, %v336_v58  ;;  %v441_v1 = vpop.f32.mrb[1].mxu0  ;;  %v481_v2 = vpop.f32.mrb[1].mxu1 }
 0x12d   : > { %v520_v3 = vadd.f32 %v441_v1, %v327_v59  ;;  %v528_v4 = vadd.f32 %v481_v2, %v335_v60 }
 0x12e   : > { %538 = vst.msk [vmem:[#allocation2 + $0x8] sm:$0xff] %vm536_vm1, %v521_v63  ;;  %546 = vst.msk [vmem:[#allocation2 + $0x48] sm:$0xff] %vm536_vm1, %v529_v0 }
 0x12f   : > { %537 = vst.msk [vmem:[#allocation2] sm:$0xff] %vm536_vm1, %v520_v3  ;;  %545 = vst.msk [vmem:[#allocation2 + $0x40] sm:$0xff] %vm536_vm1, %v528_v4  ;;  %v805_v9 = vpop.f32.mrb[2].mxu0  ;;  %v817_v10 = vpop.f32.mrb[2].mxu1 }
 0x130   : > { %v523_v11 = vadd.f32 %v805_v9, %v330_v5  ;;  %v531_v12 = vadd.f32 %v817_v10, %v338_v6  ;;  %v451_v13 = vpop.f32.mrb[3].mxu0  ;;  %v491_v14 = vpop.f32.mrb[3].mxu1 }
 0x131   : > { %v522_v15 = vadd.f32 %v451_v13, %v329_v7  ;;  %v530_v16 = vadd.f32 %v491_v14, %v337_v8 }
 0x132   : > { %540 = vst.msk [vmem:[#allocation2 + $0x18] sm:$0xff] %vm536_vm1, %v523_v11  ;;  %548 = vst.msk [vmem:[#allocation2 + $0x58] sm:$0xff] %vm536_vm1, %v531_v12 }
 0x133   : > { %539 = vst.msk [vmem:[#allocation2 + $0x10] sm:$0xff] %vm536_vm1, %v522_v15  ;;  %547 = vst.msk [vmem:[#allocation2 + $0x50] sm:$0xff] %vm536_vm1, %v530_v16  ;;  %v808_v21 = vpop.f32.mrb[4].mxu0  ;;  %v820_v22 = vpop.f32.mrb[4].mxu1 }
 0x134   : > { %v525_v23 = vadd.f32 %v808_v21, %v332_v17  ;;  %v533_v24 = vadd.f32 %v820_v22, %v340_v18  ;;  %v461_v25 = vpop.f32.mrb[5].mxu0  ;;  %v501_v26 = vpop.f32.mrb[5].mxu1 }
 0x135   : > { %v524_v27 = vadd.f32 %v461_v25, %v331_v19  ;;  %v532_v28 = vadd.f32 %v501_v26, %v339_v20  ;;  %556 = sbr.rel (%p731_p13) target bundleno = 329 (0x149), region = 78  ;;  %v558_v43 = vld [vmem:[#allocation2 + $0x8] sm:$0xff] (!%p731_p13) }
 0x136   : > { %542 = vst.msk [vmem:[#allocation2 + $0x28] sm:$0xff] %vm536_vm1, %v525_v23  ;;  %550 = vst.msk [vmem:[#allocation2 + $0x68] sm:$0xff] %vm536_vm1, %v533_v24  ;;  %v557_v41 = vld [vmem:[#allocation2] sm:$0xff] (!%p731_p13)  ;;  %v581_v45 = vadd.f32 (!%p731_p13), %v732_v42, %v558_v43  ;;  %v566_v60 = vld [vmem:[#allocation2 + $0x48] sm:$0xff] (!%p731_p13) }
 0x137   : > { %541 = vst.msk [vmem:[#allocation2 + $0x20] sm:$0xff] %vm536_vm1, %v524_v27  ;;  %549 = vst.msk [vmem:[#allocation2 + $0x60] sm:$0xff] %vm536_vm1, %v532_v28  ;;  %v811_v33 = vpop.f32.mrb[6].mxu0  ;;  %v823_v34 = vpop.f32.mrb[6].mxu1  ;;  %v580_v44 = vadd.f32 (!%p731_p13), %v732_v42, %v557_v41  ;;  %v565_v59 = vld [vmem:[#allocation2 + $0x40] sm:$0xff] (!%p731_p13)  ;;  %v589_v8 = vadd.f32 (!%p731_p13), %v732_v42, %v566_v60 }
 0x138   : > { %v527_v35 = vadd.f32 %v811_v33, %v334_v29  ;;  %v535_v36 = vadd.f32 %v823_v34, %v342_v30  ;;  %v471_v37 = vpop.f32.mrb[7].mxu0  ;;  %v511_v38 = vpop.f32.mrb[7].mxu1  ;;  %v597_v56 = vmax.f32 (!%p731_p13), %v581_v45, 0.0  ;;  %v588_v7 = vadd.f32 (!%p731_p13), %v732_v42, %v565_v59 }
 0x139   : > { %v526_v39 = vadd.f32 %v471_v37, %v333_v31  ;;  %v534_v40 = vadd.f32 %v511_v38, %v341_v32  ;;  %v560_v47 = vld [vmem:[#allocation2 + $0x18] sm:$0xff] (!%p731_p13)  ;;  %v596_v55 = vmax.f32 (!%p731_p13), %v580_v44, 0.0  ;;  %v605_v16 = vmax.f32 (!%p731_p13), %v589_v8, 0.0 }
 0x13a   : > { %544 = vst.msk [vmem:[#allocation2 + $0x38] sm:$0xff] %vm536_vm1, %v527_v35  ;;  %552 = vst.msk [vmem:[#allocation2 + $0x78] sm:$0xff] %vm536_vm1, %v535_v36  ;;  %v559_v46 = vld [vmem:[#allocation2 + $0x10] sm:$0xff] (!%p731_p13)  ;;  %v583_v50 = vadd.f32 (!%p731_p13), %v732_v42, %v560_v47  ;;  %v568_v2 = vld [vmem:[#allocation2 + $0x58] sm:$0xff] (!%p731_p13)  ;;  %v604_v15 = vmax.f32 (!%p731_p13), %v588_v7, 0.0 }
 0x13b   : > { %543 = vst.msk [vmem:[#allocation2 + $0x30] sm:$0xff] %vm536_vm1, %v526_v39  ;;  %551 = vst.msk [vmem:[#allocation2 + $0x70] sm:$0xff] %vm536_vm1, %v534_v40  ;;  %v582_v49 = vadd.f32 (!%p731_p13), %v732_v42, %v559_v46  ;;  %v567_v61 = vld [vmem:[#allocation2 + $0x50] sm:$0xff] (!%p731_p13)  ;;  %v591_v13 = vadd.f32 (!%p731_p13), %v732_v42, %v568_v2 }
 0x13c   : > { %v599_v63 = vmax.f32 %v583_v50, 0.0  ;;  %612 = vst.msk [vmem:[%s1097_s29] sm:$0xff] %vm536_vm1, %v596_v55  ;;  %613 = vst.msk [vmem:[%s1097_s29 + $0x8] sm:$0xff] %vm536_vm1, %v597_v56  ;;  %v590_v12 = vadd.f32 %v732_v42, %v567_v61 }
 0x13d   : > { %v562_v52 = vld [vmem:[#allocation2 + $0x28] sm:$0xff]  ;;  %v598_v62 = vmax.f32 %v582_v49, 0.0  ;;  %v607_v20 = vmax.f32 %v591_v13, 0.0  ;;  %620 = vst.msk [vmem:[%s1097_s29 + $0x40] sm:$0xff] %vm536_vm1, %v604_v15  ;;  %621 = vst.msk [vmem:[%s1097_s29 + $0x48] sm:$0xff] %vm536_vm1, %v605_v16 }
 0x13e   : > { %v561_v48 = vld [vmem:[#allocation2 + $0x20] sm:$0xff]  ;;  %v585_v57 = vadd.f32 %v732_v42, %v562_v52  ;;  %v570_v4 = vld [vmem:[#allocation2 + $0x68] sm:$0xff]  ;;  %615 = vst.msk [vmem:[%s1097_s29 + $0x18] sm:$0xff] %vm536_vm1, %v599_v63  ;;  %v606_v19 = vmax.f32 %v590_v12, 0.0 }
 0x13f   : > { %v584_v51 = vadd.f32 %v732_v42, %v561_v48  ;;  %v569_v3 = vld [vmem:[#allocation2 + $0x60] sm:$0xff]  ;;  %614 = vst.msk [vmem:[%s1097_s29 + $0x10] sm:$0xff] %vm536_vm1, %v598_v62  ;;  %v593_v17 = vadd.f32 %v732_v42, %v570_v4  ;;  %623 = vst.msk [vmem:[%s1097_s29 + $0x58] sm:$0xff] %vm536_vm1, %v607_v20 }
 0x140   : > { %v601_v5 = vmax.f32 %v585_v57, 0.0  ;;  %v592_v14 = vadd.f32 %v732_v42, %v569_v3  ;;  %622 = vst.msk [vmem:[%s1097_s29 + $0x50] sm:$0xff] %vm536_vm1, %v606_v19 }
 0x141   : > { %v564_v54 = vld [vmem:[#allocation2 + $0x38] sm:$0xff]  ;;  %v600_v0 = vmax.f32 %v584_v51, 0.0  ;;  %v609_v23 = vmax.f32 %v593_v17, 0.0 }
 0x142   : > { %v563_v53 = vld [vmem:[#allocation2 + $0x30] sm:$0xff]  ;;  %v587_v1 = vadd.f32 %v732_v42, %v564_v54  ;;  %v572_v10 = vld [vmem:[#allocation2 + $0x78] sm:$0xff]  ;;  %617 = vst.msk [vmem:[%s1097_s29 + $0x28] sm:$0xff] %vm536_vm1, %v601_v5  ;;  %v608_v21 = vmax.f32 %v592_v14, 0.0 }
 0x143   : > { %v586_v58 = vadd.f32 %v732_v42, %v563_v53  ;;  %v571_v9 = vld [vmem:[#allocation2 + $0x70] sm:$0xff]  ;;  %616 = vst.msk [vmem:[%s1097_s29 + $0x20] sm:$0xff] %vm536_vm1, %v600_v0  ;;  %v595_v22 = vadd.f32 %v732_v42, %v572_v10  ;;  %625 = vst.msk [vmem:[%s1097_s29 + $0x68] sm:$0xff] %vm536_vm1, %v609_v23 }
 0x144   : > { %v603_v11 = vmax.f32 %v587_v1, 0.0  ;;  %v594_v18 = vadd.f32 %v732_v42, %v571_v9  ;;  %624 = vst.msk [vmem:[%s1097_s29 + $0x60] sm:$0xff] %vm536_vm1, %v608_v21 }
 0x145   : > { %v602_v6 = vmax.f32 %v586_v58, 0.0  ;;  %v611_v25 = vmax.f32 %v595_v22, 0.0 }
 0x146   : > { %619 = vst.msk [vmem:[%s1097_s29 + $0x38] sm:$0xff] %vm536_vm1, %v603_v11  ;;  %v610_v24 = vmax.f32 %v594_v18, 0.0 }
 0x147   : > { %618 = vst.msk [vmem:[%s1097_s29 + $0x30] sm:$0xff] %vm536_vm1, %v602_v6  ;;  %627 = vst.msk [vmem:[%s1097_s29 + $0x78] sm:$0xff] %vm536_vm1, %v611_v25 }
 0x148   : > { %626 = vst.msk [vmem:[%s1097_s29 + $0x70] sm:$0xff] %vm536_vm1, %v610_v24 }
 0x149 PF: > { %s13_s18 = sadd.s32 1, %s983_s18   ;;  %s1227_s12 = smov %s963_s13 }
 0x14a   : > { %p10_p0 = scmp.ge.s32.totalorder %s13_s18, 6   ;;  %s1228_s13 = smov %s1057_s25 }
 0x14b   : > { %s1229_s14 = smov %s975_s16  ;;  %s1230_s15 = smov %s979_s17 }
 0x14c   : > { %s1231_s16 = smov %s1234_s19  ;;  %s1232_s17 = smov %s1238_s20 }
 0x14d   :  { %12 = sbr.rel (!%p10_p0) target bundleno = 4 (0x4), region = 116 }

// kernel: am_gcn_forward.5
= control target key start
LH: loop header
LB: loop body
LE: loop exit
PB: predicated region body
PF: predicated region fallthrough
CT: control target
= control target key end

     0   :  { %s1625_s18 = smov 0   ;;  %s1627_s19 = smov 0   ;;  %s1918_s0 = inlined_call_operand.vmem [shape: f32[256,256], index: 0, kind: input, shape index: {}]   ;;  %s1919_s1 = inlined_call_operand.vmem [shape: f32[256,32], index: 1, kind: input, shape index: {}]   ;;  %s1920_s2 = inlined_call_operand.vmem [shape: f32[32,128], index: 2, kind: input, shape index: {}]   ;;  %s1921_s3 = inlined_call_operand.vmem [shape: f32[1,128], index: 3, kind: input, shape index: {}]   ;;  %s1922_s4 = inlined_call_operand.vmem [shape: f32[128,64], index: 4, kind: input, shape index: {}]   ;;  %s1923_s5 = inlined_call_operand.vmem [shape: f32[256,64], index: 5, kind: output, shape index: {}]  }
   0x1   :  { %s1629_s20 = smov 0   ;;  %s1631_s21 = smov 0  }
   0x2   :  { %s1633_s22 = smov 0   ;;  %s1635_s23 = smov 0  }
   0x3   :  { %s1637_s24 = smov 0  }
   0x4 LB: > { %s24_s25 = sadd.s32 1, %s1584_s22  ;;  %s27_s26 = sadd.s32 1, %s1588_s23  ;;  %s1592_s24 = sphi %s1637_s24, %s15_s24   ;;  %s1588_s23 = sphi %s1635_s23, %s1929_s23   ;;  %s1584_s22 = sphi %s1633_s22, %s1928_s22   ;;  %s1580_s21 = sphi %s1631_s21, %s1927_s21   ;;  %s1576_s20 = sphi %s1629_s20, %s1926_s20   ;;  %s1572_s19 = sphi %s1627_s19, %s1925_s19   ;;  %s1568_s18 = sphi %s1625_s18, %s1924_s18  }
   0x5   : > { %p25_p0 = scmp.ge.s32.totalorder %s24_s25, 2  ;;  %p43_p1 = scmp.ne.s32.totalorder %s1572_s19, %s1568_s18 }
   0x6   : > { %p44_p2 = scmp.eq.s32.totalorder %s1592_s24, 0  ;;  %s36_s30 = sadd.s32 1, %s1572_s19 }
   0x7   : > { %s1931_s25 = smov (%p25_p0, %s24_s25), 0  ;;  %s1933_s26 = smov (!%p25_p0, %s27_s26), %s1588_s23 }
   0x8   : > { %p45_p3 = por %p44_p2, %p43_p1  ;;  %p29_p4 = scmp.ge.s32.totalorder %s1933_s26, 2 }
   0x9   : > { %s32_s27 = ssub.s32 %s1584_s22, %s1931_s25  ;;  %p1116_p6 = scmp.ge.s32.totalorder %s1592_s24, 4 }
   0xa   : > { %s1935_s26 = smov (%p29_p4, %s1933_s26), 0 }
   0xb   : > { %s31_s28 = ssub.s32 %s1588_s23, %s1935_s26  ;;  %193 = sbr.rel (%p1116_p6) target bundleno = 32 (0x20), region = 28 }
   0xc   : > { %s33_s29 = sor.u32 %s32_s27, %s31_s28 }
   0xd   : > { %p34_p5 = scmp.eq.s32.totalorder %s33_s29, 0 }
   0xf   : > { %s1676_s6 = scalar_select %p34_p5, %s1572_s19, %s36_s30  }
  0x12   : > { %196 = sbr.rel (!%p45_p3) target bundleno = 32 (0x20), region = 32  ;;  %s198_s7 = sand.u32 (%p45_p3), 1, %s1572_s19  }
  0x13   : > { %s1148_s8 = sshll.u32 (%p45_p3), %s1588_s23, 5  ;;  %s1117_s9 = sshll.u32 (%p45_p3), %s198_s7, 7 }
  0x14   : > { %s203_s10 = sadd.s32 (%p45_p3), %s1584_s22, %s1148_s8  ;;  %s200_s15 = scalar_lea.vmem (%p45_p3), [#allocation3], %s1117_s9 }
  0x15   : > { %s1120_s11 = sshll.u32 (%p45_p3), %s203_s10, 3 }
  0x16   : > { %s1685_s14 = scalar_lea.vmem (%p45_p3), %s1918_s0, %s1120_s11 }
  0x17   : > { %v263_v0 = vld [vmem:[%s1685_s14] sm:$0xff] (%p45_p3)  ;;  %v265_v1 = vld [vmem:[%s1685_s14 + $0x10] sm:$0xff] (%p45_p3) }
  0x18   : > { %v267_v2 = vld [vmem:[%s1685_s14 + $0x20] sm:$0xff] (%p45_p3)  ;;  %264 = vst [vmem:[%s200_s15] sm:$0xff] (%p45_p3), %v263_v0  ;;  %266 = vst [vmem:[%s200_s15 + $0x8] sm:$0xff] (%p45_p3), %v265_v1  ;;  %v269_v3 = vld [vmem:[%s1685_s14 + $0x30] sm:$0xff] (%p45_p3) }
  0x19   : > { %268 = vst [vmem:[%s200_s15 + $0x10] sm:$0xff] %v267_v2  ;;  %v271_v4 = vld [vmem:[%s1685_s14 + $0x40] sm:$0xff]  ;;  %v273_v5 = vld [vmem:[%s1685_s14 + $0x50] sm:$0xff]  ;;  %270 = vst [vmem:[%s200_s15 + $0x18] sm:$0xff] %v269_v3 }
  0x1a   : > { %272 = vst [vmem:[%s200_s15 + $0x20] sm:$0xff] %v271_v4  ;;  %274 = vst [vmem:[%s200_s15 + $0x28] sm:$0xff] %v273_v5  ;;  %v275_v6 = vld [vmem:[%s1685_s14 + $0x60] sm:$0xff]  ;;  %v277_v7 = vld [vmem:[%s1685_s14 + $0x70] sm:$0xff] }
  0x1b   : > { %v279_v8 = vld [vmem:[%s1685_s14 + $0x80] sm:$0xff]  ;;  %276 = vst [vmem:[%s200_s15 + $0x30] sm:$0xff] %v275_v6  ;;  %278 = vst [vmem:[%s200_s15 + $0x38] sm:$0xff] %v277_v7  ;;  %v281_v9 = vld [vmem:[%s1685_s14 + $0x90] sm:$0xff] }
  0x1c   : > { %280 = vst [vmem:[%s200_s15 + $0x40] sm:$0xff] %v279_v8  ;;  %v283_v10 = vld [vmem:[%s1685_s14 + $0xa0] sm:$0xff]  ;;  %v285_v11 = vld [vmem:[%s1685_s14 + $0xb0] sm:$0xff]  ;;  %282 = vst [vmem:[%s200_s15 + $0x48] sm:$0xff] %v281_v9 }
  0x1d   : > { %284 = vst [vmem:[%s200_s15 + $0x50] sm:$0xff] %v283_v10  ;;  %286 = vst [vmem:[%s200_s15 + $0x58] sm:$0xff] %v285_v11  ;;  %v287_v12 = vld [vmem:[%s1685_s14 + $0xc0] sm:$0xff]  ;;  %v289_v13 = vld [vmem:[%s1685_s14 + $0xd0] sm:$0xff] }
  0x1e   : > { %v291_v14 = vld [vmem:[%s1685_s14 + $0xe0] sm:$0xff]  ;;  %288 = vst [vmem:[%s200_s15 + $0x60] sm:$0xff] %v287_v12  ;;  %290 = vst [vmem:[%s200_s15 + $0x68] sm:$0xff] %v289_v13  ;;  %v293_v15 = vld [vmem:[%s1685_s14 + $0xf0] sm:$0xff] }
  0x1f   : > { %292 = vst [vmem:[%s200_s15 + $0x70] sm:$0xff] %v291_v14  ;;  %294 = vst [vmem:[%s200_s15 + $0x78] sm:$0xff] %v293_v15 }
  0x20 PF: > { %p1121_p7 = scmp.ge.s32.totalorder %s1592_s24, 1  ;;  %p308_p8 = scmp.lt.s32.totalorder %s1592_s24, 5 }
  0x22   : > { %p309_p9 = pnand %p1121_p7, %p308_p8 }
  0x23   : > { %s315_s16 = sand.u32 (!%p309_p9), 1, %s1568_s18   ;;  %s1123_s17 = sshll.u32 (!%p309_p9), %s1576_s20, 4 }
  0x24   : > { %312 = sbr.rel (%p309_p9) target bundleno = 772 (0x304), region = 74  ;;  %s1122_s27 = sshll.u32 (!%p309_p9), %s315_s16, 7 }
  0x25   : > { %p349_p10 = scmp.lt.s32.totalorder (!%p309_p9), %s1123_s17, 31  ;;  %s1125_s28 = sshll.u32 (!%p309_p9), %s1580_s21, 4 }
  0x26   : > { %p355_p11 = scmp.lt.s32.totalorder (!%p309_p9), %s1125_s28, 31  ;;  %s1718_s18 = scalar_lea.vmem (!%p309_p9), [#allocation3], %s1122_s27 }
  0x27   : > { %p1127_p12 = scmp.ne.s32.totalorder (!%p309_p9), %s1576_s20, 0 }
  0x2b   : > { %s1937_s17 = smov (!%p349_p10, %s1123_s17), 31  ;;  %s1939_s28 = smov (!%p355_p11, %s1125_s28), 31 }
  0x2c   : > { %s1124_s29 = sshll.u32 %s1937_s17, 3  ;;  %s1126_s9 = sshll.u32 %s1939_s28, 3  ;;  %vm364_vm0 = vcmask (!%p1127_p12), 261120   ;;  %v1594_v16 = vmov (!%p1127_p12), 0.0  }
  0x2d   : > { %s1711_s8 = scalar_lea.vmem %s1919_s1, %s1124_s29  ;;  %s1716_s12 = scalar_lea.vmem %s1923_s5, %s1126_s9  ;;  %365 = vst.msk [vmem:[#allocation2] sm:$0xff] (!%p1127_p12), %vm364_vm0, %v1594_v16  ;;  %366 = vst.msk [vmem:[#allocation2 + $0x8] sm:$0xff] (!%p1127_p12), %vm364_vm0, %v1594_v16 }
  0x2e   : > { %363 = sbr.rel (%p1127_p12) target bundleno = 53 (0x35), region = 82  ;;  %367 = vst.msk [vmem:[#allocation2 + $0x10] sm:$0xff] (!%p1127_p12), %vm364_vm0, %v1594_v16  ;;  %368 = vst.msk [vmem:[#allocation2 + $0x18] sm:$0xff] (!%p1127_p12), %vm364_vm0, %v1594_v16 }
  0x2f   : > { %369 = vst.msk [vmem:[#allocation2 + $0x20] sm:$0xff] (!%p1127_p12), %vm364_vm0, %v1594_v16  ;;  %370 = vst.msk [vmem:[#allocation2 + $0x28] sm:$0xff] (!%p1127_p12), %vm364_vm0, %v1594_v16 }
  0x30   : > { %371 = vst.msk [vmem:[#allocation2 + $0x30] sm:$0xff] (!%p1127_p12), %vm364_vm0, %v1594_v16  ;;  %372 = vst.msk [vmem:[#allocation2 + $0x38] sm:$0xff] (!%p1127_p12), %vm364_vm0, %v1594_v16 }
  0x31   : > { %373 = vst.msk [vmem:[#allocation2 + $0x40] sm:$0xff] (!%p1127_p12), %vm364_vm0, %v1594_v16  ;;  %374 = vst.msk [vmem:[#allocation2 + $0x48] sm:$0xff] (!%p1127_p12), %vm364_vm0, %v1594_v16 }
  0x32   : > { %375 = vst.msk [vmem:[#allocation2 + $0x50] sm:$0xff] (!%p1127_p12), %vm364_vm0, %v1594_v16  ;;  %376 = vst.msk [vmem:[#allocation2 + $0x58] sm:$0xff] (!%p1127_p12), %vm364_vm0, %v1594_v16 }
  0x33   : > { %377 = vst.msk [vmem:[#allocation2 + $0x60] sm:$0xff] (!%p1127_p12), %vm364_vm0, %v1594_v16  ;;  %378 = vst.msk [vmem:[#allocation2 + $0x68] sm:$0xff] (!%p1127_p12), %vm364_vm0, %v1594_v16 }
  0x34   : > { %379 = vst.msk [vmem:[#allocation2 + $0x70] sm:$0xff] (!%p1127_p12), %vm364_vm0, %v1594_v16  ;;  %380 = vst.msk [vmem:[#allocation2 + $0x78] sm:$0xff] (!%p1127_p12), %vm364_vm0, %v1594_v16 }
  0x35 PF: > { %v413_v17 = vld [vmem:[%s1711_s8] sm:$0xff]  ;;  %v414_v18 = vld [vmem:[%s1711_s8 + $0x8] sm:$0xff]  ;;  %v415_v19 = vld [vmem:[%s1711_s8 + $0x10] sm:$0xff]  ;;  %vm590_vm1 = vcmask 261120   ;;  %p1128_p13 = scmp.ne.s32.totalorder %s1576_s20, 1 }
  0x36   : > { %v1377_v20 = vpack.c.bf16 %v414_v18, %v413_v17  ;;  %v416_v21 = vld [vmem:[%s1711_s8 + $0x18] sm:$0xff]  ;;  %v417_v23 = vld [vmem:[%s1711_s8 + $0x20] sm:$0xff]  ;;  %v418_v24 = vld [vmem:[%s1711_s8 + $0x28] sm:$0xff]  ;;  %vm1008_vm2 = vcmask (!%p1128_p13), 523264  }
  0x37   : > { %v1381_v22 = vpack.c.bf16 %v416_v21, %v415_v19  ;;  %v1385_v25 = vpack.c.bf16 %v418_v24, %v417_v23  ;;  %v397_v26 = vld [vmem:[%s1718_s18] sm:$0xff]  ;;  %v419_v28 = vld [vmem:[%s1711_s8 + $0x30] sm:$0xff]  ;;  %v420_v29 = vld [vmem:[%s1711_s8 + $0x38] sm:$0xff] }
  0x38   : > { %1378 = vmatprep.subr.bf16.mxu0 %v1377_v20  ;;  %1449 = vmatprep.subr.bf16.mxu1 %v1377_v20  ;;  %v405_v27 = vld [vmem:[%s1718_s18 + $0x40] sm:$0xff]  ;;  %v1389_v30 = vpack.c.bf16 %v420_v29, %v419_v28  ;;  %v422_v32 = vld [vmem:[%s1711_s8 + $0x48] sm:$0xff]  ;;  %v423_v34 = vld [vmem:[%s1711_s8 + $0x50] sm:$0xff] }
  0x39   : > { %1380 = vmatpush3.bf16.msra.mxu0 %v1377_v20  ;;  %1457 = vmatpush3.bf16.msra.mxu1 %v1377_v20  ;;  %v421_v31 = vld [vmem:[%s1711_s8 + $0x40] sm:$0xff]  ;;  %v424_v35 = vld [vmem:[%s1711_s8 + $0x58] sm:$0xff]  ;;  %v426_v38 = vld [vmem:[%s1711_s8 + $0x68] sm:$0xff] }
  0x3a   : > { %1382 = vmatprep.subr.bf16.mxu0 %v1381_v22  ;;  %1450 = vmatprep.subr.bf16.mxu1 %v1381_v22  ;;  %v1393_v33 = vpack.c.bf16 %v422_v32, %v421_v31  ;;  %v1397_v36 = vpack.c.bf16 %v424_v35, %v423_v34  ;;  %v425_v37 = vld [vmem:[%s1711_s8 + $0x60] sm:$0xff]  ;;  %v427_v40 = vld [vmem:[%s1711_s8 + $0x70] sm:$0xff]  ;;  %v428_v41 = vld [vmem:[%s1711_s8 + $0x78] sm:$0xff] }
  0x3b   : > { %1265 = vmatprep.mubr.f32.mxu0 %v397_v26  ;;  %1277 = vmatprep.mubr.f32.mxu1 %v405_v27  ;;  %v1401_v39 = vpack.c.bf16 %v426_v38, %v425_v37  ;;  %v1405_v42 = vpack.c.bf16 %v428_v41, %v427_v40  ;;  %v398_v43 = vld [vmem:[%s1718_s18 + $0x8] sm:$0xff]  ;;  %v399_v45 = vld [vmem:[%s1718_s18 + $0x10] sm:$0xff]  ;;  %v400_v47 = vld [vmem:[%s1718_s18 + $0x18] sm:$0xff] }
  0x3c   : > { %v406_v44 = vld [vmem:[%s1718_s18 + $0x48] sm:$0xff]  ;;  %v407_v46 = vld [vmem:[%s1718_s18 + $0x50] sm:$0xff]  ;;  %v408_v48 = vld [vmem:[%s1718_s18 + $0x58] sm:$0xff] }
  0x3d   : > { %1384 = vmatpush3.bf16.msra.mxu0 %v1381_v22  ;;  %1458 = vmatpush3.bf16.msra.mxu1 %v1381_v22  ;;  %v401_v49 = vld [vmem:[%s1718_s18 + $0x20] sm:$0xff]  ;;  %v402_v51 = vld [vmem:[%s1718_s18 + $0x28] sm:$0xff]  ;;  %v403_v53 = vld [vmem:[%s1718_s18 + $0x30] sm:$0xff] }
  0x3e   : > { %1386 = vmatprep.subr.bf16.mxu0 %v1385_v25  ;;  %1451 = vmatprep.subr.bf16.mxu1 %v1385_v25  ;;  %v409_v50 = vld [vmem:[%s1718_s18 + $0x60] sm:$0xff]  ;;  %v410_v52 = vld [vmem:[%s1718_s18 + $0x68] sm:$0xff]  ;;  %v411_v54 = vld [vmem:[%s1718_s18 + $0x70] sm:$0xff] }
  0x3f   : > { %v404_v55 = vld [vmem:[%s1718_s18 + $0x38] sm:$0xff]  ;;  %v382_v57 = vld [vmem:[#allocation2 + $0x8] sm:$0xff]  ;;  %v381_v59 = vld [vmem:[#allocation2] sm:$0xff] }
  0x40   : > { %v412_v56 = vld [vmem:[%s1718_s18 + $0x78] sm:$0xff]  ;;  %v390_v58 = vld [vmem:[#allocation2 + $0x48] sm:$0xff]  ;;  %v389_v60 = vld [vmem:[#allocation2 + $0x40] sm:$0xff] }
  0x41   : > { %1388 = vmatpush3.bf16.msra.mxu0 %v1385_v25  ;;  %1459 = vmatpush3.bf16.msra.mxu1 %v1385_v25  ;;  %v384_v5 = vld [vmem:[#allocation2 + $0x18] sm:$0xff]  ;;  %v383_v7 = vld [vmem:[#allocation2 + $0x10] sm:$0xff]  ;;  %v386_v17 = vld [vmem:[#allocation2 + $0x28] sm:$0xff] }
  0x42   : > { %1390 = vmatprep.subr.bf16.mxu0 %v1389_v30  ;;  %1452 = vmatprep.subr.bf16.mxu1 %v1389_v30  ;;  %v392_v6 = vld [vmem:[#allocation2 + $0x58] sm:$0xff]  ;;  %v391_v8 = vld [vmem:[#allocation2 + $0x50] sm:$0xff]  ;;  %v394_v18 = vld [vmem:[#allocation2 + $0x68] sm:$0xff] }
  0x43   : > { %v385_v19 = vld [vmem:[#allocation2 + $0x20] sm:$0xff]  ;;  %v388_v29 = vld [vmem:[#allocation2 + $0x38] sm:$0xff]  ;;  %v387_v31 = vld [vmem:[#allocation2 + $0x30] sm:$0xff] }
  0x44   : > { %v393_v20 = vld [vmem:[#allocation2 + $0x60] sm:$0xff]  ;;  %v395_v32 = vld [vmem:[#allocation2 + $0x70] sm:$0xff] }
  0x45   : > { %1392 = vmatpush3.bf16.msra.mxu0 %v1389_v30  ;;  %1460 = vmatpush3.bf16.msra.mxu1 %v1389_v30  ;;  %v396_v30 = vld [vmem:[#allocation2 + $0x78] sm:$0xff]  ;;  %v627_v41 = vld [vmem:[%s1920_s2] sm:$0xff] (!%p1128_p13) }
  0x46   : > { %1394 = vmatprep.subr.bf16.mxu0 %v1393_v33  ;;  %1453 = vmatprep.subr.bf16.mxu1 %v1393_v33 }
  0x49   : > { %1396 = vmatpush3.bf16.msra.mxu0 %v1393_v33  ;;  %1461 = vmatpush3.bf16.msra.mxu1 %v1393_v33 }
  0x4a   : > { %1398 = vmatprep.subr.bf16.mxu0 %v1397_v36  ;;  %1454 = vmatprep.subr.bf16.mxu1 %v1397_v36 }
  0x4d   : > { %1400 = vmatpush3.bf16.msra.mxu0 %v1397_v36  ;;  %1462 = vmatpush3.bf16.msra.mxu1 %v1397_v36 }
  0x4e   : > { %1402 = vmatprep.subr.bf16.mxu0 %v1401_v39  ;;  %1455 = vmatprep.subr.bf16.mxu1 %v1401_v39 }
  0x51   : > { %1404 = vmatpush3.bf16.msra.mxu0 %v1401_v39  ;;  %1463 = vmatpush3.bf16.msra.mxu1 %v1401_v39 }
  0x52   : > { %1406 = vmatprep.subr.bf16.mxu0 %v1405_v42  ;;  %1456 = vmatprep.subr.bf16.mxu1 %v1405_v42 }
  0x55   : > { %1408 = vmatpush3.bf16.msra.mxu0 %v1405_v42  ;;  %1464 = vmatpush3.bf16.msra.mxu1 %v1405_v42  ;;  %v628_v42 = vld [vmem:[%s1920_s2 + $0x8] sm:$0xff] (!%p1128_p13) }
  0x58   : > { %1266 = vmatmul.mubr.f32.vlgmr.msra.gmra.mrb[0].mxu0 %v398_v43  ;;  %1278 = vmatmul.mubr.f32.vlgmr.msra.gmra.mrb[0].mxu1 %v406_v44  ;;  %v629_v43 = vld [vmem:[%s1920_s2 + $0x10] sm:$0xff] (!%p1128_p13)  ;;  %v1409_v44 = vpack.c.bf16 (!%p1128_p13), %v628_v42, %v627_v41 }
  0x59   : > { %1268 = vmatprep.mubr.f32.mxu0 %v399_v45  ;;  %1280 = vmatprep.mubr.f32.mxu1 %v407_v46  ;;  %v630_v45 = vld [vmem:[%s1920_s2 + $0x18] sm:$0xff] (!%p1128_p13) }
  0x5a   : > { %1410 = vmatprep.subr.bf16.mxu0 (!%p1128_p13), %v1409_v44 }
  0x5b   : > { %1412 = vmatpush3.bf16.msra.mxu0 (!%p1128_p13), %v1409_v44 }
  0x5c   : > { %1269 = vmatmul.mubr.f32.gmra.mrb[2].mxu0 %v400_v47  ;;  %1281 = vmatmul.mubr.f32.gmra.mrb[2].mxu1 %v408_v48  ;;  %v1413_v47 = vpack.c.bf16 (!%p1128_p13), %v630_v45, %v629_v43  ;;  %v847_v48 = vld [vmem:[%s1922_s4] sm:$0xff] (!%p1128_p13) }
  0x5d   : > { %1271 = vmatprep.mubr.f32.mxu0 %v401_v49  ;;  %1283 = vmatprep.mubr.f32.mxu1 %v409_v50  ;;  %v848_v49 = vld [vmem:[%s1922_s4 + $0x8] sm:$0xff] (!%p1128_p13)  ;;  %v849_v50 = vld [vmem:[%s1922_s4 + $0x10] sm:$0xff] (!%p1128_p13) }
  0x5e   : > { %1414 = vmatprep.subr.bf16.mxu0 (!%p1128_p13), %v1413_v47 }
  0x5f   : > { %1416 = vmatpush3.bf16.msra.mxu0 (!%p1128_p13), %v1413_v47 }
  0x60   : > { %1272 = vmatmul.mubr.f32.gmra.mrb[4].mxu0 %v402_v51  ;;  %1284 = vmatmul.mubr.f32.gmra.mrb[4].mxu1 %v410_v52  ;;  %v850_v51 = vld [vmem:[%s1922_s4 + $0x18] sm:$0xff] (!%p1128_p13) }
  0x61   : > { %1274 = vmatprep.mubr.f32.mxu0 %v403_v53  ;;  %1286 = vmatprep.mubr.f32.mxu1 %v411_v54  ;;  %v1417_v53 = vpack.c.bf16 (!%p1128_p13), %v848_v49, %v847_v48 }
  0x63   : > { %1418 = vmatprep.subr.bf16.mxu0 (!%p1128_p13), %v1417_v53  ;;  %1465 = vmatprep.subr.bf16.mxu1 (!%p1128_p13), %v1417_v53 }
  0x64   : > { %1275 = vmatmul.mubr.f32.gmra.mrb[6].mxu0 %v404_v55  ;;  %1287 = vmatmul.mubr.f32.gmra.mrb[6].mxu1 %v412_v56  ;;  %v1421_v55 = vpack.c.bf16 (!%p1128_p13), %v850_v51, %v849_v50  ;;  %v851_v56 = vld [vmem:[%s1922_s4 + $0x20] sm:$0xff] (!%p1128_p13) }
  0x65   : > { %1473 = vmatpush3.bf16.msra.mxu1 (!%p1128_p13), %v1417_v53 }
  0x66   : > { %1466 = vmatprep.subr.bf16.mxu1 (!%p1128_p13), %v1421_v55 }
  0x69   : > { %1474 = vmatpush3.bf16.msra.mxu1 (!%p1128_p13), %v1421_v55 }
 0x12b   : > { %v1267_v61 = vpop.f32.mrb[0].mxu0  ;;  %v1279_v62 = vpop.f32.mrb[0].mxu1 }
 0x12c   : > { %v575_v63 = vadd.f32 %v1267_v61, %v382_v57  ;;  %v583_v0 = vadd.f32 %v1279_v62, %v390_v58  ;;  %v495_v1 = vpop.f32.mrb[1].mxu0  ;;  %v535_v2 = vpop.f32.mrb[1].mxu1  ;;  %v852_v57 = vld [vmem:[%s1922_s4 + $0x28] sm:$0xff] (!%p1128_p13)  ;;  %v853_v61 = vld [vmem:[%s1922_s4 + $0x30] sm:$0xff] (!%p1128_p13)  ;;  %v854_v62 = vld [vmem:[%s1922_s4 + $0x38] sm:$0xff] (!%p1128_p13) }
 0x12d   : > { %v574_v3 = vadd.f32 %v495_v1, %v381_v59  ;;  %v582_v4 = vadd.f32 %v535_v2, %v389_v60  ;;  %v1425_v60 = vpack.c.bf16 (!%p1128_p13), %v852_v57, %v851_v56  ;;  %v1429_v1 = vpack.c.bf16 (!%p1128_p13), %v854_v62, %v853_v61  ;;  %v855_v2 = vld [vmem:[%s1922_s4 + $0x40] sm:$0xff] (!%p1128_p13) }
 0x12e   : > { %592 = vst.msk [vmem:[#allocation2 + $0x8] sm:$0xff] %vm590_vm1, %v575_v63  ;;  %600 = vst.msk [vmem:[#allocation2 + $0x48] sm:$0xff] %vm590_vm1, %v583_v0 }
 0x12f   : > { %591 = vst.msk [vmem:[#allocation2] sm:$0xff] %vm590_vm1, %v574_v3  ;;  %599 = vst.msk [vmem:[#allocation2 + $0x40] sm:$0xff] %vm590_vm1, %v582_v4  ;;  %v1270_v9 = vpop.f32.mrb[2].mxu0  ;;  %v1282_v10 = vpop.f32.mrb[2].mxu1  ;;  %1467 = vmatprep.subr.bf16.mxu1 (!%p1128_p13), %v1425_v60  ;;  %v856_v3 = vld [vmem:[%s1922_s4 + $0x48] sm:$0xff] (!%p1128_p13) }
 0x130   : > { %v577_v11 = vadd.f32 %v1270_v9, %v384_v5  ;;  %v585_v12 = vadd.f32 %v1282_v10, %v392_v6  ;;  %v505_v13 = vpop.f32.mrb[3].mxu0  ;;  %v545_v14 = vpop.f32.mrb[3].mxu1  ;;  %1475 = vmatpush3.bf16.msra.mxu1 (!%p1128_p13), %v1425_v60  ;;  %v1433_v6 = vpack.c.bf16 (!%p1128_p13), %v856_v3, %v855_v2 }
 0x131   : > { %v576_v15 = vadd.f32 %v505_v13, %v383_v7  ;;  %v584_v16 = vadd.f32 %v545_v14, %v391_v8  ;;  %1468 = vmatprep.subr.bf16.mxu1 (!%p1128_p13), %v1429_v1  ;;  %v857_v7 = vld [vmem:[%s1922_s4 + $0x50] sm:$0xff] (!%p1128_p13)  ;;  %v858_v8 = vld [vmem:[%s1922_s4 + $0x58] sm:$0xff] (!%p1128_p13)  ;;  %v860_v13 = vld [vmem:[%s1922_s4 + $0x68] sm:$0xff] (!%p1128_p13) }
 0x132   : > { %594 = vst.msk [vmem:[#allocation2 + $0x18] sm:$0xff] %vm590_vm1, %v577_v11  ;;  %602 = vst.msk [vmem:[#allocation2 + $0x58] sm:$0xff] %vm590_vm1, %v585_v12  ;;  %v1437_v11 = vpack.c.bf16 (!%p1128_p13), %v858_v8, %v857_v7  ;;  %v859_v12 = vld [vmem:[%s1922_s4 + $0x60] sm:$0xff] (!%p1128_p13) }
 0x133   : > { %593 = vst.msk [vmem:[#allocation2 + $0x10] sm:$0xff] %vm590_vm1, %v576_v15  ;;  %601 = vst.msk [vmem:[#allocation2 + $0x50] sm:$0xff] %vm590_vm1, %v584_v16  ;;  %v1273_v21 = vpop.f32.mrb[4].mxu0  ;;  %v1285_v22 = vpop.f32.mrb[4].mxu1  ;;  %v1441_v16 = vpack.c.bf16 (!%p1128_p13), %v860_v13, %v859_v12 }
 0x134   : > { %v579_v23 = vadd.f32 %v1273_v21, %v386_v17  ;;  %v587_v24 = vadd.f32 %v1285_v22, %v394_v18  ;;  %v515_v25 = vpop.f32.mrb[5].mxu0  ;;  %v555_v26 = vpop.f32.mrb[5].mxu1  ;;  %1476 = vmatpush3.bf16.msra.mxu1 (!%p1128_p13), %v1429_v1  ;;  %v862_v21 = vld [vmem:[%s1922_s4 + $0x78] sm:$0xff] (!%p1128_p13) }
 0x135   : > { %v578_v27 = vadd.f32 %v515_v25, %v385_v19  ;;  %v586_v28 = vadd.f32 %v555_v26, %v393_v20  ;;  %610 = sbr.rel (%p1128_p13) target bundleno = 772 (0x304), region = 86  ;;  %v612_v52 = vld [vmem:[#allocation2 + $0x8] sm:$0xff] (!%p1128_p13)  ;;  %1469 = vmatprep.subr.bf16.mxu1 (!%p1128_p13), %v1433_v6  ;;  %v861_v20 = vld [vmem:[%s1922_s4 + $0x70] sm:$0xff] (!%p1128_p13) }
 0x136   : > { %596 = vst.msk [vmem:[#allocation2 + $0x28] sm:$0xff] %vm590_vm1, %v579_v23  ;;  %604 = vst.msk [vmem:[#allocation2 + $0x68] sm:$0xff] %vm590_vm1, %v587_v24  ;;  %v611_v46 = vld [vmem:[#allocation2] sm:$0xff] (!%p1128_p13)  ;;  %v620_v9 = vld [vmem:[#allocation2 + $0x48] sm:$0xff] (!%p1128_p13)  ;;  %v1445_v22 = vpack.c.bf16 (!%p1128_p13), %v862_v21, %v861_v20 }
 0x137   : > { %595 = vst.msk [vmem:[#allocation2 + $0x20] sm:$0xff] %vm590_vm1, %v578_v27  ;;  %603 = vst.msk [vmem:[#allocation2 + $0x60] sm:$0xff] %vm590_vm1, %v586_v28  ;;  %v1276_v33 = vpop.f32.mrb[6].mxu0  ;;  %v1288_v34 = vpop.f32.mrb[6].mxu1  ;;  %1297 = vmatprep.mubr.msk.f32.mxu0 (!%p1128_p13), %vm590_vm1, %v611_v46  ;;  %v619_v5 = vld [vmem:[#allocation2 + $0x40] sm:$0xff] (!%p1128_p13) }
 0x138   : > { %v581_v35 = vadd.f32 %v1276_v33, %v388_v29  ;;  %v589_v36 = vadd.f32 %v1288_v34, %v396_v30  ;;  %v525_v37 = vpop.f32.mrb[7].mxu0  ;;  %v565_v38 = vpop.f32.mrb[7].mxu1  ;;  %1298 = vmatmul.mubr.msk.f32.vlgmr.msra.gmra.mrb[0].mxu0 (!%p1128_p13), %vm590_vm1, %v612_v52  ;;  %1477 = vmatpush3.bf16.msra.mxu1 (!%p1128_p13), %v1433_v6  ;;  %v1129_v23 = vld [vmem:[%s1921_s3] ss:$0 sm:$0xff] (!%p1128_p13) }
 0x139   : > { %v580_v39 = vadd.f32 %v525_v37, %v387_v31  ;;  %v588_v40 = vadd.f32 %v565_v38, %v395_v32  ;;  %v614_v58 = vld [vmem:[#allocation2 + $0x18] sm:$0xff] (!%p1128_p13)  ;;  %1420 = vmatpush3.bf16.msra.mxu0 (!%p1128_p13), %v1417_v53  ;;  %1470 = vmatprep.subr.bf16.mxu1 (!%p1128_p13), %v1437_v11 }
 0x13a   : > { %598 = vst.msk [vmem:[#allocation2 + $0x38] sm:$0xff] %vm590_vm1, %v581_v35  ;;  %606 = vst.msk [vmem:[#allocation2 + $0x78] sm:$0xff] %vm590_vm1, %v589_v36  ;;  %v613_v54 = vld [vmem:[#allocation2 + $0x10] sm:$0xff] (!%p1128_p13)  ;;  %1422 = vmatprep.subr.bf16.mxu0 (!%p1128_p13), %v1421_v55  ;;  %v622_v14 = vld [vmem:[#allocation2 + $0x58] sm:$0xff] (!%p1128_p13) }
 0x13b   : > { %597 = vst.msk [vmem:[#allocation2 + $0x30] sm:$0xff] %vm590_vm1, %v580_v39  ;;  %605 = vst.msk [vmem:[#allocation2 + $0x70] sm:$0xff] %vm590_vm1, %v588_v40  ;;  %1300 = vmatprep.mubr.msk.f32.mxu0 (!%p1128_p13), %vm590_vm1, %v613_v54  ;;  %v621_v10 = vld [vmem:[#allocation2 + $0x50] sm:$0xff] (!%p1128_p13) }
 0x13c   : > { %1301 = vmatmul.mubr.msk.f32.gmra.mrb[2].mxu0 %vm590_vm1, %v614_v58  ;;  %1478 = vmatpush3.bf16.msra.mxu1 %v1437_v11 }
 0x13d   : > { %v616_v63 = vld [vmem:[#allocation2 + $0x28] sm:$0xff]  ;;  %1424 = vmatpush3.bf16.msra.mxu0 %v1421_v55  ;;  %1471 = vmatprep.subr.bf16.mxu1 %v1441_v16 }
 0x13e   : > { %v615_v59 = vld [vmem:[#allocation2 + $0x20] sm:$0xff]  ;;  %1426 = vmatprep.subr.bf16.mxu0 %v1425_v60  ;;  %v624_v17 = vld [vmem:[#allocation2 + $0x68] sm:$0xff] }
 0x13f   : > { %1303 = vmatprep.mubr.msk.f32.mxu0 %vm590_vm1, %v615_v59  ;;  %v623_v15 = vld [vmem:[#allocation2 + $0x60] sm:$0xff] }
 0x140   : > { %1304 = vmatmul.mubr.msk.f32.gmra.mrb[4].mxu0 %vm590_vm1, %v616_v63  ;;  %1479 = vmatpush3.bf16.msra.mxu1 %v1441_v16 }
 0x141   : > { %v618_v4 = vld [vmem:[#allocation2 + $0x38] sm:$0xff]  ;;  %1428 = vmatpush3.bf16.msra.mxu0 %v1425_v60  ;;  %1472 = vmatprep.subr.bf16.mxu1 %v1445_v22 }
 0x142   : > { %v617_v0 = vld [vmem:[#allocation2 + $0x30] sm:$0xff]  ;;  %1430 = vmatprep.subr.bf16.mxu0 %v1429_v1  ;;  %v626_v19 = vld [vmem:[#allocation2 + $0x78] sm:$0xff] }
 0x143   : > { %1306 = vmatprep.mubr.msk.f32.mxu0 %vm590_vm1, %v617_v0  ;;  %v625_v18 = vld [vmem:[#allocation2 + $0x70] sm:$0xff] }
 0x144   : > { %1307 = vmatmul.mubr.msk.f32.gmra.mrb[6].mxu0 %vm590_vm1, %v618_v4  ;;  %1480 = vmatpush3.bf16.msra.mxu1 %v1445_v22 }
 0x145   : > { %1309 = vmatprep.mubr.msk.f32.mxu0 %vm590_vm1, %v619_v5  ;;  %1432 = vmatpush3.bf16.msra.mxu0 %v1429_v1 }
 0x146   : > { %1434 = vmatprep.subr.bf16.mxu0 %v1433_v6 }
 0x148   : > { %1310 = vmatmul.mubr.msk.f32.gmra.mrb[8].mxu0 %vm590_vm1, %v620_v9 }
 0x149   : > { %1312 = vmatprep.mubr.msk.f32.mxu0 %vm590_vm1, %v621_v10  ;;  %1436 = vmatpush3.bf16.msra.mxu0 %v1433_v6 }
 0x14a   : > { %1438 = vmatprep.subr.bf16.mxu0 %v1437_v11 }
 0x14c   : > { %1313 = vmatmul.mubr.msk.f32.gmra.mrb[10].mxu0 %vm590_vm1, %v622_v14 }
 0x14d   : > { %1315 = vmatprep.mubr.msk.f32.mxu0 %vm590_vm1, %v623_v15  ;;  %1440 = vmatpush3.bf16.msra.mxu0 %v1437_v11 }
 0x14e   : > { %1442 = vmatprep.subr.bf16.mxu0 %v1441_v16 }
 0x150   : > { %1316 = vmatmul.mubr.msk.f32.gmra.mrb[12].mxu0 %vm590_vm1, %v624_v17 }
 0x151   : > { %1318 = vmatprep.mubr.msk.f32.mxu0 %vm590_vm1, %v625_v18  ;;  %1444 = vmatpush3.bf16.msra.mxu0 %v1441_v16 }
 0x152   : > { %1446 = vmatprep.subr.bf16.mxu0 %v1445_v22 }
 0x154   : > { %1319 = vmatmul.mubr.msk.f32.gmra.mrb[14].mxu0 %vm590_vm1, %v626_v19 }
 0x155   : > { %1448 = vmatpush3.bf16.msra.mxu0 %v1445_v22 }
 0x20b   : > { %v1299_v24 = vpop.f32.mrb[0].mxu0 }
 0x20c   : > { %v758_v25 = vadd.f32 %v1299_v24, %v1129_v23  ;;  %v752_v26 = vpop.f32.mrb[1].mxu0 }
 0x20d   : > { %v753_v27 = vadd.f32 %v1129_v23, %v752_v26 }
 0x20e   : > { %v832_v30 = vmax.f32 %v758_v25, 0.0 }
 0x20f   : > { %v831_v28 = vmax.f32 %v753_v27, 0.0  ;;  %v1302_v29 = vpop.f32.mrb[2].mxu0 }
 0x210   : > { %v768_v31 = vadd.f32 %v1302_v29, %v1129_v23  ;;  %v762_v32 = vpop.f32.mrb[3].mxu0 }
 0x211   : > { %v763_v33 = vadd.f32 %v1129_v23, %v762_v32  ;;  %1353 = vmatprep.mubr.f32.mxu0 %v831_v28 }
 0x212   : > { %1354 = vmatmul.mubr.f32.vlgmr.msra.gmra.mrb[16].mxu0 %v832_v30  ;;  %v834_v36 = vmax.f32 %v768_v31, 0.0 }
 0x213   : > { %v833_v34 = vmax.f32 %v763_v33, 0.0  ;;  %v1305_v35 = vpop.f32.mrb[4].mxu0 }
 0x214   : > { %v778_v37 = vadd.f32 %v1305_v35, %v1129_v23  ;;  %v772_v38 = vpop.f32.mrb[5].mxu0 }
 0x215   : > { %v773_v39 = vadd.f32 %v1129_v23, %v772_v38  ;;  %1356 = vmatprep.mubr.f32.mxu0 %v833_v34 }
 0x216   : > { %1357 = vmatmul.mubr.f32.gmra.mrb[18].mxu0 %v834_v36  ;;  %v836_v42 = vmax.f32 %v778_v37, 0.0 }
 0x217   : > { %v835_v40 = vmax.f32 %v773_v39, 0.0  ;;  %v1308_v41 = vpop.f32.mrb[6].mxu0 }
 0x218   : > { %v788_v43 = vadd.f32 %v1308_v41, %v1129_v23  ;;  %v782_v44 = vpop.f32.mrb[7].mxu0 }
 0x219   : > { %1359 = vmatprep.mubr.f32.mxu0 %v835_v40  ;;  %v783_v45 = vadd.f32 %v1129_v23, %v782_v44 }
 0x21a   : > { %1360 = vmatmul.mubr.f32.gmra.mrb[20].mxu0 %v836_v42  ;;  %v838_v48 = vmax.f32 %v788_v43, 0.0 }
 0x21b   : > { %v1311_v46 = vpop.f32.mrb[8].mxu0  ;;  %v837_v47 = vmax.f32 %v783_v45, 0.0 }
 0x21c   : > { %v798_v49 = vadd.f32 %v1311_v46, %v1129_v23  ;;  %v792_v50 = vpop.f32.mrb[9].mxu0 }
 0x21d   : > { %v793_v51 = vadd.f32 %v1129_v23, %v792_v50  ;;  %1362 = vmatprep.mubr.f32.mxu1 %v837_v47 }
 0x21e   : > { %1363 = vmatmul.mubr.f32.vlgmr.msra.gmra.mrb[0].mxu1 %v838_v48  ;;  %v840_v54 = vmax.f32 %v798_v49, 0.0 }
 0x21f   : > { %v839_v52 = vmax.f32 %v793_v51, 0.0  ;;  %v1314_v53 = vpop.f32.mrb[10].mxu0 }
 0x220   : > { %v808_v55 = vadd.f32 %v1314_v53, %v1129_v23  ;;  %v802_v56 = vpop.f32.mrb[11].mxu0 }
 0x221   : > { %v803_v57 = vadd.f32 %v1129_v23, %v802_v56  ;;  %1365 = vmatprep.mubr.f32.mxu1 %v839_v52 }
 0x222   : > { %1366 = vmatmul.mubr.f32.gmra.mrb[2].mxu1 %v840_v54  ;;  %v842_v60 = vmax.f32 %v808_v55, 0.0 }
 0x223   : > { %v841_v58 = vmax.f32 %v803_v57, 0.0  ;;  %v1317_v59 = vpop.f32.mrb[12].mxu0 }
 0x224   : > { %v818_v61 = vadd.f32 %v1317_v59, %v1129_v23  ;;  %v812_v62 = vpop.f32.mrb[13].mxu0 }
 0x225   : > { %v813_v63 = vadd.f32 %v1129_v23, %v812_v62  ;;  %1368 = vmatprep.mubr.f32.mxu1 %v841_v58 }
 0x226   : > { %1369 = vmatmul.mubr.f32.gmra.mrb[4].mxu1 %v842_v60  ;;  %v844_v2 = vmax.f32 %v818_v61, 0.0 }
 0x227   : > { %v843_v0 = vmax.f32 %v813_v63, 0.0  ;;  %v1320_v1 = vpop.f32.mrb[14].mxu0 }
 0x228   : > { %v828_v3 = vadd.f32 %v1320_v1, %v1129_v23  ;;  %v822_v4 = vpop.f32.mrb[15].mxu0 }
 0x229   : > { %v823_v5 = vadd.f32 %v1129_v23, %v822_v4  ;;  %1371 = vmatprep.mubr.f32.mxu1 %v843_v0 }
 0x22a   : > { %1372 = vmatmul.mubr.f32.gmra.mrb[6].mxu1 %v844_v2  ;;  %v846_v7 = vmax.f32 %v828_v3, 0.0 }
 0x22b   : > { %v845_v6 = vmax.f32 %v823_v5, 0.0 }
 0x22d   : > { %1374 = vmatprep.mubr.f32.mxu1 %v845_v6 }
 0x22e   : > { %1375 = vmatmul.mubr.f32.gmra.mrb[8].mxu1 %v846_v7 }
 0x2e5   : > { %v1355_v8 = vpop.f32.mrb[16].mxu0 }
 0x2e6   : > { %1010 = vst.msk [vmem:[%s1716_s12 + $0x8] sm:$0xff] %vm1008_vm2, %v1355_v8  ;;  %v929_v9 = vpop.f32.mrb[17].mxu0 }
 0x2e7   : > { %1009 = vst.msk [vmem:[%s1716_s12] sm:$0xff] %vm1008_vm2, %v929_v9 }
 0x2e9   : > { %v1358_v10 = vpop.f32.mrb[18].mxu0 }
 0x2ea   : > { %1012 = vst.msk [vmem:[%s1716_s12 + $0x18] sm:$0xff] %vm1008_vm2, %v1358_v10  ;;  %v939_v11 = vpop.f32.mrb[19].mxu0 }
 0x2eb   : > { %1011 = vst.msk [vmem:[%s1716_s12 + $0x10] sm:$0xff] %vm1008_vm2, %v939_v11 }
 0x2ed   : > { %v1361_v12 = vpop.f32.mrb[20].mxu0 }
 0x2ee   : > { %1014 = vst.msk [vmem:[%s1716_s12 + $0x28] sm:$0xff] %vm1008_vm2, %v1361_v12  ;;  %v949_v13 = vpop.f32.mrb[21].mxu0 }
 0x2ef   : > { %1013 = vst.msk [vmem:[%s1716_s12 + $0x20] sm:$0xff] %vm1008_vm2, %v949_v13 }
 0x2f1   : > { %v1364_v14 = vpop.f32.mrb[0].mxu1 }
 0x2f2   : > { %1016 = vst.msk [vmem:[%s1716_s12 + $0x38] sm:$0xff] %vm1008_vm2, %v1364_v14  ;;  %v959_v15 = vpop.f32.mrb[1].mxu1 }
 0x2f3   : > { %1015 = vst.msk [vmem:[%s1716_s12 + $0x30] sm:$0xff] %vm1008_vm2, %v959_v15 }
 0x2f5   : > { %v1367_v16 = vpop.f32.mrb[2].mxu1 }
 0x2f6   : > { %1018 = vst.msk [vmem:[%s1716_s12 + $0x48] sm:$0xff] %vm1008_vm2, %v1367_v16  ;;  %v969_v17 = vpop.f32.mrb[3].mxu1 }
 0x2f7   : > { %1017 = vst.msk [vmem:[%s1716_s12 + $0x40] sm:$0xff] %vm1008_vm2, %v969_v17 }
 0x2f9   : > { %v1370_v18 = vpop.f32.mrb[4].mxu1 }
 0x2fa   : > { %1020 = vst.msk [vmem:[%s1716_s12 + $0x58] sm:$0xff] %vm1008_vm2, %v1370_v18  ;;  %v979_v19 = vpop.f32.mrb[5].mxu1 }
 0x2fb   : > { %1019 = vst.msk [vmem:[%s1716_s12 + $0x50] sm:$0xff] %vm1008_vm2, %v979_v19 }
 0x2fd   : > { %v1373_v20 = vpop.f32.mrb[6].mxu1 }
 0x2fe   : > { %1022 = vst.msk [vmem:[%s1716_s12 + $0x68] sm:$0xff] %vm1008_vm2, %v1373_v20  ;;  %v989_v21 = vpop.f32.mrb[7].mxu1 }
 0x2ff   : > { %1021 = vst.msk [vmem:[%s1716_s12 + $0x60] sm:$0xff] %vm1008_vm2, %v989_v21 }
 0x301   : > { %v1376_v22 = vpop.f32.mrb[8].mxu1 }
 0x302   : > { %1024 = vst.msk [vmem:[%s1716_s12 + $0x78] sm:$0xff] %vm1008_vm2, %v1376_v22  ;;  %v999_v23 = vpop.f32.mrb[9].mxu1 }
 0x303   : > { %1023 = vst.msk [vmem:[%s1716_s12 + $0x70] sm:$0xff] %vm1008_vm2, %v999_v23 }
 0x304 PF: > { %s15_s24 = sadd.s32 1, %s1592_s24   ;;  %s1924_s18 = smov %s1572_s19 }
 0x305   : > { %p12_p0 = scmp.ge.s32.totalorder %s15_s24, 6   ;;  %s1925_s19 = smov %s1676_s6 }
 0x306   : > { %s1926_s20 = smov %s1584_s22  ;;  %s1927_s21 = smov %s1588_s23 }
 0x307   : > { %s1928_s22 = smov %s1931_s25  ;;  %s1929_s23 = smov %s1935_s26 }
 0x308   :  { %14 = sbr.rel (!%p12_p0) target bundleno = 4 (0x4), region = 124 }

// kernel: am_gcn_forward.9
= control target key start
LH: loop header
LB: loop body
LE: loop exit
PB: predicated region body
PF: predicated region fallthrough
CT: control target
= control target key end

     0   :  { %s3392_s18 = smov 0   ;;  %s4729_s0 = inlined_call_operand.vmem [shape: f32[256,64], index: 0, kind: input, shape index: {}]   ;;  %s4730_s1 = inlined_call_operand.vmem [shape: f32[256,64], index: 1, kind: input, shape index: {}]   ;;  %s4731_s2 = inlined_call_operand.vmem [shape: f32[32,16], index: 2, kind: input, shape index: {}]   ;;  %s4732_s3 = inlined_call_operand.vmem [shape: f32[32,16], index: 3, kind: input, shape index: {}]   ;;  %s4733_s4 = inlined_call_operand.vmem [shape: f32[32,16], index: 4, kind: input, shape index: {}]   ;;  %s4734_s5 = inlined_call_operand.vmem [shape: f32[1,16], index: 5, kind: input, shape index: {}]   ;;  %s4735_s6 = inlined_call_operand.vmem [shape: f32[1,16], index: 6, kind: input, shape index: {}]   ;;  %s4736_s7 = inlined_call_operand.vmem [shape: f32[1,16], index: 7, kind: input, shape index: {}]   ;;  %s4737_s8 = inlined_call_operand.vmem [shape: f32[1,16], index: 8, kind: input, shape index: {}]   ;;  %s4738_s9 = inlined_call_operand.vmem [shape: f32[32,8], index: 9, kind: input, shape index: {}]   ;;  %s4739_s10 = inlined_call_operand.vmem [shape: f32[1,8], index: 10, kind: input, shape index: {}]   ;;  %s4740_s11 = inlined_call_operand.vmem [shape: f32[256,8], index: 11, kind: output, shape index: {0}]   ;;  %s4741_s12 = inlined_call_operand.vmem [shape: f32[256,32], index: 12, kind: output, shape index: {1}]   ;;  %s4742_s13 = inlined_call_operand.vmem [shape: f32[256,1], index: 13, kind: output, shape index: {2}]   ;;  %s4743_s14 = inlined_call_operand.vmem [shape: f32[256,1], index: 14, kind: output, shape index: {3}]   ;;  %s4744_s15 = inlined_call_operand.vmem [shape: f32[256,1], index: 15, kind: output, shape index: {4}]  }
   0x1 LB: > { %s2644_s19 = sadd.s32 4294967295, %s3309_s18   ;;  %p2648_p0 = scmp.ge.s32.totalorder %s3309_s18, 1  ;;  %s3309_s18 = sphi %s3392_s18, %s26_s18  }
   0x2   : > { %p458_p1 = scmp.lt.s32.totalorder %s3309_s18, 3 }
   0x4   : > { %p459_p2 = pnand %p2648_p0, %p458_p1 }
   0x6   : > { %462 = sbr.rel (%p459_p2) target bundleno = 1260 (0x4ec), region = 64 }
   0xd   : > { %s2649_s20 = sshll.u32 %s2644_s19, 4  ;;  %v638_v0 = vld [vmem:[%s4731_s2] sm:$0xff]  ;;  %v639_v1 = vld [vmem:[%s4731_s2 + $0x8] sm:$0xff]  ;;  %v640_v2 = vld [vmem:[%s4731_s2 + $0x10] sm:$0xff]  ;;  %vm649_vm0 = vcmask 261120   ;;  %s3311_s25 = smov 96  }
   0xe   : > { %p532_p3 = scmp.lt.s32.totalorder %s2649_s20, 31  ;;  %v2942_v3 = vpack.c.bf16 %v639_v1, %v638_v0  ;;  %v641_v4 = vld [vmem:[%s4731_s2 + $0x18] sm:$0xff]  ;;  %v930_v5 = vld [vmem:[%s4732_s3] sm:$0xff]  ;;  %v931_v6 = vld [vmem:[%s4732_s3 + $0x8] sm:$0xff]  ;;  %vm881_vm1 = vcmask 130048   ;;  %vm1978_vm2 = vcmask 7168  }
   0xf   : > { %v2946_v7 = vpack.c.bf16 %v641_v4, %v640_v2  ;;  %v2950_v8 = vpack.c.bf16 %v931_v6, %v930_v5  ;;  %v932_v9 = vld [vmem:[%s4732_s3 + $0x10] sm:$0xff]  ;;  %v933_v10 = vld [vmem:[%s4732_s3 + $0x18] sm:$0xff]  ;;  %v1214_v12 = vld [vmem:[%s4733_s4] sm:$0xff]  ;;  %vm2231_vm3 = vcmask 64512  }
  0x10   : > { %s4777_s20 = smov (!%p532_p3, %s2649_s20), 31  ;;  %2943 = vmatprep.subr.bf16.mxu0 %v2942_v3  ;;  %v2954_v11 = vpack.c.bf16 %v933_v10, %v932_v9  ;;  %v1215_v13 = vld [vmem:[%s4733_s4 + $0x8] sm:$0xff]  ;;  %v1216_v15 = vld [vmem:[%s4733_s4 + $0x10] sm:$0xff]  ;;  %v1217_v16 = vld [vmem:[%s4733_s4 + $0x18] sm:$0xff] }
  0x11   : > { %2945 = vmatpush3.bf16.msra.mxu0 %v2942_v3  ;;  %2951 = vmatprep.subr.bf16.mxu1 %v2950_v8  ;;  %s3430_s28 = sshll.u32 %s4777_s20, 3  ;;  %v2958_v14 = vpack.c.bf16 %v1215_v13, %v1214_v12  ;;  %v2962_v35 = vpack.c.bf16 %v1217_v16, %v1216_v15 }
  0x12   : > { %2947 = vmatprep.subr.bf16.mxu0 %v2946_v7  ;;  %2953 = vmatpush3.bf16.msra.mxu1 %v2950_v8  ;;  %s3436_s16 = scalar_lea.vmem %s4729_s0, %s3430_s28  ;;  %s3442_s21 = scalar_lea.vmem %s4730_s1, %s3430_s28 }
  0x13   : > { %2955 = vmatprep.subr.bf16.mxu1 %v2954_v11  ;;  %v573_v17 = vld [vmem:[%s3436_s16] sm:$0xff]  ;;  %v575_v19 = vld [vmem:[%s3436_s16 + $0x10] sm:$0xff]  ;;  %v574_v22 = vld [vmem:[%s3436_s16 + $0x8] sm:$0xff]  ;;  %s4064_s23 = scalar_lea.vmem %s4744_s15, %s3430_s28  ;;  %s4120_s27 = scalar_lea.vmem %s4742_s13, %s3430_s28 }
  0x14   : > { %v589_v18 = vld [vmem:[%s3442_s21] sm:$0xff]  ;;  %v591_v21 = vld [vmem:[%s3442_s21 + $0x10] sm:$0xff]  ;;  %v590_v23 = vld [vmem:[%s3442_s21 + $0x8] sm:$0xff]  ;;  %2822 = vmatprep.mubr.msk.f32.mxu0 %vm649_vm0, %v573_v17  ;;  %s4126_s17 = scalar_lea.vmem %s4743_s14, %s3430_s28  ;;  %s4460_s22 = scalar_lea.vmem %s4741_s12, %s3430_s28 }
  0x15   : > { %v605_v20 = vadd.f32 %v589_v18, %v573_v17  ;;  %2949 = vmatpush3.bf16.msra.mxu0 %v2946_v7  ;;  %v607_v24 = vadd.f32 %v591_v21, %v575_v19  ;;  %v606_v25 = vadd.f32 %v590_v23, %v574_v22  ;;  %v576_v26 = vld [vmem:[%s3436_s16 + $0x18] sm:$0xff]  ;;  %v577_v28 = vld [vmem:[%s3436_s16 + $0x20] sm:$0xff]  ;;  %2854 = vmatprep.mubr.msk.f32.mxu1 %vm649_vm0, %v589_v18  ;;  %v578_v32 = vld [vmem:[%s3436_s16 + $0x28] sm:$0xff]  ;;  %s4676_s24 = scalar_lea.vmem %s4740_s11, %s3430_s28 }
  0x16   : > { %v592_v27 = vld [vmem:[%s3442_s21 + $0x18] sm:$0xff]  ;;  %2957 = vmatpush3.bf16.msra.mxu1 %v2954_v11  ;;  %v593_v31 = vld [vmem:[%s3442_s21 + $0x20] sm:$0xff]  ;;  %v594_v33 = vld [vmem:[%s3442_s21 + $0x28] sm:$0xff]  ;;  %2959 = vmatprep.subr.bf16.mxu0 %v2958_v14 }
  0x17   : > { %v3461_v29 = vmul.f32 0.5, %v605_v20  ;;  %v608_v30 = vadd.f32 %v592_v27, %v576_v26  ;;  %v3466_v34 = vmul.f32 0.5, %v607_v24  ;;  %v3471_v36 = vmul.f32 0.5, %v606_v25  ;;  %v579_v40 = vld [vmem:[%s3436_s16 + $0x30] sm:$0xff]  ;;  %v580_v42 = vld [vmem:[%s3436_s16 + $0x38] sm:$0xff]  ;;  %v581_v48 = vld [vmem:[%s3436_s16 + $0x40] sm:$0xff] }
  0x18   : > { %2823 = vmatmul.mubr.msk.f32.vlgmr.msra.gmra.mrb[0].mxu0 %vm649_vm0, %v574_v22  ;;  %v609_v37 = vadd.f32 %v593_v31, %v577_v28  ;;  %v610_v39 = vadd.f32 %v594_v33, %v578_v32  ;;  %v595_v41 = vld [vmem:[%s3442_s21 + $0x30] sm:$0xff]  ;;  %v596_v43 = vld [vmem:[%s3442_s21 + $0x38] sm:$0xff]  ;;  %v597_v49 = vld [vmem:[%s3442_s21 + $0x40] sm:$0xff] }
  0x19   : > { %1241 = vrot.lane.b32.xlu0 %v3461_v29, %s3311_s25  ;;  %2855 = vmatmul.mubr.msk.f32.vlgmr.msra.gmra.mrb[0].mxu1 %vm649_vm0, %v590_v23  ;;  %v3476_v38 = vmul.f32 0.5, %v608_v30  ;;  %v611_v45 = vadd.f32 %v595_v41, %v579_v40  ;;  %v612_v47 = vadd.f32 %v596_v43, %v580_v42  ;;  %v582_v50 = vld [vmem:[%s3436_s16 + $0x48] sm:$0xff]  ;;  %v613_v53 = vadd.f32 %v597_v49, %v581_v48  ;;  %v583_v56 = vld [vmem:[%s3436_s16 + $0x50] sm:$0xff]  ;;  %v584_v58 = vld [vmem:[%s3436_s16 + $0x58] sm:$0xff] }
  0x1a   : > { %1245 = vrot.lane.b32.xlu1 %v3466_v34, %s3311_s25  ;;  %2825 = vmatprep.mubr.msk.f32.mxu0 %vm649_vm0, %v575_v19  ;;  %v3487_v44 = vmul.f32 0.5, %v609_v37  ;;  %v3492_v46 = vmul.f32 0.5, %v610_v39  ;;  %v598_v51 = vld [vmem:[%s3442_s21 + $0x48] sm:$0xff]  ;;  %v599_v57 = vld [vmem:[%s3442_s21 + $0x50] sm:$0xff]  ;;  %v600_v59 = vld [vmem:[%s3442_s21 + $0x58] sm:$0xff] }
  0x1b   : > { %2857 = vmatprep.mubr.msk.f32.mxu1 %vm649_vm0, %v591_v21  ;;  %2961 = vmatpush3.bf16.msra.mxu0 %v2958_v14  ;;  %v3503_v52 = vmul.f32 0.5, %v611_v45  ;;  %v3508_v54 = vmul.f32 0.5, %v612_v47  ;;  %v614_v55 = vadd.f32 %v598_v51, %v582_v50  ;;  %v3519_v60 = vmul.f32 0.5, %v613_v53  ;;  %v585_v0 = vld [vmem:[%s3436_s16 + $0x60] sm:$0xff]  ;;  %v586_v2 = vld [vmem:[%s3436_s16 + $0x68] sm:$0xff]  ;;  %v587_v8 = vld [vmem:[%s3436_s16 + $0x70] sm:$0xff] }
  0x1c   : > { %2826 = vmatmul.mubr.msk.f32.gmra.mrb[2].mxu0 %vm649_vm0, %v576_v26  ;;  %2963 = vmatprep.subr.bf16.mxu0 %v2962_v35  ;;  %v615_v61 = vadd.f32 %v599_v57, %v583_v56  ;;  %v616_v63 = vadd.f32 %v600_v59, %v584_v58  ;;  %v601_v1 = vld [vmem:[%s3442_s21 + $0x60] sm:$0xff]  ;;  %v602_v3 = vld [vmem:[%s3442_s21 + $0x68] sm:$0xff]  ;;  %v603_v9 = vld [vmem:[%s3442_s21 + $0x70] sm:$0xff] }
  0x1d   : > { %1243 = vrot.lane.b32.xlu0 %v3471_v36, %s3311_s25  ;;  %2858 = vmatmul.mubr.msk.f32.gmra.mrb[2].mxu1 %vm649_vm0, %v592_v27  ;;  %4754 = vst [vmem:[#allocation2_spill] sm:$0xff] %v3519_v60  ;;  %v3524_v62 = vmul.f32 0.5, %v614_v55  ;;  %v617_v5 = vadd.f32 %v601_v1, %v585_v0  ;;  %v618_v7 = vadd.f32 %v602_v3, %v586_v2  ;;  %v588_v10 = vld [vmem:[%s3436_s16 + $0x78] sm:$0xff]  ;;  %v3597_v37 = vld [vmem:[%s4734_s5] ss:$0 sm:$0xff] }
  0x1e   : > { %1247 = vrot.lane.b32.xlu1 %v3476_v38, %s3311_s25  ;;  %2828 = vmatprep.mubr.msk.f32.mxu0 %vm649_vm0, %v577_v28  ;;  %v3535_v4 = vmul.f32 0.5, %v615_v61  ;;  %v3540_v6 = vmul.f32 0.5, %v616_v63  ;;  %v604_v11 = vld [vmem:[%s3442_s21 + $0x78] sm:$0xff]  ;;  %v619_v13 = vadd.f32 %v603_v9, %v587_v8  ;;  %v3602_v39 = vld [vmem:[%s4735_s6] ss:$0 sm:$0xff] }
  0x1f   : > { %2860 = vmatprep.mubr.msk.f32.mxu1 %vm649_vm0, %v593_v31  ;;  %2965 = vmatpush3.bf16.msra.mxu0 %v2962_v35  ;;  %4755 = vst [vmem:[#allocation3_spill] sm:$0xff] %v3524_v62  ;;  %v3551_v12 = vmul.f32 0.5, %v617_v5  ;;  %v3556_v14 = vmul.f32 0.5, %v618_v7  ;;  %v620_v15 = vadd.f32 %v604_v11, %v588_v10 }
  0x20   : > { %2829 = vmatmul.mubr.msk.f32.gmra.mrb[4].mxu0 %vm649_vm0, %v578_v32  ;;  %4756 = vst [vmem:[#allocation4_spill] sm:$0xff] %v3535_v4  ;;  %4757 = vst [vmem:[#allocation5_spill] sm:$0xff] %v3540_v6  ;;  %v3563_v16 = vmul.f32 0.5, %v619_v13 }
  0x21   : > { %1249 = vrot.lane.b32.xlu0 %v3487_v44, %s3311_s25  ;;  %2861 = vmatmul.mubr.msk.f32.gmra.mrb[4].mxu1 %vm649_vm0, %v594_v33  ;;  %4758 = vst [vmem:[#allocation6_spill] sm:$0xff] %v3551_v12  ;;  %4759 = vst [vmem:[#allocation7_spill] sm:$0xff] %v3556_v14  ;;  %v3568_v17 = vmul.f32 0.5, %v620_v15 }
  0x22   : > { %1251 = vrot.lane.b32.xlu1 %v3492_v46, %s3311_s25  ;;  %2831 = vmatprep.mubr.msk.f32.mxu0 %vm649_vm0, %v579_v40  ;;  %4760 = vst [vmem:[#allocation8_spill] sm:$0xff] %v3563_v16 }
  0x23   : > { %2863 = vmatprep.mubr.msk.f32.mxu1 %vm649_vm0, %v595_v41  ;;  %4761 = vst [vmem:[#allocation9_spill] sm:$0xff] %v3568_v17 }
  0x24   : > { %2832 = vmatmul.mubr.msk.f32.gmra.mrb[6].mxu0 %vm649_vm0, %v580_v42 }
  0x25   : > { %1253 = vrot.lane.b32.xlu0 %v3503_v52, %s3311_s25  ;;  %2864 = vmatmul.mubr.msk.f32.gmra.mrb[6].mxu1 %vm649_vm0, %v596_v43 }
  0x26   : > { %1255 = vrot.lane.b32.xlu1 %v3508_v54, %s3311_s25  ;;  %2834 = vmatprep.mubr.msk.f32.mxu0 %vm649_vm0, %v581_v48 }
  0x27   : > { %2866 = vmatprep.mubr.msk.f32.mxu1 %vm649_vm0, %v597_v49 }
  0x28   : > { %2835 = vmatmul.mubr.msk.f32.gmra.mrb[8].mxu0 %vm649_vm0, %v582_v50 }
  0x29   : > { %1257 = vrot.lane.b32.xlu0 %v3519_v60, %s3311_s25  ;;  %2867 = vmatmul.mubr.msk.f32.gmra.mrb[8].mxu1 %vm649_vm0, %v598_v51 }
  0x2a   : > { %1259 = vrot.lane.b32.xlu1 %v3524_v62, %s3311_s25  ;;  %2837 = vmatprep.mubr.msk.f32.mxu0 %vm649_vm0, %v583_v56 }
  0x2b   : > { %2869 = vmatprep.mubr.msk.f32.mxu1 %vm649_vm0, %v599_v57 }
  0x2c   : > { %2838 = vmatmul.mubr.msk.f32.gmra.mrb[10].mxu0 %vm649_vm0, %v584_v58 }
  0x2d   : > { %1261 = vrot.lane.b32.xlu0 %v3535_v4, %s3311_s25  ;;  %2870 = vmatmul.mubr.msk.f32.gmra.mrb[10].mxu1 %vm649_vm0, %v600_v59 }
  0x2e   : > { %1263 = vrot.lane.b32.xlu1 %v3540_v6, %s3311_s25  ;;  %2840 = vmatprep.mubr.msk.f32.mxu0 %vm649_vm0, %v585_v0 }
  0x2f   : > { %2872 = vmatprep.mubr.msk.f32.mxu1 %vm649_vm0, %v601_v1 }
  0x30   : > { %2841 = vmatmul.mubr.msk.f32.gmra.mrb[12].mxu0 %vm649_vm0, %v586_v2 }
  0x31   : > { %1265 = vrot.lane.b32.xlu0 %v3551_v12, %s3311_s25  ;;  %2873 = vmatmul.mubr.msk.f32.gmra.mrb[12].mxu1 %vm649_vm0, %v602_v3  ;;  %v3616_v3 = vld [vmem:[%s4737_s8] ss:$0 sm:$0xff] }
  0x32   : > { %1267 = vrot.lane.b32.xlu1 %v3556_v14, %s3311_s25  ;;  %2843 = vmatprep.mubr.msk.f32.mxu0 %vm649_vm0, %v587_v8 }
  0x33   : > { %2875 = vmatprep.mubr.msk.f32.mxu1 %vm649_vm0, %v603_v9 }
  0x34   : > { %2844 = vmatmul.mubr.msk.f32.gmra.mrb[14].mxu0 %vm649_vm0, %v588_v10 }
  0x35   : > { %1269 = vrot.lane.b32.xlu0 %v3563_v16, %s3311_s25  ;;  %2876 = vmatmul.mubr.msk.f32.gmra.mrb[14].mxu1 %vm649_vm0, %v604_v11 }
  0x36   : > { %1271 = vrot.lane.b32.xlu1 %v3568_v17, %s3311_s25 }
  0x8b   : > { %v1242_v18 = vpop.permute.xlu0 %1241 }
  0x8c   : > { %2886 = vmatprep.mubr.msk.f32.mxu0 %vm649_vm0, %v1242_v18  ;;  %v1246_v19 = vpop.permute.xlu1 %1245 }
  0x8f   : > { %v1244_v20 = vpop.permute.xlu0 %1243 }
  0x90   : > { %2887 = vmatmul.mubr.msk.f32.vlgmr.msra.gmra.mrb[16].mxu0 %vm649_vm0, %v1244_v20  ;;  %v1248_v21 = vpop.permute.xlu1 %1247 }
  0x91   : > { %2889 = vmatprep.mubr.msk.f32.mxu0 %vm649_vm0, %v1246_v19 }
  0x93   : > { %v1250_v22 = vpop.permute.xlu0 %1249 }
  0x94   : > { %2890 = vmatmul.mubr.msk.f32.gmra.mrb[18].mxu0 %vm649_vm0, %v1248_v21  ;;  %v1252_v23 = vpop.permute.xlu1 %1251 }
  0x95   : > { %2892 = vmatprep.mubr.msk.f32.mxu0 %vm649_vm0, %v1250_v22 }
  0x97   : > { %v1254_v24 = vpop.permute.xlu0 %1253 }
  0x98   : > { %2893 = vmatmul.mubr.msk.f32.gmra.mrb[20].mxu0 %vm649_vm0, %v1252_v23  ;;  %v1256_v25 = vpop.permute.xlu1 %1255 }
  0x99   : > { %2895 = vmatprep.mubr.msk.f32.mxu0 %vm649_vm0, %v1254_v24 }
  0x9b   : > { %v1258_v26 = vpop.permute.xlu0 %1257 }
  0x9c   : > { %2896 = vmatmul.mubr.msk.f32.gmra.mrb[22].mxu0 %vm649_vm0, %v1256_v25  ;;  %v1260_v27 = vpop.permute.xlu1 %1259 }
  0x9d   : > { %2898 = vmatprep.mubr.msk.f32.mxu0 %vm649_vm0, %v1258_v26 }
  0x9f   : > { %v1262_v28 = vpop.permute.xlu0 %1261 }
  0xa0   : > { %2899 = vmatmul.mubr.msk.f32.gmra.mrb[24].mxu0 %vm649_vm0, %v1260_v27  ;;  %v1264_v30 = vpop.permute.xlu1 %1263 }
  0xa1   : > { %2901 = vmatprep.mubr.msk.f32.mxu0 %vm649_vm0, %v1262_v28 }
  0xa3   : > { %v1266_v31 = vpop.permute.xlu0 %1265 }
  0xa4   : > { %2902 = vmatmul.mubr.msk.f32.gmra.mrb[26].mxu0 %vm649_vm0, %v1264_v30  ;;  %v1268_v32 = vpop.permute.xlu1 %1267 }
  0xa5   : > { %2904 = vmatprep.mubr.msk.f32.mxu0 %vm649_vm0, %v1266_v31 }
  0xa7   : > { %v1270_v33 = vpop.permute.xlu0 %1269 }
  0xa8   : > { %2905 = vmatmul.mubr.msk.f32.gmra.mrb[28].mxu0 %vm649_vm0, %v1268_v32  ;;  %v1272_v35 = vpop.permute.xlu1 %1271 }
  0xa9   : > { %2907 = vmatprep.mubr.msk.f32.mxu0 %vm649_vm0, %v1270_v33 }
  0xac   : > { %2908 = vmatmul.mubr.msk.f32.gmra.mrb[30].mxu0 %vm649_vm0, %v1272_v35 }
  0xeb   : > { %v2824_v40 = vpop.f32.mrb[0].mxu0 }
  0xec   : > { %v770_v41 = vadd.f32 %v2824_v40, %v3597_v37  ;;  %v2856_v42 = vpop.f32.mrb[0].mxu1  ;;  %v764_v43 = vpop.f32.mrb[1].mxu0 }
  0xed   : > { %v1061_v45 = vadd.f32 %v2856_v42, %v3602_v39  ;;  %v765_v47 = vadd.f32 %v3597_v37, %v764_v43  ;;  %v1055_v48 = vpop.f32.mrb[1].mxu1 }
  0xee   : > { %2983 = vtanh.f32 %v770_v41  ;;  %v1056_v49 = vadd.f32 %v3602_v39, %v1055_v48 }
  0xef   : > { %2985 = vtanh.f32 %v1061_v45  ;;  %v2827_v50 = vpop.f32.mrb[2].mxu0 }
  0xf0   : > { %2987 = vtanh.f32 %v765_v47  ;;  %v780_v51 = vadd.f32 %v2827_v50, %v3597_v37  ;;  %v2859_v53 = vpop.f32.mrb[2].mxu1  ;;  %v774_v55 = vpop.f32.mrb[3].mxu0 }
  0xf1   : > { %2989 = vtanh.f32 %v1056_v49  ;;  %v1071_v56 = vadd.f32 %v2859_v53, %v3602_v39  ;;  %v775_v57 = vadd.f32 %v3597_v37, %v774_v55  ;;  %v1065_v58 = vpop.f32.mrb[3].mxu1 }
  0xf2   : > { %2991 = vtanh.f32 %v780_v51  ;;  %v1066_v61 = vadd.f32 %v3602_v39, %v1065_v58 }
  0xf3   : > { %2993 = vtanh.f32 %v1071_v56  ;;  %v2830_v59 = vpop.f32.mrb[4].mxu0 }
  0xf4   : > { %2995 = vtanh.f32 %v775_v57  ;;  %v790_v63 = vadd.f32 %v2830_v59, %v3597_v37  ;;  %v2862_v0 = vpop.f32.mrb[4].mxu1  ;;  %v784_v1 = vpop.f32.mrb[5].mxu0 }
  0xf5   : > { %v1075_v2 = vpop.f32.mrb[5].mxu1  ;;  %v785_v5 = vadd.f32 %v3597_v37, %v784_v1  ;;  %v1081_v9 = vadd.f32 %v2862_v0, %v3602_v39 }
  0xf6   : > { %2997 = vtanh.f32 %v790_v63  ;;  %v1076_v26 = vadd.f32 %v3602_v39, %v1075_v2 }
  0xf7   : > { %v2833_v7 = vpop.f32.mrb[6].mxu0  ;;  %2999 = vtanh.f32 %v1066_v61 }
  0xf8   : > { %v2984_v8 = vpop.eup %2983  ;;  %v2865_v10 = vpop.f32.mrb[6].mxu1  ;;  %3001 = vtanh.f32 %v785_v5  ;;  %v800_v23 = vadd.f32 %v2833_v7, %v3597_v37 }
  0xf9   : > { %v794_v11 = vpop.f32.mrb[7].mxu0  ;;  %v2986_v13 = vpop.eup %2985  ;;  %v866_v15 = vmul.f32 %v2984_v8, %v3616_v3  ;;  %3003 = vtanh.f32 %v1081_v9  ;;  %v1091_v47 = vadd.f32 %v2865_v10, %v3602_v39 }
  0xfa   : > { %v1085_v18 = vpop.f32.mrb[7].mxu1  ;;  %v2988_v19 = vpop.eup %2987  ;;  %v1151_v20 = vmul.f32 %v2986_v13, %v3616_v3  ;;  %3005 = vtanh.f32 %v800_v23  ;;  %v795_v43 = vadd.f32 %v3597_v37, %v794_v11 }
  0xfb   : > { %v2990_v21 = vpop.eup %2989  ;;  %v885_v22 = vsel %vm881_vm1, %v866_v15, 0.0  ;;  %v2836_v24 = vpop.f32.mrb[8].mxu0  ;;  %v865_v33 = vmul.f32 %v2988_v19, %v3616_v3  ;;  %3007 = vtanh.f32 %v1076_v26  ;;  %v1086_v63 = vadd.f32 %v3602_v39, %v1085_v18 }
  0xfc   : > { %v2992_v25 = vpop.eup %2991  ;;  %886 = vadd.xlane.f32.xlu0 %v885_v22  ;;  %v1150_v27 = vmul.f32 %v2990_v21, %v3616_v3  ;;  %v2868_v28 = vpop.f32.mrb[8].mxu1  ;;  %v1169_v32 = vsel %vm881_vm1, %v1151_v20, 0.0  ;;  %3009 = vtanh.f32 %v795_v43  ;;  %v810_v59 = vadd.f32 %v2836_v24, %v3597_v37 }
  0xfd   : > { %v804_v30 = vpop.f32.mrb[9].mxu0  ;;  %v2994_v31 = vpop.eup %2993  ;;  %v868_v35 = vmul.f32 %v2992_v25, %v3616_v3  ;;  %v882_v55 = vsel %vm881_vm1, %v865_v33, 0.0  ;;  %3011 = vtanh.f32 %v1091_v47  ;;  %v1101_v18 = vadd.f32 %v2868_v28, %v3602_v39 }
  0xfe   : > { %v1095_v40 = vpop.f32.mrb[9].mxu1  ;;  %v2996_v41 = vpop.eup %2995  ;;  %v1166_v42 = vsel %vm881_vm1, %v1150_v27, 0.0  ;;  %v1153_v56 = vmul.f32 %v2994_v31, %v3616_v3  ;;  %3013 = vtanh.f32 %v810_v59  ;;  %v805_v13 = vadd.f32 %v3597_v37, %v804_v30 }
  0xff   : > { %1167 = vadd.xlane.f32.xlu1 %v1166_v42  ;;  %v2839_v45 = vpop.f32.mrb[10].mxu0  ;;  %v891_v48 = vsel %vm881_vm1, %v868_v35, 0.0  ;;  %v867_v49 = vmul.f32 %v2996_v41, %v3616_v3  ;;  %3015 = vtanh.f32 %v1086_v63  ;;  %v1096_v30 = vadd.f32 %v3602_v39, %v1095_v40 }
 0x100   : > { %1170 = vadd.xlane.f32.xlu0 %v1169_v32  ;;  %v2871_v50 = vpop.f32.mrb[10].mxu1  ;;  %v814_v51 = vpop.f32.mrb[11].mxu0  ;;  %v1175_v8 = vsel %vm881_vm1, %v1153_v56, 0.0  ;;  %3017 = vtanh.f32 %v805_v13  ;;  %v820_v28 = vadd.f32 %v2839_v45, %v3597_v37 }
 0x101   : > { %v2998_v53 = vpop.eup %2997  ;;  %v3636_v57 = vpop.f32.mrb[11].mxu1  ;;  %v888_v0 = vsel %vm881_vm1, %v867_v49, 0.0  ;;  %3019 = vtanh.f32 %v1101_v18  ;;  %v815_v43 = vadd.f32 %v3597_v37, %v814_v51  ;;  %v1111_v45 = vadd.f32 %v2871_v50, %v3602_v39 }
 0x102   : > { %v3000_v58 = vpop.eup %2999  ;;  %v870_v1 = vmul.f32 %v2998_v53, %v3616_v3  ;;  %3021 = vtanh.f32 %v820_v28  ;;  %v1106_v51 = vadd.f32 %v3602_v39, %v3636_v57 }
 0x103   : > { %892 = vadd.xlane.f32.xlu1 %v891_v48  ;;  %v2842_v61 = vpop.f32.mrb[12].mxu0  ;;  %v3002_v7 = vpop.eup %3001  ;;  %v1152_v9 = vmul.f32 %v3000_v58, %v3616_v3  ;;  %3023 = vtanh.f32 %v1096_v30 }
 0x104   : > { %883 = vadd.xlane.f32.xlu0 %v882_v55  ;;  %v3642_v2 = vpop.f32.mrb[12].mxu1  ;;  %v824_v5 = vpop.f32.mrb[13].mxu0  ;;  %v897_v19 = vsel %vm881_vm1, %v870_v1, 0.0  ;;  %v869_v20 = vmul.f32 %v3002_v7, %v3616_v3  ;;  %3025 = vtanh.f32 %v815_v43  ;;  %v830_v56 = vadd.f32 %v2842_v61, %v3597_v37 }
 0x105   : > { %v3646_v10 = vpop.f32.mrb[13].mxu1  ;;  %v3004_v11 = vpop.eup %3003  ;;  %v1172_v24 = vsel %vm881_vm1, %v1152_v9, 0.0  ;;  %3027 = vtanh.f32 %v1111_v45  ;;  %v825_v7 = vadd.f32 %v3597_v37, %v824_v5  ;;  %v1121_v61 = vadd.f32 %v3642_v2, %v3602_v39 }
 0x106   : > { %v3006_v23 = vpop.eup %3005  ;;  %v1155_v25 = vmul.f32 %v3004_v11, %v3616_v3  ;;  %v894_v31 = vsel %vm881_vm1, %v869_v20, 0.0  ;;  %3029 = vtanh.f32 %v830_v56  ;;  %v1116_v2 = vadd.f32 %v3602_v39, %v3646_v10 }
 0x107   : > { %889 = vadd.xlane.f32.xlu1 %v888_v0  ;;  %v3649_v15 = vpop.f32.mrb[14].mxu0  ;;  %v3008_v27 = vpop.eup %3007  ;;  %v872_v32 = vmul.f32 %v3006_v23, %v3616_v3  ;;  %3031 = vtanh.f32 %v1106_v51 }
 0x108   : > { %1176 = vadd.xlane.f32.xlu0 %v1175_v8  ;;  %v3654_v21 = vpop.f32.mrb[14].mxu1  ;;  %v3656_v22 = vpop.f32.mrb[15].mxu0  ;;  %v1181_v35 = vsel %vm881_vm1, %v1155_v25, 0.0  ;;  %v1154_v41 = vmul.f32 %v3008_v27, %v3616_v3  ;;  %3033 = vtanh.f32 %v825_v7  ;;  %v840_v5 = vadd.f32 %v3649_v15, %v3597_v37 }
 0x109   : > { %v3660_v26 = vpop.f32.mrb[15].mxu1  ;;  %v3010_v33 = vpop.eup %3009  ;;  %v903_v40 = vsel %vm881_vm1, %v872_v32, 0.0  ;;  %3035 = vtanh.f32 %v1121_v61  ;;  %v835_v15 = vadd.f32 %v3597_v37, %v3656_v22  ;;  %v1131_v10 = vadd.f32 %v3654_v21, %v3602_v39 }
 0x10a   : > { %v3012_v42 = vpop.eup %3011  ;;  %v871_v47 = vmul.f32 %v3010_v33, %v3616_v3  ;;  %v1178_v49 = vsel %vm881_vm1, %v1154_v41, 0.0  ;;  %3037 = vtanh.f32 %v840_v5  ;;  %v1126_v37 = vadd.f32 %v3602_v39, %v3660_v26 }
 0x10b   : > { %898 = vadd.xlane.f32.xlu1 %v897_v19  ;;  %v3014_v48 = vpop.eup %3013  ;;  %v1157_v53 = vmul.f32 %v3012_v42, %v3616_v3  ;;  %3039 = vtanh.f32 %v1116_v2 }
 0x10c   : > { %1173 = vadd.xlane.f32.xlu0 %v1172_v24  ;;  %v3016_v55 = vpop.eup %3015  ;;  %v900_v50 = vsel %vm881_vm1, %v871_v47, 0.0  ;;  %v874_v58 = vmul.f32 %v3014_v48, %v3616_v3  ;;  %3041 = vtanh.f32 %v835_v15 }
 0x10d   : > { %v3018_v59 = vpop.eup %3017  ;;  %v1187_v63 = vsel %vm881_vm1, %v1157_v53, 0.0  ;;  %v1156_v0 = vmul.f32 %v3016_v55, %v3616_v3  ;;  %3043 = vtanh.f32 %v1131_v10 }
 0x10e   : > { %v3020_v1 = vpop.eup %3019  ;;  %v909_v57 = vsel %vm881_vm1, %v874_v58, 0.0  ;;  %v873_v8 = vmul.f32 %v3018_v59, %v3616_v3  ;;  %3045 = vtanh.f32 %v1126_v37 }
 0x10f   : > { %895 = vadd.xlane.f32.xlu1 %v894_v31  ;;  %v3022_v9 = vpop.eup %3021  ;;  %v1184_v11 = vsel %vm881_vm1, %v1156_v0, 0.0  ;;  %v1159_v13 = vmul.f32 %v3020_v1, %v3616_v3 }
 0x110   : > { %1182 = vadd.xlane.f32.xlu0 %v1181_v35  ;;  %v3024_v18 = vpop.eup %3023  ;;  %v906_v19 = vsel %vm881_vm1, %v873_v8, 0.0  ;;  %v876_v20 = vmul.f32 %v3022_v9, %v3616_v3 }
 0x111   : > { %v3026_v23 = vpop.eup %3025  ;;  %v1193_v24 = vsel %vm881_vm1, %v1159_v13, 0.0  ;;  %v1158_v25 = vmul.f32 %v3024_v18, %v3616_v3 }
 0x112   : > { %v3028_v27 = vpop.eup %3027  ;;  %v915_v28 = vsel %vm881_vm1, %v876_v20, 0.0  ;;  %v875_v30 = vmul.f32 %v3026_v23, %v3616_v3 }
 0x113   : > { %904 = vadd.xlane.f32.xlu1 %v903_v40  ;;  %v3030_v31 = vpop.eup %3029  ;;  %v1190_v32 = vsel %vm881_vm1, %v1158_v25, 0.0  ;;  %v1161_v33 = vmul.f32 %v3028_v27, %v3616_v3 }
 0x114   : > { %1179 = vadd.xlane.f32.xlu0 %v1178_v49  ;;  %v3032_v35 = vpop.eup %3031  ;;  %v912_v22 = vsel %vm881_vm1, %v875_v30, 0.0  ;;  %v878_v21 = vmul.f32 %v3030_v31, %v3616_v3 }
 0x115   : > { %v3034_v41 = vpop.eup %3033  ;;  %v1199_v42 = vsel %vm881_vm1, %v1161_v33, 0.0  ;;  %v1160_v43 = vmul.f32 %v3032_v35, %v3616_v3 }
 0x116   : > { %v3036_v45 = vpop.eup %3035  ;;  %v921_v40 = vsel %vm881_vm1, %v878_v21, 0.0  ;;  %v877_v47 = vmul.f32 %v3034_v41, %v3616_v3 }
 0x117   : > { %901 = vadd.xlane.f32.xlu1 %v900_v50  ;;  %v3038_v48 = vpop.eup %3037  ;;  %v1196_v39 = vsel %vm881_vm1, %v1160_v43, 0.0  ;;  %v1163_v26 = vmul.f32 %v3036_v45, %v3616_v3 }
 0x118   : > { %1188 = vadd.xlane.f32.xlu0 %v1187_v63  ;;  %v3040_v49 = vpop.eup %3039  ;;  %v918_v53 = vsel %vm881_vm1, %v877_v47, 0.0  ;;  %v880_v55 = vmul.f32 %v3038_v48, %v3616_v3 }
 0x119   : > { %v3042_v56 = vpop.eup %3041  ;;  %v1205_v51 = vsel %vm881_vm1, %v1163_v26, 0.0  ;;  %v1162_v50 = vmul.f32 %v3040_v49, %v3616_v3 }
 0x11a   : > { %v3044_v58 = vpop.eup %3043  ;;  %v927_v59 = vsel %vm881_vm1, %v880_v55, 0.0  ;;  %v879_v63 = vmul.f32 %v3042_v56, %v3616_v3 }
 0x11b   : > { %910 = vadd.xlane.f32.xlu1 %v909_v57  ;;  %v1202_v0 = vsel %vm881_vm1, %v1162_v50, 0.0  ;;  %v1165_v1 = vmul.f32 %v3044_v58, %v3616_v3  ;;  %v3046_v7 = vpop.eup %3045 }
 0x11c   : > { %1185 = vadd.xlane.f32.xlu0 %v1184_v11  ;;  %v924_v61 = vsel %vm881_vm1, %v879_v63, 0.0  ;;  %v1164_v8 = vmul.f32 %v3046_v7, %v3616_v3  ;;  %v3729_v11 = vld [vmem:[%s4736_s7] ss:$0 sm:$0xff] }
 0x11d   : > { %v1211_v57 = vsel %vm881_vm1, %v1165_v1, 0.0 }
 0x11e   : > { %v1208_v9 = vsel %vm881_vm1, %v1164_v8, 0.0 }
 0x11f   : > { %907 = vadd.xlane.f32.xlu1 %v906_v19 }
 0x120   : > { %1194 = vadd.xlane.f32.xlu0 %v1193_v24 }
 0x123   : > { %916 = vadd.xlane.f32.xlu1 %v915_v28 }
 0x124   : > { %1191 = vadd.xlane.f32.xlu0 %v1190_v32 }
 0x127   : > { %913 = vadd.xlane.f32.xlu1 %v912_v22 }
 0x128   : > { %1200 = vadd.xlane.f32.xlu0 %v1199_v42 }
 0x12b   : > { %922 = vadd.xlane.f32.xlu1 %v921_v40 }
 0x12c   : > { %1197 = vadd.xlane.f32.xlu0 %v1196_v39 }
 0x12f   : > { %919 = vadd.xlane.f32.xlu1 %v918_v53 }
 0x130   : > { %1206 = vadd.xlane.f32.xlu0 %v1205_v51 }
 0x133   : > { %928 = vadd.xlane.f32.xlu1 %v927_v59 }
 0x134   : > { %1203 = vadd.xlane.f32.xlu0 %v1202_v0 }
 0x137   : > { %925 = vadd.xlane.f32.xlu1 %v924_v61 }
 0x138   : > { %1212 = vadd.xlane.f32.xlu0 %v1211_v57 }
 0x13c   : > { %1209 = vadd.xlane.f32.xlu0 %v1208_v9 }
 0x163   : > { %v2888_v13 = vpop.f32.mrb[16].mxu0 }
 0x164   : > { %v1377_v18 = vadd.f32 %v2888_v13, %v3729_v11  ;;  %v1371_v5 = vpop.f32.mrb[17].mxu0 }
 0x165   : > { %v1372_v2 = vadd.f32 %v3729_v11, %v1371_v5 }
 0x166   : > { %3047 = vtanh.f32 %v1377_v18 }
 0x167   : > { %3049 = vtanh.f32 %v1372_v2  ;;  %v2891_v19 = vpop.f32.mrb[18].mxu0 }
 0x168   : > { %v1387_v20 = vadd.f32 %v2891_v19, %v3729_v11  ;;  %v1381_v23 = vpop.f32.mrb[19].mxu0 }
 0x169   : > { %v1382_v24 = vadd.f32 %v3729_v11, %v1381_v23 }
 0x16a   : > { %3051 = vtanh.f32 %v1387_v20 }
 0x16b   : > { %3053 = vtanh.f32 %v1382_v24  ;;  %v2894_v25 = vpop.f32.mrb[20].mxu0 }
 0x16c   : > { %v1397_v27 = vadd.f32 %v2894_v25, %v3729_v11  ;;  %v1391_v15 = vpop.f32.mrb[21].mxu0 }
 0x16d   : > { %v1392_v10 = vadd.f32 %v3729_v11, %v1391_v15 }
 0x16e   : > { %3055 = vtanh.f32 %v1397_v27 }
 0x16f   : > { %3057 = vtanh.f32 %v1392_v10  ;;  %v2897_v28 = vpop.f32.mrb[22].mxu0 }
 0x170   : > { %v3048_v30 = vpop.eup %3047  ;;  %v1407_v31 = vadd.f32 %v2897_v28, %v3729_v11  ;;  %v1401_v32 = vpop.f32.mrb[23].mxu0 }
 0x171   : > { %v3050_v33 = vpop.eup %3049  ;;  %v1402_v35 = vadd.f32 %v3729_v11, %v1401_v32  ;;  %v1467_v37 = vmul.f32 %v3048_v30, %v3616_v3 }
 0x172   : > { %3059 = vtanh.f32 %v1407_v31  ;;  %v1466_v22 = vmul.f32 %v3050_v33, %v3616_v3 }
 0x173   : > { %3061 = vtanh.f32 %v1402_v35  ;;  %v2900_v21 = vpop.f32.mrb[24].mxu0  ;;  %v1485_v41 = vsel %vm881_vm1, %v1467_v37, 0.0 }
 0x174   : > { %v3052_v42 = vpop.eup %3051  ;;  %v1417_v43 = vadd.f32 %v2900_v21, %v3729_v11  ;;  %1486 = vadd.xlane.f32.xlu0 %v1485_v41  ;;  %v1411_v45 = vpop.f32.mrb[25].mxu0  ;;  %v1482_v40 = vsel %vm881_vm1, %v1466_v22, 0.0 }
 0x175   : > { %v3054_v47 = vpop.eup %3053  ;;  %v1412_v48 = vadd.f32 %v3729_v11, %v1411_v45  ;;  %1483 = vadd.xlane.f32.xlu1 %v1482_v40  ;;  %v1469_v39 = vmul.f32 %v3052_v42, %v3616_v3 }
 0x176   : > { %3063 = vtanh.f32 %v1417_v43  ;;  %v1468_v26 = vmul.f32 %v3054_v47, %v3616_v3 }
 0x177   : > { %3065 = vtanh.f32 %v1412_v48  ;;  %v2903_v49 = vpop.f32.mrb[26].mxu0  ;;  %v1491_v53 = vsel %vm881_vm1, %v1469_v39, 0.0 }
 0x178   : > { %v3056_v55 = vpop.eup %3055  ;;  %v1427_v56 = vadd.f32 %v2903_v49, %v3729_v11  ;;  %1492 = vadd.xlane.f32.xlu0 %v1491_v53  ;;  %v1421_v51 = vpop.f32.mrb[27].mxu0  ;;  %v1488_v50 = vsel %vm881_vm1, %v1468_v26, 0.0 }
 0x179   : > { %v3058_v58 = vpop.eup %3057  ;;  %v1422_v59 = vadd.f32 %v3729_v11, %v1421_v51  ;;  %1489 = vadd.xlane.f32.xlu1 %v1488_v50  ;;  %v1471_v63 = vmul.f32 %v3056_v55, %v3616_v3 }
 0x17a   : > { %3067 = vtanh.f32 %v1427_v56  ;;  %v1470_v0 = vmul.f32 %v3058_v58, %v3616_v3 }
 0x17b   : > { %3069 = vtanh.f32 %v1422_v59  ;;  %v2906_v1 = vpop.f32.mrb[28].mxu0  ;;  %v1497_v7 = vsel %vm881_vm1, %v1471_v63, 0.0 }
 0x17c   : > { %v3060_v61 = vpop.eup %3059  ;;  %v1437_v57 = vadd.f32 %v2906_v1, %v3729_v11  ;;  %1498 = vadd.xlane.f32.xlu0 %v1497_v7  ;;  %v1431_v8 = vpop.f32.mrb[29].mxu0  ;;  %v1494_v9 = vsel %vm881_vm1, %v1470_v0, 0.0 }
 0x17d   : > { %v3062_v13 = vpop.eup %3061  ;;  %v1432_v18 = vadd.f32 %v3729_v11, %v1431_v8  ;;  %1495 = vadd.xlane.f32.xlu1 %v1494_v9  ;;  %v1473_v5 = vmul.f32 %v3060_v61, %v3616_v3 }
 0x17e   : > { %3071 = vtanh.f32 %v1437_v57  ;;  %v1472_v2 = vmul.f32 %v3062_v13, %v3616_v3 }
 0x17f   : > { %3073 = vtanh.f32 %v1432_v18  ;;  %v2909_v19 = vpop.f32.mrb[30].mxu0  ;;  %v1503_v20 = vsel %vm881_vm1, %v1473_v5, 0.0 }
 0x180   : > { %v3064_v23 = vpop.eup %3063  ;;  %v1447_v24 = vadd.f32 %v2909_v19, %v3729_v11  ;;  %1504 = vadd.xlane.f32.xlu0 %v1503_v20  ;;  %v1441_v25 = vpop.f32.mrb[31].mxu0  ;;  %v1500_v27 = vsel %vm881_vm1, %v1472_v2, 0.0 }
 0x181   : > { %v3066_v15 = vpop.eup %3065  ;;  %v1442_v10 = vadd.f32 %v3729_v11, %v1441_v25  ;;  %1501 = vadd.xlane.f32.xlu1 %v1500_v27  ;;  %v1475_v28 = vmul.f32 %v3064_v23, %v3616_v3  ;;  %v2027_v25 = vld [vmem:[%s4738_s9] sm:$0xff]  ;;  %v2028_v27 = vld [vmem:[%s4738_s9 + $0x8] sm:$0xff] }
 0x182   : > { %3075 = vtanh.f32 %v1447_v24  ;;  %v1474_v30 = vmul.f32 %v3066_v15, %v3616_v3  ;;  %v2029_v15 = vld [vmem:[%s4738_s9 + $0x10] sm:$0xff] }
 0x183   : > { %3077 = vtanh.f32 %v1442_v10  ;;  %v1509_v31 = vsel %vm881_vm1, %v1475_v28, 0.0  ;;  %v2966_v10 = vpack.c.bf16 %v2028_v27, %v2027_v25  ;;  %v2030_v28 = vld [vmem:[%s4738_s9 + $0x18] sm:$0xff] }
 0x184   : > { %v3068_v32 = vpop.eup %3067  ;;  %1510 = vadd.xlane.f32.xlu0 %v1509_v31  ;;  %v1506_v33 = vsel %vm881_vm1, %v1474_v30, 0.0  ;;  %v2970_v30 = vpack.c.bf16 %v2030_v28, %v2029_v15 }
 0x185   : > { %v3070_v35 = vpop.eup %3069  ;;  %1507 = vadd.xlane.f32.xlu1 %v1506_v33  ;;  %v1477_v37 = vmul.f32 %v3068_v32, %v3616_v3  ;;  %2967 = vmatprep.subr.bf16.mxu1 %v2966_v10 }
 0x186   : > { %v1476_v22 = vmul.f32 %v3070_v35, %v3616_v3  ;;  %2969 = vmatpush3.bf16.msra.mxu1 %v2966_v10 }
 0x187   : > { %v1515_v11 = vsel %vm881_vm1, %v1477_v37, 0.0  ;;  %2971 = vmatprep.subr.bf16.mxu1 %v2970_v30 }
 0x188   : > { %v3072_v21 = vpop.eup %3071  ;;  %1516 = vadd.xlane.f32.xlu0 %v1515_v11  ;;  %v1512_v41 = vsel %vm881_vm1, %v1476_v22, 0.0 }
 0x189   : > { %v3074_v42 = vpop.eup %3073  ;;  %1513 = vadd.xlane.f32.xlu1 %v1512_v41  ;;  %v1479_v43 = vmul.f32 %v3072_v21, %v3616_v3  ;;  %v3779_v56 = vpop.xlane.xlu0 %886 }
 0x18a   : > { %v1478_v45 = vmul.f32 %v3074_v42, %v3616_v3  ;;  %2973 = vmatpush3.bf16.msra.mxu1 %v2970_v30 }
 0x18b   : > { %v1521_v40 = vsel %vm881_vm1, %v1479_v43, 0.0 }
 0x18c   : > { %v3076_v47 = vpop.eup %3075  ;;  %1522 = vadd.xlane.f32.xlu0 %v1521_v40  ;;  %v1518_v48 = vsel %vm881_vm1, %v1478_v45, 0.0  ;;  %v3785_v58 = vpop.xlane.xlu1 %1167 }
 0x18d   : > { %v3078_v39 = vpop.eup %3077  ;;  %1519 = vadd.xlane.f32.xlu1 %v1518_v48  ;;  %v1481_v26 = vmul.f32 %v3076_v47, %v3616_v3  ;;  %v3781_v51 = vpop.xlane.xlu0 %1170 }
 0x18e   : > { %v1480_v49 = vmul.f32 %v3078_v39, %v3616_v3  ;;  %v1531_v43 = vmax.f32 %v3779_v56, %v3781_v51 }
 0x18f   : > { %v1527_v53 = vsel %vm881_vm1, %v1481_v26, 0.0 }
 0x190   : > { %1528 = vadd.xlane.f32.xlu0 %v1527_v53  ;;  %v1524_v55 = vsel %vm881_vm1, %v1480_v49, 0.0  ;;  %v3789_v63 = vpop.xlane.xlu1 %892 }
 0x191   : > { %1525 = vadd.xlane.f32.xlu1 %v1524_v55  ;;  %v3783_v50 = vpop.xlane.xlu0 %883 }
 0x192   : > { %v1530_v45 = vmax.f32 %v3783_v50, %v3785_v58 }
 0x194   : > { %v3793_v3 = vpop.xlane.xlu1 %889 }
 0x195   : > { %v3787_v59 = vpop.xlane.xlu0 %1176 }
 0x196   : > { %v1533_v47 = vmax.f32 %v3789_v63, %v3787_v59 }
 0x198   : > { %v3797_v7 = vpop.xlane.xlu1 %898 }
 0x199   : > { %v3791_v0 = vpop.xlane.xlu0 %1173 }
 0x19a   : > { %v1532_v48 = vmax.f32 %v3793_v3, %v3791_v0 }
 0x19c   : > { %v3801_v57 = vpop.xlane.xlu1 %895 }
 0x19d   : > { %v3795_v1 = vpop.xlane.xlu0 %1182 }
 0x19e   : > { %v1535_v39 = vmax.f32 %v3797_v7, %v3795_v1 }
 0x1a0   : > { %v3805_v9 = vpop.xlane.xlu1 %904 }
 0x1a1   : > { %v3799_v61 = vpop.xlane.xlu0 %1179 }
 0x1a2   : > { %v1534_v53 = vmax.f32 %v3801_v57, %v3799_v61 }
 0x1a4   : > { %v3809_v18 = vpop.xlane.xlu1 %901 }
 0x1a5   : > { %v3803_v8 = vpop.xlane.xlu0 %1188 }
 0x1a8   : > { %v3813_v2 = vpop.xlane.xlu1 %910 }
 0x1a9   : > { %v3807_v13 = vpop.xlane.xlu0 %1185 }
 0x1ac   : > { %v3817_v20 = vpop.xlane.xlu1 %907 }
 0x1ad   : > { %v3811_v5 = vpop.xlane.xlu0 %1194 }
 0x1b0   : > { %v3821_v24 = vpop.xlane.xlu1 %916 }
 0x1b1   : > { %v3815_v19 = vpop.xlane.xlu0 %1191 }
 0x1b4   : > { %v3837_v32 = vpop.xlane.xlu1 %913 }
 0x1b5   : > { %v3819_v23 = vpop.xlane.xlu0 %1200 }
 0x1b8   : > { %v3841_v35 = vpop.xlane.xlu1 %922 }
 0x1b9   : > { %v3835_v31 = vpop.xlane.xlu0 %1197 }
 0x1bc   : > { %v3845_v22 = vpop.xlane.xlu1 %919 }
 0x1bd   : > { %v3839_v33 = vpop.xlane.xlu0 %1206 }
 0x1c0   : > { %v3849_v21 = vpop.xlane.xlu1 %928 }
 0x1c1   : > { %v3843_v37 = vpop.xlane.xlu0 %1203 }
 0x1c4   : > { %v3853_v42 = vpop.xlane.xlu1 %925 }
 0x1c5   : > { %v3847_v11 = vpop.xlane.xlu0 %1212 }
 0x1c9   : > { %v3851_v41 = vpop.xlane.xlu0 %1209 }
 0x201   : > { %v1487_v40 = vpop.xlane.xlu0 %1486 }
 0x202   : > { %v1547_v26 = vmax.f32 %v1531_v43, %v1487_v40  ;;  %v1484_v49 = vpop.xlane.xlu1 %1483  ;;  %v1538_v43 = vmax.f32 %v3817_v20, %v3815_v19 }
 0x203   : > { %v1546_v27 = vmax.f32 %v1530_v45, %v1484_v49 }
 0x204   : > { %v1563_v10 = vsub.f32 %v3779_v56, %v1547_v26  ;;  %v1611_v28 = vsub.f32 %v3781_v51, %v1547_v26  ;;  %v1659_v30 = vsub.f32 %v1487_v40, %v1547_v26 }
 0x205   : > { %v1562_v16 = vsub.f32 %v3783_v50, %v1546_v27  ;;  %v1610_v17 = vsub.f32 %v3785_v58, %v1546_v27  ;;  %v1658_v55 = vsub.f32 %v1484_v49, %v1546_v27  ;;  %v1493_v12 = vpop.xlane.xlu0 %1492 }
 0x206   : > { %v1580_v14 = vmul.f32 1.442695, %v1563_v10  ;;  %v1628_v25 = vmul.f32 1.442695, %v1611_v28  ;;  %v1676_v45 = vmul.f32 1.442695, %v1659_v30  ;;  %v1549_v4 = vmax.f32 %v1533_v47, %v1493_v12  ;;  %v1490_v6 = vpop.xlane.xlu1 %1489 }
 0x207   : > { %v1578_v15 = vmul.f32 1.442695, %v1562_v16  ;;  %v1626_v60 = vmul.f32 1.442695, %v1610_v17  ;;  %v1674_v56 = vmul.f32 1.442695, %v1658_v55  ;;  %v1548_v62 = vmax.f32 %v1532_v48, %v1490_v6 }
 0x208   : > { %3079 = vpow2.f32 %v1580_v14  ;;  %v1565_v51 = vsub.f32 %v3789_v63, %v1549_v4  ;;  %v1613_v40 = vsub.f32 %v3787_v59, %v1549_v4  ;;  %v1661_v26 = vsub.f32 %v1493_v12, %v1549_v4 }
 0x209   : > { %3081 = vpow2.f32 %v1628_v25  ;;  %v1564_v50 = vsub.f32 %v3793_v3, %v1548_v62  ;;  %v1612_v58 = vsub.f32 %v3791_v0, %v1548_v62  ;;  %v1660_v49 = vsub.f32 %v1490_v6, %v1548_v62  ;;  %v1499_v27 = vpop.xlane.xlu0 %1498 }
 0x20a   : > { %v1541_v47 = vmax.f32 %v3821_v24, %v3819_v23  ;;  %v1540_v16 = vmax.f32 %v3837_v32, %v3835_v31  ;;  %3083 = vpow2.f32 %v1676_v45  ;;  %v1584_v14 = vmul.f32 1.442695, %v1565_v51  ;;  %v1496_v17 = vpop.xlane.xlu1 %1495 }
 0x20b   : > { %v1543_v59 = vmax.f32 %v3841_v35, %v3839_v33  ;;  %v1542_v4 = vmax.f32 %v3845_v22, %v3843_v37  ;;  %3085 = vpow2.f32 %v1578_v15  ;;  %v1632_v12 = vmul.f32 1.442695, %v1613_v40 }
 0x20c   : > { %3087 = vpow2.f32 %v1626_v60  ;;  %v1680_v62 = vmul.f32 1.442695, %v1661_v26  ;;  %v1551_v6 = vmax.f32 %v1535_v39, %v1499_v27  ;;  %v1550_v63 = vmax.f32 %v1534_v53, %v1496_v17 }
 0x20d   : > { %3089 = vpow2.f32 %v1674_v56  ;;  %v1582_v0 = vmul.f32 1.442695, %v1564_v50  ;;  %v1630_v3 = vmul.f32 1.442695, %v1612_v58  ;;  %v1678_v48 = vmul.f32 1.442695, %v1660_v49  ;;  %v1505_v55 = vpop.xlane.xlu0 %1504 }
 0x20e   : > { %3091 = vpow2.f32 %v1584_v14  ;;  %v1567_v25 = vsub.f32 %v3797_v7, %v1551_v6  ;;  %v1615_v10 = vsub.f32 %v3795_v1, %v1551_v6  ;;  %v1663_v28 = vsub.f32 %v1499_v27, %v1551_v6  ;;  %v1502_v30 = vpop.xlane.xlu1 %1501 }
 0x20f   : > { %3093 = vpow2.f32 %v1632_v12  ;;  %v1566_v15 = vsub.f32 %v3801_v57, %v1550_v63  ;;  %v1614_v60 = vsub.f32 %v3799_v61, %v1550_v63  ;;  %v1662_v45 = vsub.f32 %v1496_v17, %v1550_v63 }
 0x210   : > { %v1545_v39 = vmax.f32 %v3849_v21, %v3847_v11  ;;  %3095 = vpow2.f32 %v1680_v62  ;;  %v1588_v56 = vmul.f32 1.442695, %v1567_v25  ;;  %v1636_v7 = vmul.f32 1.442695, %v1615_v10 }
 0x211   : > { %3097 = vpow2.f32 %v1582_v0  ;;  %v1684_v51 = vmul.f32 1.442695, %v1663_v28  ;;  %v1586_v1 = vmul.f32 1.442695, %v1566_v15  ;;  %v1511_v40 = vpop.xlane.xlu0 %1510  ;;  %v1634_v57 = vmul.f32 1.442695, %v1614_v60 }
 0x212   : > { %v3899_v26 = vpop.eup %3079  ;;  %3099 = vpow2.f32 %v1630_v3  ;;  %v4762_v61 = vmax.f32 %v3805_v9, %v3803_v8  ;;  %v4763_v58 = vmax.f32 %v3809_v18, %v3807_v13  ;;  %v1508_v27 = vpop.xlane.xlu1 %1507  ;;  %v1682_v17 = vmul.f32 1.442695, %v1662_v45 }
 0x213   : > { %v3907_v14 = vpop.eup %3081  ;;  %3101 = vpow2.f32 %v1678_v48  ;;  %v4764_v12 = vmax.f32 %v3813_v2, %v3811_v5  ;;  %v1554_v6 = vmax.f32 %v1538_v43, %v1508_v27 }
 0x214   : > { %v1553_v50 = vmax.f32 %v4762_v61, %v1505_v55  ;;  %v1552_v49 = vmax.f32 %v4763_v58, %v1502_v30  ;;  %v3915_v63 = vpop.eup %3083  ;;  %v1707_v0 = vadd.f32 %v3907_v14, %v3899_v26  ;;  %3103 = vpow2.f32 %v1588_v56 }
 0x215   : > { %v1555_v62 = vmax.f32 %v4764_v12, %v1511_v40  ;;  %v3921_v48 = vpop.eup %3085  ;;  %3105 = vpow2.f32 %v1636_v7  ;;  %v3925_v60 = vpop.xlane.xlu0 %1516 }
 0x216   : > { %v1569_v3 = vsub.f32 %v3805_v9, %v1553_v50  ;;  %v1617_v25 = vsub.f32 %v3803_v8, %v1553_v50  ;;  %v1665_v10 = vsub.f32 %v1505_v55, %v1553_v50  ;;  %v1568_v28 = vsub.f32 %v3809_v18, %v1552_v49  ;;  %v3927_v43 = vpop.eup %3087 }
 0x217   : > { %v1616_v15 = vsub.f32 %v3807_v13, %v1552_v49  ;;  %v1723_v45 = vadd.f32 %v3915_v63, %v1707_v0  ;;  %3107 = vpow2.f32 %v1684_v51  ;;  %v3930_v9 = vpop.eup %3089  ;;  %v1706_v8 = vadd.f32 %v3927_v43, %v3921_v48 }
 0x218   : > { %v1592_v56 = vmul.f32 1.442695, %v1569_v3  ;;  %v1640_v61 = vmul.f32 1.442695, %v1617_v25  ;;  %3109 = vpow2.f32 %v1586_v1  ;;  %v1688_v55 = vmul.f32 1.442695, %v1665_v10  ;;  %v3934_v18 = vpop.eup %3091 }
 0x219   : > { %v1590_v7 = vmul.f32 1.442695, %v1568_v28  ;;  %3111 = vrcp.f32 %v1723_v45  ;;  %v1638_v13 = vmul.f32 1.442695, %v1616_v15  ;;  %v1664_v50 = vsub.f32 %v1502_v30, %v1552_v49  ;;  %v3937_v12 = vpop.eup %3093  ;;  %v1514_v45 = vpop.xlane.xlu1 %1513 }
 0x21a   : > { %v1571_v58 = vsub.f32 %v3813_v2, %v1555_v62  ;;  %v1722_v51 = vadd.f32 %v3930_v9, %v1706_v8  ;;  %3113 = vpow2.f32 %v1634_v57  ;;  %v1619_v0 = vsub.f32 %v3811_v5, %v1555_v62  ;;  %v3941_v25 = vpop.eup %3095  ;;  %v3948_v57 = vpop.xlane.xlu0 %1522 }
 0x21b   : > { %v1667_v3 = vsub.f32 %v1511_v40, %v1555_v62  ;;  %v1709_v1 = vadd.f32 %v3937_v12, %v3934_v18  ;;  %3115 = vpow2.f32 %v1682_v17  ;;  %v1686_v10 = vmul.f32 1.442695, %v1664_v50  ;;  %v3945_v15 = vpop.eup %3097 }
 0x21c   : > { %v1596_v28 = vmul.f32 1.442695, %v1571_v58  ;;  %3117 = vrcp.f32 %v1722_v51  ;;  %v1644_v2 = vmul.f32 1.442695, %v1619_v0  ;;  %v1570_v49 = vsub.f32 %v3817_v20, %v1554_v6  ;;  %v3950_v5 = vpop.eup %3099 }
 0x21d   : > { %v1692_v30 = vmul.f32 1.442695, %v1667_v3  ;;  %v1725_v40 = vadd.f32 %v3941_v25, %v1709_v1  ;;  %3119 = vpow2.f32 %v1592_v56  ;;  %v1618_v62 = vsub.f32 %v3815_v19, %v1554_v6  ;;  %v3954_v8 = vpop.eup %3101 }
 0x21e   : > { %v1666_v17 = vsub.f32 %v1508_v27, %v1554_v6  ;;  %v1708_v50 = vadd.f32 %v3950_v5, %v3945_v15  ;;  %3121 = vpow2.f32 %v1640_v61  ;;  %v1594_v58 = vmul.f32 1.442695, %v1570_v49  ;;  %v3962_v51 = vpop.eup %3103 }
 0x21f   : > { %v1557_v20 = vmax.f32 %v1541_v47, %v3925_v60  ;;  %3123 = vrcp.f32 %v1725_v40  ;;  %v3964_v0 = vmul.f32 1.442695, %v1618_v62  ;;  %v1556_v19 = vmax.f32 %v1540_v16, %v1514_v45  ;;  %v3971_v27 = vpop.eup %3105 }
 0x220   : > { %v3966_v56 = vmul.f32 1.442695, %v1666_v17  ;;  %v1724_v6 = vadd.f32 %v3954_v8, %v1708_v50  ;;  %3125 = vpow2.f32 %v1688_v55  ;;  %v1711_v1 = vadd.f32 %v3971_v27, %v3962_v51  ;;  %v1529_v17 = vpop.xlane.xlu0 %1528 }
 0x221   : > { %v1573_v61 = vsub.f32 %v3821_v24, %v1557_v20  ;;  %v1621_v47 = vsub.f32 %v3819_v23, %v1557_v20  ;;  %v3976_v3 = vpop.eup %3107  ;;  %3127 = vpow2.f32 %v1590_v7  ;;  %v1669_v49 = vsub.f32 %v3925_v60, %v1557_v20  ;;  %v1520_v23 = vpop.xlane.xlu1 %1519 }
 0x222   : > { %v1572_v40 = vsub.f32 %v3837_v32, %v1556_v19  ;;  %v3982_v16 = vpop.eup %3109  ;;  %3129 = vrcp.f32 %v1724_v6  ;;  %v1620_v24 = vsub.f32 %v3835_v31, %v1556_v19  ;;  %v1727_v53 = vadd.f32 %v3976_v3, %v1711_v1 }
 0x223   : > { %v3984_v62 = vmul.f32 1.442695, %v1573_v61  ;;  %v3986_v55 = vmul.f32 1.442695, %v1621_v47  ;;  %v3989_v50 = vpop.eup %3111  ;;  %3131 = vpow2.f32 %v1638_v13  ;;  %v3992_v7 = vmul.f32 1.442695, %v1669_v49 }
 0x224   : > { %v3994_v60 = vmul.f32 1.442695, %v1572_v40  ;;  %v3996_v32 = vpop.eup %3113  ;;  %3133 = vpow2.f32 %v1686_v10  ;;  %v3998_v20 = vmul.f32 1.442695, %v1620_v24  ;;  %v1668_v6 = vsub.f32 %v1514_v45, %v1556_v19 }
 0x225   : > { %v1559_v31 = vmax.f32 %v1543_v59, %v3948_v57  ;;  %v4004_v61 = vpop.eup %3115  ;;  %3135 = vrcp.f32 %v1727_v53  ;;  %v1710_v13 = vadd.f32 %v3996_v32, %v3982_v16  ;;  %v1558_v47 = vmax.f32 %v1542_v4, %v1520_v23 }
 0x226   : > { %v1561_v10 = vmax.f32 %v1545_v39, %v1529_v17  ;;  %v4014_v45 = vpop.eup %3117  ;;  %3137 = vpow2.f32 %v1596_v28  ;;  %v4016_v19 = vmul.f32 1.442695, %v1668_v6 }
 0x227   : > { %v1575_v59 = vsub.f32 %v3841_v35, %v1559_v31  ;;  %v1623_v53 = vsub.f32 %v3839_v33, %v1559_v31  ;;  %v4020_v1 = vpop.eup %3119  ;;  %v1726_v49 = vadd.f32 %v4004_v61, %v1710_v13  ;;  %3139 = vpow2.f32 %v1644_v2 }
 0x228   : > { %v1671_v4 = vsub.f32 %v3948_v57, %v1559_v31  ;;  %v1574_v40 = vsub.f32 %v3845_v22, %v1558_v47  ;;  %v4025_v24 = vpop.eup %3121  ;;  %3141 = vpow2.f32 %v1692_v30  ;;  %v1622_v35 = vsub.f32 %v3843_v37, %v1558_v47  ;;  %v1526_v22 = vpop.xlane.xlu1 %1525 }
 0x229   : > { %4765 = vst [vmem:[#allocation10_spill] sm:$0xff] %v4025_v24  ;;  %v4027_v39 = vmul.f32 1.442695, %v1575_v59  ;;  %v4029_v28 = vmul.f32 1.442695, %v1623_v53  ;;  %v4032_v6 = vpop.eup %3123  ;;  %3143 = vrcp.f32 %v1726_v49  ;;  %v1713_v33 = vadd.f32 %v4025_v24, %v4020_v1 }
 0x22a   : > { %v4036_v2 = vmul.f32 1.442695, %v1671_v4  ;;  %v4038_v57 = vmul.f32 1.442695, %v1574_v40  ;;  %v4040_v31 = vpop.eup %3125  ;;  %3145 = vpow2.f32 %v1594_v58  ;;  %v4042_v30 = vmul.f32 1.442695, %v1622_v35 }
 0x22b   : > { %v1670_v13 = vsub.f32 %v1520_v23, %v1558_v47  ;;  %v1577_v37 = vsub.f32 %v3849_v21, %v1561_v10  ;;  %v4045_v59 = vpop.eup %3127  ;;  %v1729_v53 = vadd.f32 %v4040_v31, %v1713_v33  ;;  %3147 = vpow2.f32 %v3964_v0 }
 0x22c   : > { %v1625_v49 = vsub.f32 %v3847_v11, %v1561_v10  ;;  %v1673_v4 = vsub.f32 %v1529_v17, %v1561_v10  ;;  %v4050_v40 = vpop.eup %3129  ;;  %3149 = vpow2.f32 %v3966_v56  ;;  %v4766_v21 = vmax.f32 %v3853_v42, %v3851_v41 }
 0x22d   : > { %v4053_v24 = vmul.f32 1.442695, %v1670_v13  ;;  %v4055_v58 = vmul.f32 1.442695, %v1577_v37  ;;  %v4066_v11 = vpop.eup %3131  ;;  %3151 = vrcp.f32 %v1729_v53  ;;  %v1803_v17 = vmul.f32 %v3989_v50, %v3915_v63 }
 0x22e   : > { %v1560_v23 = vmax.f32 %v4766_v21, %v1526_v22  ;;  %v4068_v0 = vmul.f32 1.442695, %v1625_v49  ;;  %v4070_v56 = vmul.f32 1.442695, %v1673_v4  ;;  %v4074_v47 = vpop.eup %3133  ;;  %v1712_v10 = vadd.f32 %v4066_v11, %v4045_v59 }
 0x22f   : > { %3153 = vpow2.f32 %v3984_v62  ;;  %v4081_v13 = vpop.eup %3135  ;;  %v1867_v53 = vmul.f32 %v1803_v17, %v3471_v36  ;;  %2012 = vst.msk [vmem:[%s4064_s23 + $0x8] sm:$0xff] %vm1978_vm2, %v1803_v17  ;;  %v1802_v63 = vmul.f32 %v4014_v45, %v3930_v9 }
 0x230   : > { %v1576_v35 = vsub.f32 %v3853_v42, %v1560_v23  ;;  %v1624_v33 = vsub.f32 %v3851_v41, %v1560_v23  ;;  %3155 = vpow2.f32 %v3986_v55  ;;  %v1672_v37 = vsub.f32 %v1526_v22, %v1560_v23  ;;  %v4089_v49 = vpop.eup %3137 }
 0x231   : > { %v1728_v62 = vadd.f32 %v4074_v47, %v1712_v10  ;;  %3157 = vpow2.f32 %v3992_v7  ;;  %v4097_v55 = vpop.eup %3139  ;;  %1900 = vrot.lane.b32.xlu0 %v1867_v53, %s3311_s25  ;;  %v1866_v9 = vmul.f32 %v1802_v63, %v3461_v29  ;;  %2011 = vst.msk [vmem:[%s4064_s23] sm:$0xff] %vm1978_vm2, %v1802_v63  ;;  %v1804_v7 = vmul.f32 %v4050_v40, %v3954_v8 }
 0x232   : > { %v4093_v41 = vmul.f32 1.442695, %v1576_v35  ;;  %v4095_v42 = vmul.f32 1.442695, %v1624_v33  ;;  %3159 = vpow2.f32 %v3994_v60  ;;  %v4100_v36 = vmul.f32 1.442695, %v1672_v37  ;;  %v4108_v22 = vpop.eup %3141 }
 0x233   : > { %3161 = vrcp.f32 %v1728_v62  ;;  %v1715_v4 = vadd.f32 %v4097_v55, %v4089_v49  ;;  %v1805_v60 = vmul.f32 %v4032_v6, %v3941_v25  ;;  %v1807_v21 = vmul.f32 %v4081_v13, %v3976_v3  ;;  %v4128_v29 = vpop.eup %3143  ;;  %1898 = vrot.lane.b32.xlu1 %v1866_v9, %s3311_s25  ;;  %2013 = vst.msk [vmem:[%s4064_s23 + $0x10] sm:$0xff] %vm1978_vm2, %v1804_v7  ;;  %v3273_v62 = vld [vmem:[%s3436_s16] sm:$0xff] }
 0x234   : > { %3163 = vpow2.f32 %v3998_v20  ;;  %v1868_v25 = vmul.f32 %v1804_v7, %v3466_v34  ;;  %v1771_v8 = vmul.f32 %v3989_v50, %v3899_v26  ;;  %v1787_v3 = vmul.f32 %v3989_v50, %v3907_v14  ;;  %v4139_v23 = vpop.eup %3145  ;;  %v3271_v50 = vld [vmem:[%s3436_s16 + $0x8] sm:$0xff]  ;;  %v3275_v7 = vld [vmem:[%s3436_s16 + $0x10] sm:$0xff] }
 0x235   : > { %v1731_v20 = vadd.f32 %v4108_v22, %v1715_v4  ;;  %3165 = vpow2.f32 %v4016_v19  ;;  %v1806_v34 = vmul.f32 %v4128_v29, %v4004_v61  ;;  %v1869_v17 = vmul.f32 %v1805_v60, %v3476_v38  ;;  %2014 = vst.msk [vmem:[%s4064_s23 + $0x18] sm:$0xff] %vm1978_vm2, %v1805_v60  ;;  %2016 = vst.msk [vmem:[%s4064_s23 + $0x28] sm:$0xff] %vm1978_vm2, %v1807_v21  ;;  %v4150_v26 = vpop.eup %3147  ;;  %v3272_v19 = vld [vmem:[%s3442_s21 + $0x8] sm:$0xff] }
 0x236   : > { %3167 = vpow2.f32 %v4027_v39  ;;  %v4154_v14 = vmul.f32 %v1807_v21, %v3492_v46  ;;  %v1819_v10 = vmul.f32 %v3271_v50, %v1771_v8  ;;  %v1835_v35 = vmul.f32 %v3272_v19, %v1787_v3  ;;  %1980 = vst.msk [vmem:[%s4120_s27 + $0x8] sm:$0xff] %vm1978_vm2, %v1771_v8  ;;  %1996 = vst.msk [vmem:[%s4126_s17 + $0x8] sm:$0xff] %vm1978_vm2, %v1787_v3  ;;  %v4162_v38 = vpop.eup %3149  ;;  %v3278_v50 = vld [vmem:[%s3442_s21 + $0x18] sm:$0xff] }
 0x237   : > { %3169 = vrcp.f32 %v1731_v20  ;;  %v1714_v61 = vadd.f32 %v4150_v26, %v4139_v23  ;;  %v1870_v39 = vmul.f32 %v1806_v34, %v3487_v44  ;;  %2015 = vst.msk [vmem:[%s4064_s23 + $0x20] sm:$0xff] %vm1978_vm2, %v1806_v34  ;;  %v1770_v46 = vmul.f32 %v4014_v45, %v3921_v48  ;;  %v4171_v33 = vpop.eup %3151  ;;  %1902 = vrot.lane.b32.xlu1 %v1868_v25, %s3311_s25  ;;  %v3276_v25 = vld [vmem:[%s3442_s21 + $0x10] sm:$0xff] }
 0x238   : > { %3171 = vpow2.f32 %v4029_v28  ;;  %v4175_v37 = vadd.f32 %v1835_v35, %v1819_v10  ;;  %v1786_v53 = vmul.f32 %v4014_v45, %v3927_v43  ;;  %v1772_v44 = vmul.f32 %v4050_v40, %v3945_v15  ;;  %v3274_v15 = vld [vmem:[%s3442_s21] sm:$0xff] }
 0x239   : > { %v4181_v63 = vpop.eup %3153  ;;  %v1730_v48 = vadd.f32 %v4162_v38, %v1714_v61  ;;  %3173 = vpow2.f32 %v4036_v2  ;;  %1906 = vrot.lane.b32.xlu0 %v1870_v39, %s3311_s25  ;;  %v1809_v28 = vmul.f32 %v4171_v33, %v4040_v31  ;;  %v1818_v9 = vmul.f32 %v3273_v62, %v1770_v46  ;;  %1979 = vst.msk [vmem:[%s4120_s27] sm:$0xff] %vm1978_vm2, %v1770_v46 }
 0x23a   : > { %v4191_v43 = vpop.eup %3155  ;;  %3175 = vpow2.f32 %v4038_v57  ;;  %v1834_v45 = vmul.f32 %v3274_v15, %v1786_v53  ;;  %1995 = vst.msk [vmem:[%s4126_s17] sm:$0xff] %vm1978_vm2, %v1786_v53  ;;  %v1788_v2 = vmul.f32 %v4050_v40, %v3950_v5  ;;  %v1820_v31 = vmul.f32 %v3275_v7, %v1772_v44  ;;  %1981 = vst.msk [vmem:[%s4120_s27 + $0x10] sm:$0xff] %vm1978_vm2, %v1772_v44 }
 0x23b   : > { %v4202_v4 = vpop.eup %3157  ;;  %3177 = vrcp.f32 %v1730_v48  ;;  %v1717_v57 = vadd.f32 %v4191_v43, %v4181_v63  ;;  %v1873_v60 = vmul.f32 %v1809_v28, %v3508_v54  ;;  %2018 = vst.msk [vmem:[%s4064_s23 + $0x38] sm:$0xff] %vm1978_vm2, %v1809_v28  ;;  %v1773_v5 = vmul.f32 %v4032_v6, %v3934_v18  ;;  %1904 = vrot.lane.b32.xlu1 %v1869_v17, %s3311_s25 }
 0x23c   : > { %v4211_v40 = vpop.eup %3159  ;;  %3179 = vpow2.f32 %v4042_v30  ;;  %v4215_v21 = vadd.f32 %v1834_v45, %v1818_v9  ;;  %v1836_v8 = vmul.f32 %v3276_v25, %v1788_v2  ;;  %1997 = vst.msk [vmem:[%s4126_s17 + $0x10] sm:$0xff] %vm1978_vm2, %v1788_v2  ;;  %v1789_v54 = vmul.f32 %v4032_v6, %v3937_v12  ;;  %v3277_v30 = vld [vmem:[%s3436_s16 + $0x18] sm:$0xff]  ;;  %v3283_v45 = vld [vmem:[%s3436_s16 + $0x30] sm:$0xff] }
 0x23d   : > { %v3162_v3 = vpop.eup %3161  ;;  %v1733_v18 = vadd.f32 %v4202_v4, %v1717_v57  ;;  %3181 = vpow2.f32 %v4053_v24  ;;  %v1821_v20 = vmul.f32 %v3277_v30, %v1773_v5  ;;  %1982 = vst.msk [vmem:[%s4120_s27 + $0x18] sm:$0xff] %vm1978_vm2, %v1773_v5  ;;  %v1774_v34 = vmul.f32 %v4128_v29, %v3982_v16  ;;  %v3284_v5 = vld [vmem:[%s3442_s21 + $0x30] sm:$0xff] }
 0x23e   : > { %v4229_v17 = vpop.eup %3163  ;;  %3183 = vpow2.f32 %v4055_v58  ;;  %v1808_v12 = vmul.f32 %v3162_v3, %v4074_v47  ;;  %v4233_v6 = vadd.f32 %v1836_v8, %v1820_v31  ;;  %v1837_v24 = vmul.f32 %v3278_v50, %v1789_v54  ;;  %1998 = vst.msk [vmem:[%s4126_s17 + $0x18] sm:$0xff] %vm1978_vm2, %v1789_v54  ;;  %v3279_v58 = vld [vmem:[%s3436_s16 + $0x20] sm:$0xff] }
 0x23f   : > { %v4238_v10 = vpop.eup %3165  ;;  %3185 = vrcp.f32 %v1733_v18  ;;  %v1716_v16 = vadd.f32 %v4229_v17, %v4211_v40  ;;  %v1790_v19 = vmul.f32 %v4128_v29, %v3996_v32  ;;  %v1822_v35 = vmul.f32 %v3279_v58, %v1774_v34  ;;  %1983 = vst.msk [vmem:[%s4120_s27 + $0x20] sm:$0xff] %vm1978_vm2, %v1774_v34  ;;  %1908 = vrot.lane.b32.xlu1 %v4154_v14, %s3311_s25  ;;  %v4768_v8 = vld [vmem:[#allocation10_spill] sm:$0xff] }
 0x240   : > { %v4247_v47 = vpop.eup %3167  ;;  %3187 = vpow2.f32 %v4068_v0  ;;  %v1872_v61 = vmul.f32 %v1808_v12, %v3503_v52  ;;  %2017 = vst.msk [vmem:[%s4064_s23 + $0x30] sm:$0xff] %vm1978_vm2, %v1808_v12  ;;  %v4255_v39 = vadd.f32 %v1837_v24, %v1821_v20  ;;  %v1775_v32 = vmul.f32 %v4081_v13, %v3962_v51  ;;  %v3280_v0 = vld [vmem:[%s3442_s21 + $0x20] sm:$0xff]  ;;  %v3286_v12 = vld [vmem:[%s3442_s21 + $0x38] sm:$0xff] }
 0x241   : > { %v4259_v29 = vpop.eup %3169  ;;  %v1732_v46 = vadd.f32 %v4238_v10, %v1716_v16  ;;  %3189 = vpow2.f32 %v4070_v56  ;;  %v1838_v52 = vmul.f32 %v3280_v0, %v1790_v19  ;;  %1999 = vst.msk [vmem:[%s4126_s17 + $0x20] sm:$0xff] %vm1978_vm2, %v1790_v19  ;;  %v1791_v14 = vmul.f32 %v4081_v13, %v3971_v27  ;;  %v3281_v56 = vld [vmem:[%s3436_s16 + $0x28] sm:$0xff]  ;;  %v4769_v20 = vld [vmem:[#allocation2_spill] sm:$0xff] }
 0x242   : > { %v4268_v53 = vpop.eup %3171  ;;  %3191 = vpow2.f32 %v4093_v41  ;;  %1910 = vrot.lane.b32.xlu0 %v1872_v61, %s3311_s25  ;;  %v1811_v51 = vmul.f32 %v4259_v29, %v4108_v22  ;;  %v1823_v44 = vmul.f32 %v3281_v56, %v1775_v32  ;;  %1984 = vst.msk [vmem:[%s4120_s27 + $0x28] sm:$0xff] %vm1978_vm2, %v1775_v32  ;;  %v1776_v48 = vmul.f32 %v3162_v3, %v4045_v59  ;;  %v3282_v41 = vld [vmem:[%s3442_s21 + $0x28] sm:$0xff]  ;;  %v3287_v24 = vld [vmem:[%s3436_s16 + $0x40] sm:$0xff] }
 0x243   : > { %v4278_v28 = vpop.eup %3173  ;;  %3193 = vrcp.f32 %v1732_v46  ;;  %v1719_v27 = vadd.f32 %v4268_v53, %v4247_v47  ;;  %v4282_v13 = vadd.f32 %v1838_v52, %v1822_v35  ;;  %v1839_v62 = vmul.f32 %v3282_v41, %v1791_v14  ;;  %2000 = vst.msk [vmem:[%s4126_s17 + $0x28] sm:$0xff] %vm1978_vm2, %v1791_v14  ;;  %1912 = vrot.lane.b32.xlu1 %v1873_v60, %s3311_s25  ;;  %v4767_v59 = vld [vmem:[#allocation3_spill] sm:$0xff]  ;;  %v3288_v58 = vld [vmem:[%s3442_s21 + $0x40] sm:$0xff]  ;;  %v3291_v41 = vld [vmem:[%s3436_s16 + $0x58] sm:$0xff] }
 0x244   : > { %v4287_v22 = vpop.eup %3175  ;;  %3195 = vpow2.f32 %v4095_v42  ;;  %v1875_v9 = vmul.f32 %v1811_v51, %v4767_v59  ;;  %2020 = vst.msk [vmem:[%s4064_s23 + $0x48] sm:$0xff] %vm1978_vm2, %v1811_v51  ;;  %v1792_v15 = vmul.f32 %v3162_v3, %v4066_v11  ;;  %v1824_v2 = vmul.f32 %v3283_v45, %v1776_v48  ;;  %1985 = vst.msk [vmem:[%s4120_s27 + $0x30] sm:$0xff] %vm1978_vm2, %v1776_v48  ;;  %v3289_v56 = vld [vmem:[%s3436_s16 + $0x48] sm:$0xff]  ;;  %v3292_v59 = vld [vmem:[%s3442_s21 + $0x58] sm:$0xff] }
 0x245   : > { %v3178_v7 = vpop.eup %3177  ;;  %v1735_v31 = vadd.f32 %v4278_v28, %v1719_v27  ;;  %3197 = vpow2.f32 %v4100_v36  ;;  %v4300_v42 = vadd.f32 %v1839_v62, %v1823_v44  ;;  %v1777_v57 = vmul.f32 %v4171_v33, %v4020_v1  ;;  %v3290_v48 = vld [vmem:[%s3442_s21 + $0x48] sm:$0xff] }
 0x246   : > { %v4304_v60 = vpop.eup %3179  ;;  %v1810_v11 = vmul.f32 %v3178_v7, %v4162_v38  ;;  %v1840_v25 = vmul.f32 %v3284_v5, %v1792_v15  ;;  %2001 = vst.msk [vmem:[%s4126_s17 + $0x30] sm:$0xff] %vm1978_vm2, %v1792_v15  ;;  %v1793_v54 = vmul.f32 %v4171_v33, %v4768_v8  ;;  %v1778_v36 = vmul.f32 %v3178_v7, %v4139_v23  ;;  %v3285_v38 = vld [vmem:[%s3436_s16 + $0x38] sm:$0xff] }
 0x247   : > { %v4313_v3 = vpop.eup %3181  ;;  %3199 = vrcp.f32 %v1735_v31  ;;  %v1718_v1 = vadd.f32 %v4304_v60, %v4287_v22  ;;  %v1825_v18 = vmul.f32 %v3285_v38, %v1777_v57  ;;  %1986 = vst.msk [vmem:[%s4120_s27 + $0x38] sm:$0xff] %vm1978_vm2, %v1777_v57  ;;  %v1794_v30 = vmul.f32 %v3178_v7, %v4150_v26  ;;  %1916 = vrot.lane.b32.xlu1 %v1875_v9, %s3311_s25  ;;  %v3294_v38 = vld [vmem:[%s3442_s21 + $0x50] sm:$0xff] }
 0x248   : > { %v4321_v33 = vpop.eup %3183  ;;  %v1874_v23 = vmul.f32 %v1810_v11, %v4769_v20  ;;  %2019 = vst.msk [vmem:[%s4064_s23 + $0x40] sm:$0xff] %vm1978_vm2, %v1810_v11  ;;  %v4327_v34 = vadd.f32 %v1840_v25, %v1824_v2  ;;  %v1841_v50 = vmul.f32 %v3286_v12, %v1793_v54  ;;  %2002 = vst.msk [vmem:[%s4126_s17 + $0x38] sm:$0xff] %vm1978_vm2, %v1793_v54  ;;  %v4771_v54 = vld [vmem:[#allocation4_spill] sm:$0xff] }
 0x249   : > { %v1826_v16 = vmul.f32 %v3287_v24, %v1778_v36  ;;  %1987 = vst.msk [vmem:[%s4120_s27 + $0x40] sm:$0xff] %vm1978_vm2, %v1778_v36  ;;  %v3186_v26 = vpop.eup %3185  ;;  %v1734_v19 = vadd.f32 %v4313_v3, %v1718_v1  ;;  %v1842_v35 = vmul.f32 %v3288_v58, %v1794_v30  ;;  %2003 = vst.msk [vmem:[%s4126_s17 + $0x40] sm:$0xff] %vm1978_vm2, %v1794_v30 }
 0x24a   : > { %v1779_v61 = vmul.f32 %v4259_v29, %v4089_v49  ;;  %v1795_v32 = vmul.f32 %v4259_v29, %v4097_v55  ;;  %v4343_v46 = vpop.eup %3187  ;;  %1914 = vrot.lane.b32.xlu0 %v1874_v23, %s3311_s25  ;;  %v1813_v0 = vmul.f32 %v3186_v26, %v4202_v4  ;;  %v4347_v52 = vadd.f32 %v1841_v50, %v1825_v18  ;;  %v4772_v50 = vld [vmem:[#allocation7_spill] sm:$0xff] }
 0x24b   : > { %v1781_v14 = vmul.f32 %v3186_v26, %v4181_v63  ;;  %v1797_v51 = vmul.f32 %v3186_v26, %v4191_v43  ;;  %v4351_v49 = vpop.eup %3189  ;;  %3201 = vrcp.f32 %v1734_v19  ;;  %v1721_v55 = vadd.f32 %v4343_v46, %v4321_v33  ;;  %v4770_v43 = vld [vmem:[#allocation5_spill] sm:$0xff]  ;;  %v3296_v19 = vld [vmem:[%s3442_s21 + $0x68] sm:$0xff] }
 0x24c   : > { %v4355_v29 = vadd.f32 %v1842_v35, %v1826_v16  ;;  %v1827_v4 = vmul.f32 %v3289_v56, %v1779_v61  ;;  %1988 = vst.msk [vmem:[%s4120_s27 + $0x48] sm:$0xff] %vm1978_vm2, %v1779_v61  ;;  %2004 = vst.msk [vmem:[%s4126_s17 + $0x48] sm:$0xff] %vm1978_vm2, %v1795_v32  ;;  %v4362_v63 = vpop.eup %3191  ;;  %v1877_v44 = vmul.f32 %v1813_v0, %v4770_v43  ;;  %v3295_v16 = vld [vmem:[%s3436_s16 + $0x68] sm:$0xff] }
 0x24d   : > { %2022 = vst.msk [vmem:[%s4064_s23 + $0x58] sm:$0xff] %vm1978_vm2, %v1813_v0  ;;  %v1843_v27 = vmul.f32 %v3290_v48, %v1795_v32  ;;  %v1829_v62 = vmul.f32 %v3291_v41, %v1781_v14  ;;  %v1845_v9 = vmul.f32 %v3292_v59, %v1797_v51  ;;  %1990 = vst.msk [vmem:[%s4120_s27 + $0x58] sm:$0xff] %vm1978_vm2, %v1781_v14  ;;  %v3194_v15 = vpop.eup %3193  ;;  %v4773_v32 = vld [vmem:[#allocation6_spill] sm:$0xff] }
 0x24e   : > { %2006 = vst.msk [vmem:[%s4126_s17 + $0x58] sm:$0xff] %vm1978_vm2, %v1797_v51  ;;  %v1737_v45 = vadd.f32 %v4351_v49, %v1721_v55  ;;  %v4375_v2 = vpop.eup %3195  ;;  %v1812_v7 = vmul.f32 %v3194_v15, %v4238_v10  ;;  %1920 = vrot.lane.b32.xlu1 %v1877_v44, %s3311_s25  ;;  %v1780_v57 = vmul.f32 %v3194_v15, %v4211_v40  ;;  %v3293_v10 = vld [vmem:[%s3436_s16 + $0x50] sm:$0xff]  ;;  %v3297_v14 = vld [vmem:[%s3436_s16 + $0x60] sm:$0xff]  ;;  %v4774_v44 = vld [vmem:[#allocation9_spill] sm:$0xff] }
 0x24f   : > { %v4379_v31 = vadd.f32 %v1843_v27, %v1827_v4  ;;  %v1796_v11 = vmul.f32 %v3194_v15, %v4229_v17  ;;  %v3198_v5 = vpop.eup %3197  ;;  %v1720_v25 = vadd.f32 %v4375_v2, %v4362_v63  ;;  %v4385_v8 = vadd.f32 %v1845_v9, %v1829_v62  ;;  %v3298_v55 = vld [vmem:[%s3442_s21 + $0x60] sm:$0xff]  ;;  %v3299_v27 = vld [vmem:[%s3436_s16 + $0x78] sm:$0xff] }
 0x250   : > { %3203 = vrcp.f32 %v1737_v45  ;;  %v1876_v36 = vmul.f32 %v1812_v7, %v4771_v54  ;;  %2021 = vst.msk [vmem:[%s4064_s23 + $0x50] sm:$0xff] %vm1978_vm2, %v1812_v7  ;;  %v1828_v1 = vmul.f32 %v3293_v10, %v1780_v57  ;;  %1989 = vst.msk [vmem:[%s4120_s27 + $0x50] sm:$0xff] %vm1978_vm2, %v1780_v57  ;;  %v3300_v62 = vld [vmem:[%s3442_s21 + $0x78] sm:$0xff]  ;;  %v4775_v45 = vld [vmem:[#allocation8_spill] sm:$0xff] }
 0x251   : > { %v1844_v40 = vmul.f32 %v3294_v38, %v1796_v11  ;;  %2005 = vst.msk [vmem:[%s4126_s17 + $0x50] sm:$0xff] %vm1978_vm2, %v1796_v11  ;;  %v3200_v17 = vpop.eup %3199  ;;  %v1736_v18 = vadd.f32 %v3198_v5, %v1720_v25  ;;  %v3301_v57 = vld [vmem:[%s3436_s16 + $0x70] sm:$0xff] }
 0x252   : > { %1918 = vrot.lane.b32.xlu0 %v1876_v36, %s3311_s25  ;;  %v1815_v30 = vmul.f32 %v3200_v17, %v4278_v28  ;;  %v1783_v23 = vmul.f32 %v3200_v17, %v4247_v47  ;;  %v1799_v12 = vmul.f32 %v3200_v17, %v4268_v53  ;;  %v3302_v25 = vld [vmem:[%s3442_s21 + $0x70] sm:$0xff] }
 0x253   : > { %v4398_v20 = vadd.f32 %v1844_v40, %v1828_v1  ;;  %3205 = vrcp.f32 %v1736_v18 }
 0x254   : > { %v1879_v24 = vmul.f32 %v1815_v30, %v4772_v50  ;;  %2024 = vst.msk [vmem:[%s4064_s23 + $0x68] sm:$0xff] %vm1978_vm2, %v1815_v30  ;;  %v1831_v26 = vmul.f32 %v3295_v16, %v1783_v23  ;;  %v1847_v58 = vmul.f32 %v3296_v19, %v1799_v12  ;;  %1992 = vst.msk [vmem:[%s4120_s27 + $0x68] sm:$0xff] %vm1978_vm2, %v1783_v23 }
 0x255   : > { %2008 = vst.msk [vmem:[%s4126_s17 + $0x68] sm:$0xff] %vm1978_vm2, %v1799_v12  ;;  %v3202_v47 = vpop.eup %3201 }
 0x256   : > { %v1814_v53 = vmul.f32 %v3202_v47, %v4313_v3  ;;  %1924 = vrot.lane.b32.xlu1 %v1879_v24, %s3311_s25  ;;  %v1782_v28 = vmul.f32 %v3202_v47, %v4287_v22  ;;  %v1798_v35 = vmul.f32 %v3202_v47, %v4304_v60  ;;  %v4415_v61 = vadd.f32 %v1847_v58, %v1831_v26 }
 0x258   : > { %v1878_v0 = vmul.f32 %v1814_v53, %v4773_v32  ;;  %2023 = vst.msk [vmem:[%s4064_s23 + $0x60] sm:$0xff] %vm1978_vm2, %v1814_v53  ;;  %v1830_v51 = vmul.f32 %v3297_v14, %v1782_v28  ;;  %v1846_v3 = vmul.f32 %v3298_v55, %v1798_v35  ;;  %1991 = vst.msk [vmem:[%s4120_s27 + $0x60] sm:$0xff] %vm1978_vm2, %v1782_v28  ;;  %v2715_v28 = vld [vmem:[%s4739_s10] ss:$0 sm:$0xff] }
 0x259   : > { %2007 = vst.msk [vmem:[%s4126_s17 + $0x60] sm:$0xff] %vm1978_vm2, %v1798_v35 }
 0x25a   : > { %v3204_v22 = vpop.eup %3203  ;;  %1922 = vrot.lane.b32.xlu0 %v1878_v0, %s3311_s25  ;;  %v4428_v56 = vadd.f32 %v1846_v3, %v1830_v51 }
 0x25b   : > { %v1817_v60 = vmul.f32 %v3204_v22, %v4351_v49  ;;  %v1785_v4 = vmul.f32 %v3204_v22, %v4321_v33  ;;  %v1801_v43 = vmul.f32 %v3204_v22, %v4343_v46 }
 0x25d   : > { %v1881_v48 = vmul.f32 %v1817_v60, %v4774_v44  ;;  %2026 = vst.msk [vmem:[%s4064_s23 + $0x78] sm:$0xff] %vm1978_vm2, %v1817_v60  ;;  %v1833_v41 = vmul.f32 %v3299_v27, %v1785_v4  ;;  %v1849_v59 = vmul.f32 %v3300_v62, %v1801_v43  ;;  %1994 = vst.msk [vmem:[%s4120_s27 + $0x78] sm:$0xff] %vm1978_vm2, %v1785_v4  ;;  %v3206_v33 = vpop.eup %3205 }
 0x25e   : > { %2010 = vst.msk [vmem:[%s4126_s17 + $0x78] sm:$0xff] %vm1978_vm2, %v1801_v43  ;;  %v1816_v46 = vmul.f32 %v3206_v33, %v3198_v5  ;;  %v1784_v49 = vmul.f32 %v3206_v33, %v4362_v63  ;;  %v1800_v9 = vmul.f32 %v3206_v33, %v4375_v2 }
 0x25f   : > { %1928 = vrot.lane.b32.xlu1 %v1881_v48, %s3311_s25  ;;  %v4444_v15 = vadd.f32 %v1849_v59, %v1833_v41 }
 0x260   : > { %v1880_v7 = vmul.f32 %v1816_v46, %v4775_v45  ;;  %2025 = vst.msk [vmem:[%s4064_s23 + $0x70] sm:$0xff] %vm1978_vm2, %v1816_v46  ;;  %v1832_v11 = vmul.f32 %v3301_v57, %v1784_v49  ;;  %v1848_v54 = vmul.f32 %v3302_v25, %v1800_v9  ;;  %1993 = vst.msk [vmem:[%s4120_s27 + $0x70] sm:$0xff] %vm1978_vm2, %v1784_v49 }
 0x261   : > { %2009 = vst.msk [vmem:[%s4126_s17 + $0x70] sm:$0xff] %vm1978_vm2, %v1800_v9 }
 0x262   : > { %1926 = vrot.lane.b32.xlu0 %v1880_v7, %s3311_s25  ;;  %v1864_v5 = vadd.f32 %v1848_v54, %v1832_v11 }
 0x2a3   : > { %v1901_v63 = vpop.permute.xlu0 %1900 }
 0x2a4   : > { %v1947_v2 = vadd.f32 %v1901_v63, %v4175_v37 }
 0x2a5   : > { %v1899_v36 = vpop.permute.xlu1 %1898 }
 0x2a6   : > { %1963 = vst.msk [vmem:[%s4460_s22 + $0x8] sm:$0xff] %vm649_vm0, %v1947_v2  ;;  %v1946_v10 = vadd.f32 %v1899_v36, %v4215_v21 }
 0x2a8   : > { %1962 = vst.msk [vmem:[%s4460_s22] sm:$0xff] %vm649_vm0, %v1946_v10  ;;  %2918 = vmatprep.mubr.msk.f32.mxu1 %vm649_vm0, %v1946_v10 }
 0x2a9   : > { %v1903_v1 = vpop.permute.xlu1 %1902  ;;  %2919 = vmatmul.mubr.msk.f32.vlgmr.msra.gmra.mrb[16].mxu1 %vm649_vm0, %v1947_v2 }
 0x2aa   : > { %v1948_v38 = vadd.f32 %v1903_v1, %v4233_v6 }
 0x2ab   : > { %v1907_v40 = vpop.permute.xlu0 %1906 }
 0x2ac   : > { %v1950_v17 = vadd.f32 %v1907_v40, %v4282_v13  ;;  %1964 = vst.msk [vmem:[%s4460_s22 + $0x10] sm:$0xff] %vm649_vm0, %v1948_v38  ;;  %2921 = vmatprep.mubr.msk.f32.mxu1 %vm649_vm0, %v1948_v38 }
 0x2ad   : > { %v1905_v37 = vpop.permute.xlu1 %1904 }
 0x2ae   : > { %1966 = vst.msk [vmem:[%s4460_s22 + $0x20] sm:$0xff] %vm649_vm0, %v1950_v17  ;;  %v1949_v21 = vadd.f32 %v1905_v37, %v4255_v39 }
 0x2b0   : > { %1965 = vst.msk [vmem:[%s4460_s22 + $0x18] sm:$0xff] %vm649_vm0, %v1949_v21  ;;  %2922 = vmatmul.mubr.msk.f32.gmra.mrb[18].mxu1 %vm649_vm0, %v1949_v21 }
 0x2b1   : > { %v1909_v18 = vpop.permute.xlu1 %1908  ;;  %2924 = vmatprep.mubr.msk.f32.mxu1 %vm649_vm0, %v1950_v17 }
 0x2b2   : > { %v1951_v6 = vadd.f32 %v1909_v18, %v4300_v42 }
 0x2b4   : > { %v1911_v13 = vpop.permute.xlu0 %1910  ;;  %1967 = vst.msk [vmem:[%s4460_s22 + $0x28] sm:$0xff] %vm649_vm0, %v1951_v6  ;;  %2925 = vmatmul.mubr.msk.f32.gmra.mrb[20].mxu1 %vm649_vm0, %v1951_v6 }
 0x2b5   : > { %v1952_v30 = vadd.f32 %v1911_v13, %v4327_v34  ;;  %v1913_v23 = vpop.permute.xlu1 %1912 }
 0x2b6   : > { %v1953_v39 = vadd.f32 %v1913_v23, %v4347_v52 }
 0x2b7   : > { %1968 = vst.msk [vmem:[%s4460_s22 + $0x30] sm:$0xff] %vm649_vm0, %v1952_v30  ;;  %2927 = vmatprep.mubr.msk.f32.mxu1 %vm649_vm0, %v1952_v30 }
 0x2b8   : > { %1969 = vst.msk [vmem:[%s4460_s22 + $0x38] sm:$0xff] %vm649_vm0, %v1953_v39  ;;  %2928 = vmatmul.mubr.msk.f32.gmra.mrb[22].mxu1 %vm649_vm0, %v1953_v39 }
 0x2b9   : > { %v1917_v42 = vpop.permute.xlu1 %1916 }
 0x2ba   : > { %v1955_v12 = vadd.f32 %v1917_v42, %v4379_v31 }
 0x2bc   : > { %v1915_v50 = vpop.permute.xlu0 %1914  ;;  %1971 = vst.msk [vmem:[%s4460_s22 + $0x48] sm:$0xff] %vm649_vm0, %v1955_v12 }
 0x2bd   : > { %v1954_v34 = vadd.f32 %v1915_v50, %v4355_v29 }
 0x2bf   : > { %1970 = vst.msk [vmem:[%s4460_s22 + $0x40] sm:$0xff] %vm649_vm0, %v1954_v34  ;;  %2930 = vmatprep.mubr.msk.f32.mxu1 %vm649_vm0, %v1954_v34 }
 0x2c0   : > { %2931 = vmatmul.mubr.msk.f32.gmra.mrb[24].mxu1 %vm649_vm0, %v1955_v12  ;;  %v1921_v52 = vpop.permute.xlu1 %1920 }
 0x2c1   : > { %v1957_v24 = vadd.f32 %v1921_v52, %v4385_v8 }
 0x2c3   : > { %1973 = vst.msk [vmem:[%s4460_s22 + $0x58] sm:$0xff] %vm649_vm0, %v1957_v24 }
 0x2c4   : > { %v1919_v31 = vpop.permute.xlu0 %1918 }
 0x2c5   : > { %v1956_v16 = vadd.f32 %v1919_v31, %v4398_v20 }
 0x2c7   : > { %1972 = vst.msk [vmem:[%s4460_s22 + $0x50] sm:$0xff] %vm649_vm0, %v1956_v16  ;;  %2933 = vmatprep.mubr.msk.f32.mxu1 %vm649_vm0, %v1956_v16 }
 0x2c8   : > { %2934 = vmatmul.mubr.msk.f32.gmra.mrb[26].mxu1 %vm649_vm0, %v1957_v24  ;;  %v1925_v29 = vpop.permute.xlu1 %1924 }
 0x2c9   : > { %v1959_v26 = vadd.f32 %v1925_v29, %v4415_v61 }
 0x2cb   : > { %1975 = vst.msk [vmem:[%s4460_s22 + $0x68] sm:$0xff] %vm649_vm0, %v1959_v26 }
 0x2cc   : > { %v1923_v19 = vpop.permute.xlu0 %1922 }
 0x2cd   : > { %v1958_v8 = vadd.f32 %v1923_v19, %v4428_v56 }
 0x2cf   : > { %1974 = vst.msk [vmem:[%s4460_s22 + $0x60] sm:$0xff] %vm649_vm0, %v1958_v8  ;;  %2936 = vmatprep.mubr.msk.f32.mxu1 %vm649_vm0, %v1958_v8 }
 0x2d0   : > { %2937 = vmatmul.mubr.msk.f32.gmra.mrb[28].mxu1 %vm649_vm0, %v1959_v26 }
 0x2d1   : > { %v1929_v20 = vpop.permute.xlu1 %1928 }
 0x2d2   : > { %v1961_v58 = vadd.f32 %v1929_v20, %v4444_v15 }
 0x2d4   : > { %1977 = vst.msk [vmem:[%s4460_s22 + $0x78] sm:$0xff] %vm649_vm0, %v1961_v58  ;;  %v1927_v47 = vpop.permute.xlu0 %1926 }
 0x2d5   : > { %v1960_v53 = vadd.f32 %v1927_v47, %v1864_v5 }
 0x2d7   : > { %1976 = vst.msk [vmem:[%s4460_s22 + $0x70] sm:$0xff] %vm649_vm0, %v1960_v53  ;;  %2939 = vmatprep.mubr.msk.f32.mxu1 %vm649_vm0, %v1960_v53 }
 0x2d8   : > { %2940 = vmatmul.mubr.msk.f32.gmra.mrb[30].mxu1 %vm649_vm0, %v1961_v58 }
 0x37c   : > { %v2920_v35 = vpop.f32.mrb[16].mxu1 }
 0x37d   : > { %v4528_v61 = vadd.f32 %v2920_v35, %v2715_v28  ;;  %v2152_v32 = vpop.f32.mrb[17].mxu1 }
 0x37e   : > { %v4530_v0 = vadd.f32 %v2715_v28, %v2152_v32 }
 0x37f   : > { %v2235_v14 = vsel %vm2231_vm3, %v4528_v61, -inf }
 0x380   : > { %2236 = vmax.xlane.f32.xlu1 %v2235_v14  ;;  %v2232_v51 = vsel %vm2231_vm3, %v4530_v0, -inf }
 0x381   : > { %2233 = vmax.xlane.f32.xlu0 %v2232_v51 }
 0x383   : > { %v2923_v55 = vpop.f32.mrb[18].mxu1 }
 0x384   : > { %v4536_v3 = vadd.f32 %v2923_v55, %v2715_v28  ;;  %v2162_v22 = vpop.f32.mrb[19].mxu1 }
 0x385   : > { %v4538_v60 = vadd.f32 %v2715_v28, %v2162_v22 }
 0x386   : > { %v2241_v56 = vsel %vm2231_vm3, %v4536_v3, -inf }
 0x387   : > { %2242 = vmax.xlane.f32.xlu0 %v2241_v56  ;;  %v2926_v4 = vpop.f32.mrb[20].mxu1  ;;  %v2238_v27 = vsel %vm2231_vm3, %v4538_v60, -inf }
 0x388   : > { %v2172_v43 = vpop.f32.mrb[21].mxu1  ;;  %v4544_v48 = vadd.f32 %v2926_v4, %v2715_v28 }
 0x389   : > { %v4542_v44 = vadd.f32 %v2715_v28, %v2172_v43 }
 0x38a   : > { %v2247_v49 = vsel %vm2231_vm3, %v4544_v48, -inf }
 0x38b   : > { %2239 = vmax.xlane.f32.xlu0 %v2238_v27  ;;  %v2929_v41 = vpop.f32.mrb[22].mxu1  ;;  %v2244_v62 = vsel %vm2231_vm3, %v4542_v44, -inf }
 0x38c   : > { %2245 = vmax.xlane.f32.xlu1 %v2244_v62  ;;  %v2182_v59 = vpop.f32.mrb[23].mxu1  ;;  %v4552_v46 = vadd.f32 %v2929_v41, %v2715_v28 }
 0x38d   : > { %v4550_v33 = vadd.f32 %v2715_v28, %v2182_v59 }
 0x38e   : > { %v2253_v45 = vsel %vm2231_vm3, %v4552_v46, -inf }
 0x38f   : > { %2248 = vmax.xlane.f32.xlu0 %v2247_v49  ;;  %v2250_v9 = vsel %vm2231_vm3, %v4550_v33, -inf }
 0x390   : > { %2251 = vmax.xlane.f32.xlu1 %v2250_v9 }
 0x393   : > { %v2932_v15 = vpop.f32.mrb[24].mxu1  ;;  %2254 = vmax.xlane.f32.xlu0 %v2253_v45 }
 0x394   : > { %v4560_v7 = vadd.f32 %v2932_v15, %v2715_v28  ;;  %v2192_v57 = vpop.f32.mrb[25].mxu1 }
 0x395   : > { %v4562_v11 = vadd.f32 %v2715_v28, %v2192_v57 }
 0x396   : > { %v2259_v54 = vsel %vm2231_vm3, %v4560_v7, -inf }
 0x397   : > { %v2256_v25 = vsel %vm2231_vm3, %v4562_v11, -inf  ;;  %2260 = vmax.xlane.f32.xlu0 %v2259_v54 }
 0x398   : > { %2257 = vmax.xlane.f32.xlu1 %v2256_v25 }
 0x39b   : > { %v2935_v5 = vpop.f32.mrb[26].mxu1 }
 0x39c   : > { %v4568_v63 = vadd.f32 %v2935_v5, %v2715_v28  ;;  %v2202_v2 = vpop.f32.mrb[27].mxu1 }
 0x39d   : > { %v4570_v36 = vadd.f32 %v2715_v28, %v2202_v2 }
 0x39e   : > { %v2265_v10 = vsel %vm2231_vm3, %v4568_v63, -inf }
 0x39f   : > { %v2262_v1 = vsel %vm2231_vm3, %v4570_v36, -inf  ;;  %2266 = vmax.xlane.f32.xlu0 %v2265_v10 }
 0x3a0   : > { %2263 = vmax.xlane.f32.xlu1 %v2262_v1 }
 0x3a3   : > { %v2938_v38 = vpop.f32.mrb[28].mxu1 }
 0x3a4   : > { %v4576_v40 = vadd.f32 %v2938_v38, %v2715_v28  ;;  %v2212_v17 = vpop.f32.mrb[29].mxu1 }
 0x3a5   : > { %v4578_v37 = vadd.f32 %v2715_v28, %v2212_v17 }
 0x3a6   : > { %v2271_v21 = vsel %vm2231_vm3, %v4576_v40, -inf }
 0x3a7   : > { %v2268_v18 = vsel %vm2231_vm3, %v4578_v37, -inf  ;;  %2272 = vmax.xlane.f32.xlu0 %v2271_v21 }
 0x3a8   : > { %2269 = vmax.xlane.f32.xlu1 %v2268_v18 }
 0x3ab   : > { %v2941_v6 = vpop.f32.mrb[30].mxu1 }
 0x3ac   : > { %v4584_v13 = vadd.f32 %v2941_v6, %v2715_v28  ;;  %v2222_v30 = vpop.f32.mrb[31].mxu1 }
 0x3ad   : > { %v4586_v23 = vadd.f32 %v2715_v28, %v2222_v30 }
 0x3ae   : > { %v2277_v39 = vsel %vm2231_vm3, %v4584_v13, -inf }
 0x3af   : > { %v2274_v42 = vsel %vm2231_vm3, %v4586_v23, -inf  ;;  %2278 = vmax.xlane.f32.xlu0 %v2277_v39 }
 0x3b0   : > { %2275 = vmax.xlane.f32.xlu1 %v2274_v42 }
 0x40d   : > { %v2237_v12 = vpop.xlane.xlu1 %2236 }
 0x40e   : > { %v4593_v50 = vsub.f32 %v4528_v61, %v2237_v12  ;;  %v2234_v34 = vpop.xlane.xlu0 %2233 }
 0x40f   : > { %v4596_v52 = vsub.f32 %v4530_v0, %v2234_v34 }
 0x410   : > { %v2298_v24 = vmul.f32 1.442695, %v4593_v50 }
 0x411   : > { %v2296_v31 = vmul.f32 1.442695, %v4596_v52 }
 0x412   : > { %3207 = vpow2.f32 %v2298_v24 }
 0x413   : > { %3209 = vpow2.f32 %v2296_v31 }
 0x414   : > { %v2243_v16 = vpop.xlane.xlu0 %2242 }
 0x415   : > { %v4601_v29 = vsub.f32 %v4536_v3, %v2243_v16 }
 0x417   : > { %v2302_v26 = vmul.f32 1.442695, %v4601_v29 }
 0x418   : > { %v2240_v19 = vpop.xlane.xlu0 %2239 }
 0x419   : > { %3211 = vpow2.f32 %v2302_v26  ;;  %v4605_v8 = vsub.f32 %v4538_v60, %v2240_v19  ;;  %v2246_v20 = vpop.xlane.xlu1 %2245 }
 0x41a   : > { %v4608_v58 = vsub.f32 %v4542_v44, %v2246_v20 }
 0x41b   : > { %v2300_v47 = vmul.f32 1.442695, %v4605_v8 }
 0x41c   : > { %v3208_v53 = vpop.eup %3207  ;;  %v2304_v28 = vmul.f32 1.442695, %v4608_v58  ;;  %v2249_v35 = vpop.xlane.xlu0 %2248 }
 0x41d   : > { %v3210_v61 = vpop.eup %3209  ;;  %3213 = vpow2.f32 %v2300_v47  ;;  %v4613_v32 = vsub.f32 %v4544_v48, %v2249_v35  ;;  %v2252_v0 = vpop.xlane.xlu1 %2251  ;;  %v2331_v14 = vsel %vm2231_vm3, %v3208_v53, 0.0 }
 0x41e   : > { %v4617_v51 = vsub.f32 %v4550_v33, %v2252_v0  ;;  %2332 = vadd.xlane.f32.xlu0 %v2331_v14  ;;  %v2328_v55 = vsel %vm2231_vm3, %v3210_v61, 0.0  ;;  %3215 = vpow2.f32 %v2304_v28 }
 0x41f   : > { %v2306_v3 = vmul.f32 1.442695, %v4613_v32  ;;  %2329 = vadd.xlane.f32.xlu1 %v2328_v55 }
 0x420   : > { %v2308_v22 = vmul.f32 1.442695, %v4617_v51  ;;  %v2255_v60 = vpop.xlane.xlu0 %2254 }
 0x421   : > { %3217 = vpow2.f32 %v2306_v3  ;;  %v4623_v56 = vsub.f32 %v4552_v46, %v2255_v60 }
 0x422   : > { %3219 = vpow2.f32 %v2308_v22 }
 0x423   : > { %v3212_v4 = vpop.eup %3211  ;;  %v2310_v43 = vmul.f32 1.442695, %v4623_v56 }
 0x424   : > { %v2261_v48 = vpop.xlane.xlu0 %2260  ;;  %v2337_v27 = vsel %vm2231_vm3, %v3212_v4, 0.0 }
 0x425   : > { %v2258_v44 = vpop.xlane.xlu1 %2257  ;;  %3221 = vpow2.f32 %v2310_v43  ;;  %v4631_v62 = vsub.f32 %v4560_v7, %v2261_v48  ;;  %2338 = vadd.xlane.f32.xlu0 %v2337_v27 }
 0x426   : > { %v4628_v41 = vsub.f32 %v4562_v11, %v2258_v44 }
 0x427   : > { %v3214_v59 = vpop.eup %3213  ;;  %v2314_v46 = vmul.f32 1.442695, %v4631_v62 }
 0x428   : > { %v2312_v33 = vmul.f32 1.442695, %v4628_v41  ;;  %v2334_v49 = vsel %vm2231_vm3, %v3214_v59, 0.0  ;;  %v3216_v9 = vpop.eup %3215 }
 0x429   : > { %2335 = vadd.xlane.f32.xlu1 %v2334_v49  ;;  %v2340_v7 = vsel %vm2231_vm3, %v3216_v9, 0.0 }
 0x42a   : > { %3223 = vpow2.f32 %v2312_v33 }
 0x42b   : > { %3225 = vpow2.f32 %v2314_v46  ;;  %v3218_v15 = vpop.eup %3217 }
 0x42c   : > { %v2267_v45 = vpop.xlane.xlu0 %2266  ;;  %v2343_v25 = vsel %vm2231_vm3, %v3218_v15, 0.0  ;;  %v3220_v54 = vpop.eup %3219 }
 0x42d   : > { %v2264_v57 = vpop.xlane.xlu1 %2263  ;;  %v4637_v11 = vsub.f32 %v4568_v63, %v2267_v45  ;;  %2341 = vadd.xlane.f32.xlu1 %v2340_v7  ;;  %2344 = vadd.xlane.f32.xlu0 %v2343_v25  ;;  %v2346_v38 = vsel %vm2231_vm3, %v3220_v54, 0.0 }
 0x42e   : > { %v4642_v5 = vsub.f32 %v4570_v36, %v2264_v57 }
 0x42f   : > { %v2318_v2 = vmul.f32 1.442695, %v4637_v11  ;;  %v3222_v10 = vpop.eup %3221 }
 0x430   : > { %v2316_v1 = vmul.f32 1.442695, %v4642_v5  ;;  %v2349_v63 = vsel %vm2231_vm3, %v3222_v10, 0.0 }
 0x431   : > { %3227 = vpow2.f32 %v2318_v2  ;;  %2347 = vadd.xlane.f32.xlu1 %v2346_v38  ;;  %2350 = vadd.xlane.f32.xlu0 %v2349_v63 }
 0x432   : > { %3229 = vpow2.f32 %v2316_v1 }
 0x434   : > { %v3224_v17 = vpop.eup %3223  ;;  %v2273_v21 = vpop.xlane.xlu0 %2272 }
 0x435   : > { %v3226_v18 = vpop.eup %3225  ;;  %v2270_v36 = vpop.xlane.xlu1 %2269  ;;  %v4649_v6 = vsub.f32 %v4576_v40, %v2273_v21  ;;  %v2352_v30 = vsel %vm2231_vm3, %v3224_v17, 0.0 }
 0x436   : > { %v4653_v39 = vsub.f32 %v4578_v37, %v2270_v36  ;;  %2353 = vadd.xlane.f32.xlu1 %v2352_v30  ;;  %v2355_v42 = vsel %vm2231_vm3, %v3226_v18, 0.0 }
 0x437   : > { %v2322_v12 = vmul.f32 1.442695, %v4649_v6  ;;  %2356 = vadd.xlane.f32.xlu0 %v2355_v42 }
 0x438   : > { %v2320_v34 = vmul.f32 1.442695, %v4653_v39 }
 0x439   : > { %3231 = vpow2.f32 %v2322_v12 }
 0x43a   : > { %3233 = vpow2.f32 %v2320_v34 }
 0x43b   : > { %v3228_v24 = vpop.eup %3227 }
 0x43c   : > { %v3230_v31 = vpop.eup %3229  ;;  %v2279_v16 = vpop.xlane.xlu0 %2278  ;;  %v2361_v40 = vsel %vm2231_vm3, %v3228_v24, 0.0 }
 0x43d   : > { %v2276_v26 = vpop.xlane.xlu1 %2275  ;;  %v4660_v19 = vsub.f32 %v4584_v13, %v2279_v16  ;;  %v2358_v37 = vsel %vm2231_vm3, %v3230_v31, 0.0  ;;  %2362 = vadd.xlane.f32.xlu0 %v2361_v40 }
 0x43e   : > { %v4664_v20 = vsub.f32 %v4586_v23, %v2276_v26  ;;  %2359 = vadd.xlane.f32.xlu1 %v2358_v37 }
 0x43f   : > { %v2326_v47 = vmul.f32 1.442695, %v4660_v19 }
 0x440   : > { %v2324_v53 = vmul.f32 1.442695, %v4664_v20 }
 0x441   : > { %3235 = vpow2.f32 %v2326_v47 }
 0x442   : > { %3237 = vpow2.f32 %v2324_v53 }
 0x443   : > { %v3232_v28 = vpop.eup %3231 }
 0x444   : > { %v3234_v35 = vpop.eup %3233  ;;  %v2367_v61 = vsel %vm2231_vm3, %v3232_v28, 0.0 }
 0x445   : > { %v2364_v13 = vsel %vm2231_vm3, %v3234_v35, 0.0  ;;  %2368 = vadd.xlane.f32.xlu0 %v2367_v61 }
 0x446   : > { %2365 = vadd.xlane.f32.xlu1 %v2364_v13 }
 0x44b   : > { %v3236_v0 = vpop.eup %3235 }
 0x44c   : > { %v3238_v14 = vpop.eup %3237  ;;  %v2373_v23 = vsel %vm2231_vm3, %v3236_v0, 0.0 }
 0x44d   : > { %v2370_v55 = vsel %vm2231_vm3, %v3238_v14, 0.0  ;;  %2374 = vadd.xlane.f32.xlu0 %v2373_v23 }
 0x44e   : > { %2371 = vadd.xlane.f32.xlu1 %v2370_v55 }
 0x4ab   : > { %v2333_v3 = vpop.xlane.xlu0 %2332 }
 0x4ac   : > { %3239 = vlog2.f32 %v2333_v3  ;;  %v2330_v22 = vpop.xlane.xlu1 %2329 }
 0x4ad   : > { %3241 = vlog2.f32 %v2330_v22 }
 0x4b2   : > { %v2339_v60 = vpop.xlane.xlu0 %2338 }
 0x4b3   : > { %3243 = vlog2.f32 %v2339_v60 }
 0x4b6   : > { %v3240_v4 = vpop.eup %3239  ;;  %v2336_v43 = vpop.xlane.xlu1 %2335 }
 0x4b7   : > { %v3242_v44 = vpop.eup %3241  ;;  %v2379_v48 = vmul.f32 0.6931472, %v3240_v4  ;;  %3245 = vlog2.f32 %v2336_v43 }
 0x4b8   : > { %v2377_v27 = vmul.f32 0.6931472, %v3242_v44 }
 0x4b9   : > { %v2409_v59 = vsub.f32 %v4593_v50, %v2379_v48 }
 0x4ba   : > { %v2408_v33 = vsub.f32 %v4596_v52, %v2377_v27  ;;  %v2342_v46 = vpop.xlane.xlu1 %2341  ;;  %v2345_v49 = vpop.xlane.xlu0 %2344 }
 0x4bb   : > { %2425 = vst.msk [vmem:[%s4676_s24 + $0x8] sm:$0xff] %vm2231_vm3, %v2409_v59  ;;  %3247 = vlog2.f32 %v2342_v46 }
 0x4bc   : > { %2424 = vst.msk [vmem:[%s4676_s24] sm:$0xff] %vm2231_vm3, %v2408_v33  ;;  %3249 = vlog2.f32 %v2345_v49 }
 0x4bd   : > { %v3244_v9 = vpop.eup %3243 }
 0x4be   : > { %v2383_v15 = vmul.f32 0.6931472, %v3244_v9  ;;  %v2348_v45 = vpop.xlane.xlu1 %2347  ;;  %v2351_v57 = vpop.xlane.xlu0 %2350 }
 0x4bf   : > { %3251 = vlog2.f32 %v2348_v45 }
 0x4c0   : > { %v2411_v7 = vsub.f32 %v4601_v29, %v2383_v15  ;;  %3253 = vlog2.f32 %v2351_v57 }
 0x4c1   : > { %v3246_v50 = vpop.eup %3245 }
 0x4c2   : > { %2427 = vst.msk [vmem:[%s4676_s24 + $0x18] sm:$0xff] %vm2231_vm3, %v2411_v7  ;;  %v2381_v52 = vmul.f32 0.6931472, %v3246_v50 }
 0x4c3   : > { %v2354_v25 = vpop.xlane.xlu1 %2353 }
 0x4c4   : > { %3255 = vlog2.f32 %v2354_v25  ;;  %v2357_v54 = vpop.xlane.xlu0 %2356  ;;  %v2410_v2 = vsub.f32 %v4605_v8, %v2381_v52 }
 0x4c5   : > { %3257 = vlog2.f32 %v2357_v54  ;;  %v3248_v10 = vpop.eup %3247 }
 0x4c6   : > { %v3250_v1 = vpop.eup %3249  ;;  %2426 = vst.msk [vmem:[%s4676_s24 + $0x10] sm:$0xff] %vm2231_vm3, %v2410_v2  ;;  %v2385_v38 = vmul.f32 0.6931472, %v3248_v10 }
 0x4c7   : > { %v2387_v63 = vmul.f32 0.6931472, %v3250_v1 }
 0x4c8   : > { %v2412_v29 = vsub.f32 %v4608_v58, %v2385_v38 }
 0x4c9   : > { %v3252_v17 = vpop.eup %3251  ;;  %v2413_v21 = vsub.f32 %v4613_v32, %v2387_v63 }
 0x4ca   : > { %v2363_v18 = vpop.xlane.xlu0 %2362  ;;  %v3254_v36 = vpop.eup %3253  ;;  %2428 = vst.msk [vmem:[%s4676_s24 + $0x20] sm:$0xff] %vm2231_vm3, %v2412_v29  ;;  %v2389_v8 = vmul.f32 0.6931472, %v3252_v17 }
 0x4cb   : > { %v2360_v30 = vpop.xlane.xlu1 %2359  ;;  %3259 = vlog2.f32 %v2363_v18  ;;  %2429 = vst.msk [vmem:[%s4676_s24 + $0x28] sm:$0xff] %vm2231_vm3, %v2413_v21  ;;  %v2391_v42 = vmul.f32 0.6931472, %v3254_v36 }
 0x4cc   : > { %3261 = vlog2.f32 %v2360_v30  ;;  %v2414_v58 = vsub.f32 %v4617_v51, %v2389_v8 }
 0x4cd   : > { %v2415_v34 = vsub.f32 %v4623_v56, %v2391_v42 }
 0x4ce   : > { %v3256_v12 = vpop.eup %3255  ;;  %2430 = vst.msk [vmem:[%s4676_s24 + $0x30] sm:$0xff] %vm2231_vm3, %v2414_v58 }
 0x4cf   : > { %v3258_v32 = vpop.eup %3257  ;;  %v2393_v24 = vmul.f32 0.6931472, %v3256_v12  ;;  %2431 = vst.msk [vmem:[%s4676_s24 + $0x38] sm:$0xff] %vm2231_vm3, %v2415_v34 }
 0x4d0   : > { %v2395_v31 = vmul.f32 0.6931472, %v3258_v32 }
 0x4d1   : > { %v2416_v16 = vsub.f32 %v4628_v41, %v2393_v24 }
 0x4d2   : > { %v2417_v40 = vsub.f32 %v4631_v62, %v2395_v31  ;;  %v2369_v26 = vpop.xlane.xlu0 %2368 }
 0x4d3   : > { %2432 = vst.msk [vmem:[%s4676_s24 + $0x40] sm:$0xff] %vm2231_vm3, %v2416_v16  ;;  %v2366_v51 = vpop.xlane.xlu1 %2365  ;;  %3263 = vlog2.f32 %v2369_v26 }
 0x4d4   : > { %2433 = vst.msk [vmem:[%s4676_s24 + $0x48] sm:$0xff] %vm2231_vm3, %v2417_v40  ;;  %3265 = vlog2.f32 %v2366_v51 }
 0x4d5   : > { %v3260_v56 = vpop.eup %3259 }
 0x4d6   : > { %v3262_v37 = vpop.eup %3261  ;;  %v2399_v47 = vmul.f32 0.6931472, %v3260_v56 }
 0x4d7   : > { %v2397_v53 = vmul.f32 0.6931472, %v3262_v37 }
 0x4d8   : > { %v2419_v28 = vsub.f32 %v4637_v11, %v2399_v47 }
 0x4d9   : > { %v2418_v41 = vsub.f32 %v4642_v5, %v2397_v53 }
 0x4da   : > { %2435 = vst.msk [vmem:[%s4676_s24 + $0x58] sm:$0xff] %vm2231_vm3, %v2419_v28  ;;  %v2375_v62 = vpop.xlane.xlu0 %2374 }
 0x4db   : > { %2434 = vst.msk [vmem:[%s4676_s24 + $0x50] sm:$0xff] %vm2231_vm3, %v2418_v41  ;;  %v2372_v35 = vpop.xlane.xlu1 %2371  ;;  %3267 = vlog2.f32 %v2375_v62 }
 0x4dc   : > { %3269 = vlog2.f32 %v2372_v35 }
 0x4dd   : > { %v3264_v61 = vpop.eup %3263 }
 0x4de   : > { %v3266_v13 = vpop.eup %3265  ;;  %v2403_v0 = vmul.f32 0.6931472, %v3264_v61 }
 0x4df   : > { %v2401_v14 = vmul.f32 0.6931472, %v3266_v13 }
 0x4e0   : > { %v2421_v23 = vsub.f32 %v4649_v6, %v2403_v0 }
 0x4e1   : > { %v2420_v11 = vsub.f32 %v4653_v39, %v2401_v14 }
 0x4e2   : > { %2437 = vst.msk [vmem:[%s4676_s24 + $0x68] sm:$0xff] %vm2231_vm3, %v2421_v23 }
 0x4e3   : > { %2436 = vst.msk [vmem:[%s4676_s24 + $0x60] sm:$0xff] %vm2231_vm3, %v2420_v11 }
 0x4e5   : > { %v3268_v5 = vpop.eup %3267 }
 0x4e6   : > { %v3270_v55 = vpop.eup %3269  ;;  %v2407_v3 = vmul.f32 0.6931472, %v3268_v5 }
 0x4e7   : > { %v2405_v22 = vmul.f32 0.6931472, %v3270_v55 }
 0x4e8   : > { %v2423_v60 = vsub.f32 %v4660_v19, %v2407_v3 }
 0x4e9   : > { %v2422_v4 = vsub.f32 %v4664_v20, %v2405_v22 }
 0x4ea   : > { %2439 = vst.msk [vmem:[%s4676_s24 + $0x78] sm:$0xff] %vm2231_vm3, %v2423_v60 }
 0x4eb   : > { %2438 = vst.msk [vmem:[%s4676_s24 + $0x70] sm:$0xff] %vm2231_vm3, %v2422_v4 }
 0x4ec PF: > { %s26_s18 = sadd.s32 1, %s3309_s18  }
 0x4ed   : > { %p23_p4 = scmp.ge.s32.totalorder %s26_s18, 4  }
 0x4ef   :  { %25 = sbr.rel (!%p23_p4) target bundleno = 1 (0x1), region = 145 }

</bundles_post_ra>
